<compile_context>
chip_gen: v7x
topology: tpu7x:2x2x1
jax: 0.10.0
libtpu: 0.0.40
codegen_flags: <defaults>
</compile_context>

<pallas_src>
import math

import jax
import jax.numpy as jnp
from jax.experimental import pallas as pl
from jax.experimental.pallas import tpu as pltpu

NEG_INF = -1e30           # finite stand-in for -inf (keeps softmax NaN-free)

# ----------------------- model hyper-parameters (small) -----------------------
BATCH = 2
SRC_LEN = 8
TGT_LEN = 8
D_MODEL = 32
NHEAD = 4
DH = D_MODEL // NHEAD
NUM_ENC_LAYERS = 2
NUM_DEC_LAYERS = 2
DIM_FF = 64
IN_VOCAB = 40
OUT_VOCAB = 48
OUT_PAD = 128             # lane-dense padded logits width (multiple of 128)
MAX_LEN = 32
PAD_IDX = 0               # in/out tokenizer '[PAD]' index

# one shared head-mask / segment matrix is reused for all attentions (Ss == St)
assert SRC_LEN == TGT_LEN


# ========================= in-kernel building blocks ==========================

def _layer_norm(x, g, b, eps=1e-5):
    # variance as E[x^2] - mean^2: the two lane reductions are independent
    mean = jnp.mean(x, axis=-1, keepdims=True)
    meansq = jnp.mean(x * x, axis=-1, keepdims=True)
    var = jnp.maximum(meansq - mean * mean, 0.0)
    return (x - mean) * jax.lax.rsqrt(var + eps) * g + b


def _mha_bd(x_q, x_kv, wq, bq, wk, bk, wv, bv, wo, bo, bias_bd, head_mask, seg):
    """Block-diagonal multi-head attention (all batches & heads in one matmul set).

    x_q: (B*Sq, D) f32; x_kv: (B*Sk, D) f32.
    wq already carries the 1/sqrt(Dh) scale.  bias_bd: (B*Sq, H*B*Sk) additive
    f32 bias with NEG_INF on every cross-batch block.  head_mask: (H*B*Sk, D)
    bf16 0/1 mask selecting each head's D_h columns.  seg: (H*B*Sk, H*B*Sk) f32
    segment matrix (1 where the two columns belong to the same head).
    """
    H = NHEAD
    xq = x_q.astype(jnp.bfloat16)
    xkv = x_kv.astype(jnp.bfloat16)

    q = jnp.dot(xq, wq, preferred_element_type=jnp.float32) + bq     # (B*Sq, D), pre-scaled
    k = jnp.dot(xkv, wk, preferred_element_type=jnp.float32) + bk    # (B*Sk, D)
    v = jnp.dot(xkv, wv, preferred_element_type=jnp.float32) + bv

    # Head-block-diagonal expansion: H sublane-aligned copies, masked per head.
    k_bd = jnp.concatenate([k.astype(jnp.bfloat16)] * H, axis=0) * head_mask  # (H*B*Sk, D)
    v_bd = jnp.concatenate([v.astype(jnp.bfloat16)] * H, axis=0) * head_mask

    # One score matmul for every (batch, head): contract last dims (NT form).
    s = jax.lax.dot_general(q.astype(jnp.bfloat16), k_bd,
                            (((1,), (1,)), ((), ())),
                            preferred_element_type=jnp.float32)       # (B*Sq, H*B*Sk)
    s = s + bias_bd

    # Softmax: row-global max (shift-invariant per head segment); invalid columns
    # are NEG_INF-biased and underflow to exactly 0 after exp.
    m = jnp.max(s, axis=-1, keepdims=True)
    p = jnp.exp(s - m)
    denom = jnp.dot(p, seg, preferred_element_type=jnp.float32)       # per-head sums, broadcast
    p = p / denom                                                     # exact divide

    ctx = jnp.dot(p.astype(jnp.bfloat16), v_bd,
                  preferred_element_type=jnp.float32)                 # (B*Sq, D), head-merged
    return jnp.dot(ctx.astype(jnp.bfloat16), wo,
                   preferred_element_type=jnp.float32) + bo


def _ffn(x, w1, b1, w2, b2):
    h = jnp.maximum(jnp.dot(x.astype(jnp.bfloat16), w1,
                            preferred_element_type=jnp.float32) + b1, 0.0)
    return jnp.dot(h.astype(jnp.bfloat16), w2,
                   preferred_element_type=jnp.float32) + b2


# ============================ fused forward kernel ============================

def _fused_transformer_kernel(
    src_ref, tgt_ref, enc_bias_ref, dec_bias_ref, cross_bias_ref,
    head_mask_ref, seg_ref,
    # encoder layers (stacked on a leading layer axis)
    e_wq, e_bq, e_wk, e_bk, e_wv, e_bv, e_wo, e_bo,
    e_f1w, e_f1b, e_f2w, e_f2b,
    e_ln1g, e_ln1b, e_ln2g, e_ln2b,
    e_ng, e_nb,
    # decoder layers
    d_swq, d_sbq, d_swk, d_sbk, d_swv, d_sbv, d_swo, d_sbo,
    d_cwq, d_cbq, d_cwk, d_cbk, d_cwv, d_cbv, d_cwo, d_cbo,
    d_f1w, d_f1b, d_f2w, d_f2b,
    d_ln1g, d_ln1b, d_ln2g, d_ln2b, d_ln3g, d_ln3b,
    d_ng, d_nb,
    fin_w, fin_b,
    out_ref,
):
    enc_bias = enc_bias_ref[...]     # (B*Ss, H*B*Ss)
    dec_bias = dec_bias_ref[...]     # (B*St, H*B*St)
    cross_bias = cross_bias_ref[...]  # (B*St, H*B*Ss)
    head_mask = head_mask_ref[...]   # (H*B*S, D) bf16
    seg = seg_ref[...]               # (H*B*S, H*B*S) f32

    # ---------------- encoder (post-norm, nn.Transformer defaults) ----------------
    x = src_ref[...]                 # (B*Ss, D)
    for i in range(NUM_ENC_LAYERS):
        a = _mha_bd(x, x, e_wq[i], e_bq[i], e_wk[i], e_bk[i], e_wv[i], e_bv[i],
                    e_wo[i], e_bo[i], enc_bias, head_mask, seg)
        x = _layer_norm(x + a, e_ln1g[i], e_ln1b[i])
        h = _ffn(x, e_f1w[i], e_f1b[i], e_f2w[i], e_f2b[i])
        x = _layer_norm(x + h, e_ln2g[i], e_ln2b[i])
    memory = _layer_norm(x, e_ng[...], e_nb[...])     # encoder final norm

    # ---------------- decoder ----------------
    y = tgt_ref[...]                 # (B*St, D)
    for i in range(NUM_DEC_LAYERS):
        a = _mha_bd(y, y, d_swq[i], d_sbq[i], d_swk[i], d_sbk[i], d_swv[i], d_sbv[i],
                    d_swo[i], d_sbo[i], dec_bias, head_mask, seg)
        y = _layer_norm(y + a, d_ln1g[i], d_ln1b[i])
        c = _mha_bd(y, memory, d_cwq[i], d_cbq[i], d_cwk[i], d_cbk[i], d_cwv[i],
                    d_cbv[i], d_cwo[i], d_cbo[i], cross_bias, head_mask, seg)
        y = _layer_norm(y + c, d_ln2g[i], d_ln2b[i])
        h = _ffn(y, d_f1w[i], d_f1b[i], d_f2w[i], d_f2b[i])
        y = _layer_norm(y + h, d_ln3g[i], d_ln3b[i])
    y = _layer_norm(y, d_ng[...], d_nb[...])          # decoder final norm

    # ------ output projection: lane-dense (B*St, 128) slab (vocab zero-padded) ------
    out_ref[...] = (jnp.dot(y.astype(jnp.bfloat16), fin_w[...],
                            preferred_element_type=jnp.float32)
                    + fin_b[...]).astype(out_ref.dtype)


# ============================== host-side wrapper =============================

def positional_encoding(max_len, d_model):
    position = jnp.arange(max_len, dtype=jnp.float32)[:, None]
    div_term = jnp.exp(jnp.arange(0, d_model, 2, dtype=jnp.float32)
                       * (-math.log(10000.0) / d_model))
    ang = position * div_term                                   # (max_len, d_model//2)
    pe = jnp.stack([jnp.sin(ang), jnp.cos(ang)], axis=-1).reshape(max_len, d_model)
    return pe                                                   # even=sin, odd=cos


def _expand_bias(inner, B, Sq, Sk, H):
    """(B, Sq, Sk) per-batch additive bias -> (B*Sq, H*B*Sk) block-diagonal bias.

    Row r = b*Sq + i ; column c = h*(B*Sk) + b'*Sk + j.  Cross-batch blocks get
    NEG_INF so the single merged softmax reduces to per-(batch, head) softmaxes.
    """
    nq, nk = B * Sq, H * B * Sk
    rb = jnp.arange(nq) // Sq
    ri = jnp.arange(nq) % Sq
    cb = (jnp.arange(nk) % (B * Sk)) // Sk
    cj = jnp.arange(nk) % Sk
    vals = inner[rb[:, None], ri[:, None], cj[None, :]]
    same = rb[:, None] == cb[None, :]
    return jnp.where(same, vals, NEG_INF).astype(jnp.float32)


def _attn_constants():
    """Head mask for the block-diagonal K/V expansion + segment-sum matrix."""
    n = NHEAD * BATCH * SRC_LEN
    col_h = jnp.arange(n) // (BATCH * SRC_LEN)                       # head id per expanded row
    seg = (col_h[:, None] == col_h[None, :]).astype(jnp.float32)     # (n, n)
    d_h = jnp.arange(D_MODEL) // DH
    head_mask = (col_h[:, None] == d_h[None, :]).astype(jnp.bfloat16)  # (n, D)
    return head_mask, seg


def model_forward(packed, inputs, targets, pe):
    B, Ss = inputs.shape
    St = targets.shape[1]
    scale = math.sqrt(D_MODEL)

    # TODO(synk): token-embedding gather stays in plain XLA (a data-dependent gather
    # has no worthwhile Pallas TPU equivalent at this size).
    src = (jnp.take(packed["in_embedding"], inputs, axis=0) * scale
           + pe[None, :Ss, :]).reshape(B * Ss, D_MODEL).astype(jnp.float32)
    tgt = (jnp.take(packed["out_embedding"], targets, axis=0) * scale
           + pe[None, :St, :]).reshape(B * St, D_MODEL).astype(jnp.float32)
    # dropout (p=0.1) is identity in eval mode

    src_pad = inputs == PAD_IDX
    tgt_pad = targets == PAD_IDX
    # src_mask is an all-False bool mask in the reference -> no-op; only key padding applies.
    enc_inner = jnp.broadcast_to(
        jnp.where(src_pad[:, None, :], NEG_INF, 0.0).astype(jnp.float32), (B, Ss, Ss))
    causal = jnp.where(jnp.triu(jnp.ones((St, St), jnp.float32), k=1) == 1.0, NEG_INF, 0.0)
    dec_inner = (causal[None, :, :]
                 + jnp.where(tgt_pad[:, None, :], NEG_INF, 0.0).astype(jnp.float32))
    # reference passes no memory_mask / memory_key_padding_mask -> zero inner bias
    cross_inner = jnp.zeros((B, St, Ss), jnp.float32)

    enc_bias = _expand_bias(enc_inner, B, Ss, Ss, NHEAD)      # (B*Ss, H*B*Ss)
    dec_bias = _expand_bias(dec_inner, B, St, St, NHEAD)      # (B*St, H*B*St)
    cross_bias = _expand_bias(cross_inner, B, St, Ss, NHEAD)  # (B*St, H*B*Ss)
    head_mask, seg = _attn_constants()

    flat_inputs = (src, tgt, enc_bias, dec_bias, cross_bias, head_mask, seg) \
        + tuple(packed["weights"])

    # TODO(synk): on v7x, split the batch across the two TensorCores via
    # grid=(BATCH,) + dimension_semantics=("parallel",); single-shot is optimal
    # on the 1-TC v5e/v6e chips, so that path is not emitted here.
    out = pl.pallas_call(
        _fused_transformer_kernel,
        out_shape=jax.ShapeDtypeStruct((B * St, OUT_PAD), jnp.float32),
        in_specs=[pl.BlockSpec(memory_space=pltpu.MemorySpace.VMEM)] * len(flat_inputs),
        out_specs=pl.BlockSpec(memory_space=pltpu.MemorySpace.VMEM),
    )(*flat_inputs)

    return out[:, :OUT_VOCAB].reshape(B, St, OUT_VOCAB)       # (batch, tgt_seq, vocab)


# =============================== parameter init ===============================

def init_params(key):
    state = {"key": key}

    def nxt():
        state["key"], sub = jax.random.split(state["key"])
        return sub

    def dense(shape):
        return 0.02 * jax.random.normal(nxt(), shape, jnp.float32)

    def mha_p():
        return {
            "in_proj_w": dense((3 * D_MODEL, D_MODEL)),
            "in_proj_b": jnp.zeros((3 * D_MODEL,), jnp.float32),
            "out_w": dense((D_MODEL, D_MODEL)),
            "out_b": jnp.zeros((D_MODEL,), jnp.float32),
        }

    def ln_p():
        return {"g": jnp.ones((D_MODEL,), jnp.float32),
                "b": jnp.zeros((D_MODEL,), jnp.float32)}

    def enc_layer_p():
        return {"self_attn": mha_p(),
                "linear1": {"w": dense((DIM_FF, D_MODEL)), "b": jnp.zeros((DIM_FF,), jnp.float32)},
                "linear2": {"w": dense((D_MODEL, DIM_FF)), "b": jnp.zeros((D_MODEL,), jnp.float32)},
                "norm1": ln_p(), "norm2": ln_p()}

    def dec_layer_p():
        return {"self_attn": mha_p(), "cross_attn": mha_p(),
                "linear1": {"w": dense((DIM_FF, D_MODEL)), "b": jnp.zeros((DIM_FF,), jnp.float32)},
                "linear2": {"w": dense((D_MODEL, DIM_FF)), "b": jnp.zeros((D_MODEL,), jnp.float32)},
                "norm1": ln_p(), "norm2": ln_p(), "norm3": ln_p()}

    return {
        "in_embedding": dense((IN_VOCAB, D_MODEL)),
        "out_embedding": dense((OUT_VOCAB, D_MODEL)),
        "encoder": [enc_layer_p() for _ in range(NUM_ENC_LAYERS)],
        "decoder": [dec_layer_p() for _ in range(NUM_DEC_LAYERS)],
        "enc_norm": ln_p(),
        "dec_norm": ln_p(),
        "final_w": dense((OUT_VOCAB, D_MODEL)),
        "final_b": jnp.zeros((OUT_VOCAB,), jnp.float32),
    }


def pack_params(params):
    """One-time packing: split Q/K/V, pre-transpose (out,in)->(in,out), fold the
    1/sqrt(Dh) scale into Wq/bq, cast matmul weights to bf16 and stack per layer."""
    BF = jnp.bfloat16
    D = D_MODEL
    q_scale = 1.0 / math.sqrt(DH)

    def stk(layers, fn, dtype=jnp.float32):
        return jnp.stack([fn(lp) for lp in layers]).astype(dtype)

    def attn_w(layers, name):
        return (
            stk(layers, lambda p: p[name]["in_proj_w"][:D].T * q_scale, BF),       # Wq (L,D,D)
            stk(layers, lambda p: (p[name]["in_proj_b"][:D] * q_scale)[None, :]),  # bq (L,1,D)
            stk(layers, lambda p: p[name]["in_proj_w"][D:2 * D].T, BF),            # Wk
            stk(layers, lambda p: p[name]["in_proj_b"][D:2 * D][None, :]),         # bk
            stk(layers, lambda p: p[name]["in_proj_w"][2 * D:].T, BF),             # Wv
            stk(layers, lambda p: p[name]["in_proj_b"][2 * D:][None, :]),          # bv
            stk(layers, lambda p: p[name]["out_w"].T, BF),                         # Wo
            stk(layers, lambda p: p[name]["out_b"][None, :]),                      # bo
        )

    def ffn_w(layers):
        return (
            stk(layers, lambda p: p["linear1"]["w"].T, BF),           # (L, D, F)
            stk(layers, lambda p: p["linear1"]["b"][None, :]),        # (L, 1, F)
            stk(layers, lambda p: p["linear2"]["w"].T, BF),           # (L, F, D)
            stk(layers, lambda p: p["linear2"]["b"][None, :]),        # (L, 1, D)
        )

    def ln_w(layers, name):
        return (stk(layers, lambda p: p[name]["g"][None, :]),
                stk(layers, lambda p: p[name]["b"][None, :]))

    enc, dec = params["encoder"], params["decoder"]

    final_w = jnp.zeros((D, OUT_PAD), jnp.float32).at[:, :OUT_VOCAB] \
        .set(params["final_w"].T).astype(BF)
    final_b = jnp.zeros((1, OUT_PAD), jnp.float32).at[0, :OUT_VOCAB].set(params["final_b"])

    weights = (
        attn_w(enc, "self_attn") + ffn_w(enc)
        + ln_w(enc, "norm1") + ln_w(enc, "norm2")
        + (params["enc_norm"]["g"][None, :], params["enc_norm"]["b"][None, :])
        + attn_w(dec, "self_attn") + attn_w(dec, "cross_attn") + ffn_w(dec)
        + ln_w(dec, "norm1") + ln_w(dec, "norm2") + ln_w(dec, "norm3")
        + (params["dec_norm"]["g"][None, :], params["dec_norm"]["b"][None, :])
        + (final_w, final_b)
    )
    return {"in_embedding": params["in_embedding"],
            "out_embedding": params["out_embedding"],
            "weights": weights}


# ==================================== main ====================================

if __name__ == "__main__":
    key = jax.random.PRNGKey(0)
    k_params, k_in, k_tgt = jax.random.split(key, 3)

    params = init_params(k_params)
    packed = pack_params(params)
    pe = positional_encoding(MAX_LEN, D_MODEL)

    inputs = jax.random.randint(k_in, (BATCH, SRC_LEN), 1, IN_VOCAB, dtype=jnp.int32)
    targets = jax.random.randint(k_tgt, (BATCH, TGT_LEN), 1, OUT_VOCAB, dtype=jnp.int32)
    # sprinkle some padding to exercise the key-padding masks
    inputs = inputs.at[0, -2:].set(PAD_IDX)
    targets = targets.at[1, -1:].set(PAD_IDX)

    run = jax.jit(model_forward)
    out = run(packed, inputs, targets, pe)
    jax.block_until_ready(out)

    assert out.shape == (BATCH, TGT_LEN, OUT_VOCAB), out.shape
    assert bool(jnp.all(jnp.isfinite(out)))
    print("KERNEL_OK")
</pallas_src>

<mosaic_0001>
module attributes {stable_mosaic.version = 11 : i64} {
  func.func @_fused_transformer_kernel(%arg0: memref<16x32xf32, #tpu.memory_space<vmem>>, %arg1: memref<16x32xf32, #tpu.memory_space<vmem>>, %arg2: memref<16x64xf32, #tpu.memory_space<vmem>>, %arg3: memref<16x64xf32, #tpu.memory_space<vmem>>, %arg4: memref<16x64xf32, #tpu.memory_space<vmem>>, %arg5: memref<64x32xbf16, #tpu.memory_space<vmem>>, %arg6: memref<64x64xf32, #tpu.memory_space<vmem>>, %arg7: memref<2x32x32xbf16, #tpu.memory_space<vmem>>, %arg8: memref<2x1x32xf32, #tpu.memory_space<vmem>>, %arg9: memref<2x32x32xbf16, #tpu.memory_space<vmem>>, %arg10: memref<2x1x32xf32, #tpu.memory_space<vmem>>, %arg11: memref<2x32x32xbf16, #tpu.memory_space<vmem>>, %arg12: memref<2x1x32xf32, #tpu.memory_space<vmem>>, %arg13: memref<2x32x32xbf16, #tpu.memory_space<vmem>>, %arg14: memref<2x1x32xf32, #tpu.memory_space<vmem>>, %arg15: memref<2x32x64xbf16, #tpu.memory_space<vmem>>, %arg16: memref<2x1x64xf32, #tpu.memory_space<vmem>>, %arg17: memref<2x64x32xbf16, #tpu.memory_space<vmem>>, %arg18: memref<2x1x32xf32, #tpu.memory_space<vmem>>, %arg19: memref<2x1x32xf32, #tpu.memory_space<vmem>>, %arg20: memref<2x1x32xf32, #tpu.memory_space<vmem>>, %arg21: memref<2x1x32xf32, #tpu.memory_space<vmem>>, %arg22: memref<2x1x32xf32, #tpu.memory_space<vmem>>, %arg23: memref<1x32xf32, #tpu.memory_space<vmem>>, %arg24: memref<1x32xf32, #tpu.memory_space<vmem>>, %arg25: memref<2x32x32xbf16, #tpu.memory_space<vmem>>, %arg26: memref<2x1x32xf32, #tpu.memory_space<vmem>>, %arg27: memref<2x32x32xbf16, #tpu.memory_space<vmem>>, %arg28: memref<2x1x32xf32, #tpu.memory_space<vmem>>, %arg29: memref<2x32x32xbf16, #tpu.memory_space<vmem>>, %arg30: memref<2x1x32xf32, #tpu.memory_space<vmem>>, %arg31: memref<2x32x32xbf16, #tpu.memory_space<vmem>>, %arg32: memref<2x1x32xf32, #tpu.memory_space<vmem>>, %arg33: memref<2x32x32xbf16, #tpu.memory_space<vmem>>, %arg34: memref<2x1x32xf32, #tpu.memory_space<vmem>>, %arg35: memref<2x32x32xbf16, #tpu.memory_space<vmem>>, %arg36: memref<2x1x32xf32, #tpu.memory_space<vmem>>, %arg37: memref<2x32x32xbf16, #tpu.memory_space<vmem>>, %arg38: memref<2x1x32xf32, #tpu.memory_space<vmem>>, %arg39: memref<2x32x32xbf16, #tpu.memory_space<vmem>>, %arg40: memref<2x1x32xf32, #tpu.memory_space<vmem>>, %arg41: memref<2x32x64xbf16, #tpu.memory_space<vmem>>, %arg42: memref<2x1x64xf32, #tpu.memory_space<vmem>>, %arg43: memref<2x64x32xbf16, #tpu.memory_space<vmem>>, %arg44: memref<2x1x32xf32, #tpu.memory_space<vmem>>, %arg45: memref<2x1x32xf32, #tpu.memory_space<vmem>>, %arg46: memref<2x1x32xf32, #tpu.memory_space<vmem>>, %arg47: memref<2x1x32xf32, #tpu.memory_space<vmem>>, %arg48: memref<2x1x32xf32, #tpu.memory_space<vmem>>, %arg49: memref<2x1x32xf32, #tpu.memory_space<vmem>>, %arg50: memref<2x1x32xf32, #tpu.memory_space<vmem>>, %arg51: memref<1x32xf32, #tpu.memory_space<vmem>>, %arg52: memref<1x32xf32, #tpu.memory_space<vmem>>, %arg53: memref<32x128xbf16, #tpu.memory_space<vmem>>, %arg54: memref<1x128xf32, #tpu.memory_space<vmem>>, %arg55: memref<16x128xf32, #tpu.memory_space<vmem>>) attributes {dimension_semantics = [], scalar_prefetch = 0 : i64, scratch_operands = 0 : i64, tpu.core_type = #tpu.core_type<tc>} {
    %c0 = arith.constant 0 : index
    %c0_0 = arith.constant 0 : index
    %0 = vector.load %arg2[%c0, %c0_0] : memref<16x64xf32, #tpu.memory_space<vmem>>, vector<16x64xf32>
    %c0_1 = arith.constant 0 : index
    %c0_2 = arith.constant 0 : index
    %1 = vector.load %arg3[%c0_1, %c0_2] : memref<16x64xf32, #tpu.memory_space<vmem>>, vector<16x64xf32>
    %c0_3 = arith.constant 0 : index
    %c0_4 = arith.constant 0 : index
    %2 = vector.load %arg4[%c0_3, %c0_4] : memref<16x64xf32, #tpu.memory_space<vmem>>, vector<16x64xf32>
    %c0_5 = arith.constant 0 : index
    %c0_6 = arith.constant 0 : index
    %3 = vector.load %arg5[%c0_5, %c0_6] : memref<64x32xbf16, #tpu.memory_space<vmem>>, vector<64x32xbf16>
    %c0_7 = arith.constant 0 : index
    %c0_8 = arith.constant 0 : index
    %4 = vector.load %arg6[%c0_7, %c0_8] : memref<64x64xf32, #tpu.memory_space<vmem>>, vector<64x64xf32>
    %c0_9 = arith.constant 0 : index
    %c0_10 = arith.constant 0 : index
    %5 = vector.load %arg0[%c0_9, %c0_10] : memref<16x32xf32, #tpu.memory_space<vmem>>, vector<16x32xf32>
    %c0_11 = arith.constant 0 : index
    %c0_12 = arith.constant 0 : index
    %c0_13 = arith.constant 0 : index
    %6 = vector.load %arg7[%c0_11, %c0_12, %c0_13] : memref<2x32x32xbf16, #tpu.memory_space<vmem>>, vector<1x32x32xbf16>
    %7 = vector.shape_cast %6 : vector<1x32x32xbf16> to vector<32x32xbf16>
    %c0_14 = arith.constant 0 : index
    %c0_15 = arith.constant 0 : index
    %c0_16 = arith.constant 0 : index
    %8 = vector.load %arg8[%c0_14, %c0_15, %c0_16] : memref<2x1x32xf32, #tpu.memory_space<vmem>>, vector<1x1x32xf32>
    %9 = vector.shape_cast %8 : vector<1x1x32xf32> to vector<1x32xf32>
    %c0_17 = arith.constant 0 : index
    %c0_18 = arith.constant 0 : index
    %c0_19 = arith.constant 0 : index
    %10 = vector.load %arg9[%c0_17, %c0_18, %c0_19] : memref<2x32x32xbf16, #tpu.memory_space<vmem>>, vector<1x32x32xbf16>
    %11 = vector.shape_cast %10 : vector<1x32x32xbf16> to vector<32x32xbf16>
    %c0_20 = arith.constant 0 : index
    %c0_21 = arith.constant 0 : index
    %c0_22 = arith.constant 0 : index
    %12 = vector.load %arg10[%c0_20, %c0_21, %c0_22] : memref<2x1x32xf32, #tpu.memory_space<vmem>>, vector<1x1x32xf32>
    %13 = vector.shape_cast %12 : vector<1x1x32xf32> to vector<1x32xf32>
    %c0_23 = arith.constant 0 : index
    %c0_24 = arith.constant 0 : index
    %c0_25 = arith.constant 0 : index
    %14 = vector.load %arg11[%c0_23, %c0_24, %c0_25] : memref<2x32x32xbf16, #tpu.memory_space<vmem>>, vector<1x32x32xbf16>
    %15 = vector.shape_cast %14 : vector<1x32x32xbf16> to vector<32x32xbf16>
    %c0_26 = arith.constant 0 : index
    %c0_27 = arith.constant 0 : index
    %c0_28 = arith.constant 0 : index
    %16 = vector.load %arg12[%c0_26, %c0_27, %c0_28] : memref<2x1x32xf32, #tpu.memory_space<vmem>>, vector<1x1x32xf32>
    %17 = vector.shape_cast %16 : vector<1x1x32xf32> to vector<1x32xf32>
    %c0_29 = arith.constant 0 : index
    %c0_30 = arith.constant 0 : index
    %c0_31 = arith.constant 0 : index
    %18 = vector.load %arg13[%c0_29, %c0_30, %c0_31] : memref<2x32x32xbf16, #tpu.memory_space<vmem>>, vector<1x32x32xbf16>
    %19 = vector.shape_cast %18 : vector<1x32x32xbf16> to vector<32x32xbf16>
    %c0_32 = arith.constant 0 : index
    %c0_33 = arith.constant 0 : index
    %c0_34 = arith.constant 0 : index
    %20 = vector.load %arg14[%c0_32, %c0_33, %c0_34] : memref<2x1x32xf32, #tpu.memory_space<vmem>>, vector<1x1x32xf32>
    %21 = vector.shape_cast %20 : vector<1x1x32xf32> to vector<1x32xf32>
    %22 = arith.truncf %5 : vector<16x32xf32> to vector<16x32xbf16>
    %23 = arith.truncf %5 : vector<16x32xf32> to vector<16x32xbf16>
    %cst = arith.constant dense<0.000000e+00> : vector<16x32xf32>
    %24 = tpu.matmul %22, %7, %cst {dimension_numbers = #tpu.dot_dimension_numbers<[1], [0], [0], [1], [0, 0, 1, 1], [], []>} : vector<16x32xbf16>, vector<32x32xbf16>, vector<16x32xf32> -> vector<16x32xf32>
    %25 = vector.broadcast %9 : vector<1x32xf32> to vector<16x32xf32>
    %26 = arith.addf %24, %25 : vector<16x32xf32>
    %cst_35 = arith.constant dense<0.000000e+00> : vector<16x32xf32>
    %27 = tpu.matmul %23, %11, %cst_35 {dimension_numbers = #tpu.dot_dimension_numbers<[1], [0], [0], [1], [0, 0, 1, 1], [], []>} : vector<16x32xbf16>, vector<32x32xbf16>, vector<16x32xf32> -> vector<16x32xf32>
    %28 = vector.broadcast %13 : vector<1x32xf32> to vector<16x32xf32>
    %29 = arith.addf %27, %28 : vector<16x32xf32>
    %cst_36 = arith.constant dense<0.000000e+00> : vector<16x32xf32>
    %30 = tpu.matmul %23, %15, %cst_36 {dimension_numbers = #tpu.dot_dimension_numbers<[1], [0], [0], [1], [0, 0, 1, 1], [], []>} : vector<16x32xbf16>, vector<32x32xbf16>, vector<16x32xf32> -> vector<16x32xf32>
    %31 = vector.broadcast %17 : vector<1x32xf32> to vector<16x32xf32>
    %32 = arith.addf %30, %31 : vector<16x32xf32>
    %33 = arith.truncf %29 : vector<16x32xf32> to vector<16x32xbf16>
    %34 = tpu.concatenate %33, %33, %33, %33 in 0 : vector<16x32xbf16>, vector<16x32xbf16>, vector<16x32xbf16>, vector<16x32xbf16> -> vector<64x32xbf16>
    %35 = arith.mulf %34, %3 : vector<64x32xbf16>
    %36 = arith.truncf %32 : vector<16x32xf32> to vector<16x32xbf16>
    %37 = tpu.concatenate %36, %36, %36, %36 in 0 : vector<16x32xbf16>, vector<16x32xbf16>, vector<16x32xbf16>, vector<16x32xbf16> -> vector<64x32xbf16>
    %38 = arith.mulf %37, %3 : vector<64x32xbf16>
    %39 = arith.truncf %26 : vector<16x32xf32> to vector<16x32xbf16>
    %cst_37 = arith.constant dense<0.000000e+00> : vector<16x64xf32>
    %40 = tpu.matmul %39, %35, %cst_37 {dimension_numbers = #tpu.dot_dimension_numbers<[1], [1], [0], [0], [0, 0, 1, 0], [], []>} : vector<16x32xbf16>, vector<64x32xbf16>, vector<16x64xf32> -> vector<16x64xf32>
    %41 = arith.addf %40, %0 : vector<16x64xf32>
    %cst_38 = arith.constant dense<0xFF800000> : vector<16xf32>
    %42 = vector.multi_reduction <maximumf>, %41, %cst_38 [1] : vector<16x64xf32> to vector<16xf32>
    %43 = vector.shape_cast %42 : vector<16xf32> to vector<16x1xf32>
    %44 = vector.broadcast %43 : vector<16x1xf32> to vector<16x64xf32>
    %45 = arith.subf %41, %44 : vector<16x64xf32>
    %46 = math.exp %45 : vector<16x64xf32>
    %cst_39 = arith.constant dense<0.000000e+00> : vector<16x64xf32>
    %47 = tpu.matmul %46, %4, %cst_39 {dimension_numbers = #tpu.dot_dimension_numbers<[1], [0], [0], [1], [0, 0, 1, 1], [], []>} : vector<16x64xf32>, vector<64x64xf32>, vector<16x64xf32> -> vector<16x64xf32>
    %48 = arith.divf %46, %47 : vector<16x64xf32>
    %49 = arith.truncf %48 : vector<16x64xf32> to vector<16x64xbf16>
    %cst_40 = arith.constant dense<0.000000e+00> : vector<16x32xf32>
    %50 = tpu.matmul %49, %38, %cst_40 {dimension_numbers = #tpu.dot_dimension_numbers<[1], [0], [0], [1], [0, 0, 1, 1], [], []>} : vector<16x64xbf16>, vector<64x32xbf16>, vector<16x32xf32> -> vector<16x32xf32>
    %51 = arith.truncf %50 : vector<16x32xf32> to vector<16x32xbf16>
    %cst_41 = arith.constant dense<0.000000e+00> : vector<16x32xf32>
    %52 = tpu.matmul %51, %19, %cst_41 {dimension_numbers = #tpu.dot_dimension_numbers<[1], [0], [0], [1], [0, 0, 1, 1], [], []>} : vector<16x32xbf16>, vector<32x32xbf16>, vector<16x32xf32> -> vector<16x32xf32>
    %53 = vector.broadcast %21 : vector<1x32xf32> to vector<16x32xf32>
    %54 = arith.addf %52, %53 : vector<16x32xf32>
    %55 = arith.addf %5, %54 : vector<16x32xf32>
    %c0_42 = arith.constant 0 : index
    %c0_43 = arith.constant 0 : index
    %c0_44 = arith.constant 0 : index
    %56 = vector.load %arg19[%c0_42, %c0_43, %c0_44] : memref<2x1x32xf32, #tpu.memory_space<vmem>>, vector<1x1x32xf32>
    %57 = vector.shape_cast %56 : vector<1x1x32xf32> to vector<1x32xf32>
    %c0_45 = arith.constant 0 : index
    %c0_46 = arith.constant 0 : index
    %c0_47 = arith.constant 0 : index
    %58 = vector.load %arg20[%c0_45, %c0_46, %c0_47] : memref<2x1x32xf32, #tpu.memory_space<vmem>>, vector<1x1x32xf32>
    %59 = vector.shape_cast %58 : vector<1x1x32xf32> to vector<1x32xf32>
    %cst_48 = arith.constant dense<0.000000e+00> : vector<16xf32>
    %60 = vector.multi_reduction <add>, %55, %cst_48 [1] : vector<16x32xf32> to vector<16xf32>
    %61 = vector.shape_cast %60 : vector<16xf32> to vector<16x1xf32>
    %cst_49 = arith.constant 3.200000e+01 : f32
    %62 = vector.broadcast %cst_49 : f32 to vector<16x1xf32>
    %63 = arith.divf %61, %62 : vector<16x1xf32>
    %64 = arith.mulf %55, %55 : vector<16x32xf32>
    %cst_50 = arith.constant dense<0.000000e+00> : vector<16xf32>
    %65 = vector.multi_reduction <add>, %64, %cst_50 [1] : vector<16x32xf32> to vector<16xf32>
    %66 = vector.shape_cast %65 : vector<16xf32> to vector<16x1xf32>
    %cst_51 = arith.constant 3.200000e+01 : f32
    %67 = vector.broadcast %cst_51 : f32 to vector<16x1xf32>
    %68 = arith.divf %66, %67 : vector<16x1xf32>
    %69 = arith.mulf %63, %63 : vector<16x1xf32>
    %70 = arith.subf %68, %69 : vector<16x1xf32>
    %cst_52 = arith.constant 0.000000e+00 : f32
    %71 = vector.broadcast %cst_52 : f32 to vector<16x1xf32>
    %72 = arith.maximumf %70, %71 : vector<16x1xf32>
    %73 = vector.broadcast %63 : vector<16x1xf32> to vector<16x32xf32>
    %74 = arith.subf %55, %73 : vector<16x32xf32>
    %cst_53 = arith.constant 9.99999974E-6 : f32
    %75 = vector.broadcast %cst_53 : f32 to vector<16x1xf32>
    %76 = arith.addf %72, %75 : vector<16x1xf32>
    %77 = math.rsqrt %76 : vector<16x1xf32>
    %78 = vector.broadcast %77 : vector<16x1xf32> to vector<16x32xf32>
    %79 = arith.mulf %74, %78 : vector<16x32xf32>
    %80 = vector.broadcast %57 : vector<1x32xf32> to vector<16x32xf32>
    %81 = arith.mulf %79, %80 : vector<16x32xf32>
    %82 = vector.broadcast %59 : vector<1x32xf32> to vector<16x32xf32>
    %83 = arith.addf %81, %82 : vector<16x32xf32>
    %c0_54 = arith.constant 0 : index
    %c0_55 = arith.constant 0 : index
    %c0_56 = arith.constant 0 : index
    %84 = vector.load %arg15[%c0_54, %c0_55, %c0_56] : memref<2x32x64xbf16, #tpu.memory_space<vmem>>, vector<1x32x64xbf16>
    %85 = vector.shape_cast %84 : vector<1x32x64xbf16> to vector<32x64xbf16>
    %c0_57 = arith.constant 0 : index
    %c0_58 = arith.constant 0 : index
    %c0_59 = arith.constant 0 : index
    %86 = vector.load %arg16[%c0_57, %c0_58, %c0_59] : memref<2x1x64xf32, #tpu.memory_space<vmem>>, vector<1x1x64xf32>
    %87 = vector.shape_cast %86 : vector<1x1x64xf32> to vector<1x64xf32>
    %c0_60 = arith.constant 0 : index
    %c0_61 = arith.constant 0 : index
    %c0_62 = arith.constant 0 : index
    %88 = vector.load %arg17[%c0_60, %c0_61, %c0_62] : memref<2x64x32xbf16, #tpu.memory_space<vmem>>, vector<1x64x32xbf16>
    %89 = vector.shape_cast %88 : vector<1x64x32xbf16> to vector<64x32xbf16>
    %c0_63 = arith.constant 0 : index
    %c0_64 = arith.constant 0 : index
    %c0_65 = arith.constant 0 : index
    %90 = vector.load %arg18[%c0_63, %c0_64, %c0_65] : memref<2x1x32xf32, #tpu.memory_space<vmem>>, vector<1x1x32xf32>
    %91 = vector.shape_cast %90 : vector<1x1x32xf32> to vector<1x32xf32>
    %92 = arith.truncf %83 : vector<16x32xf32> to vector<16x32xbf16>
    %cst_66 = arith.constant dense<0.000000e+00> : vector<16x64xf32>
    %93 = tpu.matmul %92, %85, %cst_66 {dimension_numbers = #tpu.dot_dimension_numbers<[1], [0], [0], [1], [0, 0, 1, 1], [], []>} : vector<16x32xbf16>, vector<32x64xbf16>, vector<16x64xf32> -> vector<16x64xf32>
    %94 = vector.broadcast %87 : vector<1x64xf32> to vector<16x64xf32>
    %95 = arith.addf %93, %94 : vector<16x64xf32>
    %cst_67 = arith.constant 0.000000e+00 : f32
    %96 = vector.broadcast %cst_67 : f32 to vector<16x64xf32>
    %97 = arith.maximumf %95, %96 : vector<16x64xf32>
    %98 = arith.truncf %97 : vector<16x64xf32> to vector<16x64xbf16>
    %cst_68 = arith.constant dense<0.000000e+00> : vector<16x32xf32>
    %99 = tpu.matmul %98, %89, %cst_68 {dimension_numbers = #tpu.dot_dimension_numbers<[1], [0], [0], [1], [0, 0, 1, 1], [], []>} : vector<16x64xbf16>, vector<64x32xbf16>, vector<16x32xf32> -> vector<16x32xf32>
    %100 = vector.broadcast %91 : vector<1x32xf32> to vector<16x32xf32>
    %101 = arith.addf %99, %100 : vector<16x32xf32>
    %102 = arith.addf %83, %101 : vector<16x32xf32>
    %c0_69 = arith.constant 0 : index
    %c0_70 = arith.constant 0 : index
    %c0_71 = arith.constant 0 : index
    %103 = vector.load %arg21[%c0_69, %c0_70, %c0_71] : memref<2x1x32xf32, #tpu.memory_space<vmem>>, vector<1x1x32xf32>
    %104 = vector.shape_cast %103 : vector<1x1x32xf32> to vector<1x32xf32>
    %c0_72 = arith.constant 0 : index
    %c0_73 = arith.constant 0 : index
    %c0_74 = arith.constant 0 : index
    %105 = vector.load %arg22[%c0_72, %c0_73, %c0_74] : memref<2x1x32xf32, #tpu.memory_space<vmem>>, vector<1x1x32xf32>
    %106 = vector.shape_cast %105 : vector<1x1x32xf32> to vector<1x32xf32>
    %cst_75 = arith.constant dense<0.000000e+00> : vector<16xf32>
    %107 = vector.multi_reduction <add>, %102, %cst_75 [1] : vector<16x32xf32> to vector<16xf32>
    %108 = vector.shape_cast %107 : vector<16xf32> to vector<16x1xf32>
    %cst_76 = arith.constant 3.200000e+01 : f32
    %109 = vector.broadcast %cst_76 : f32 to vector<16x1xf32>
    %110 = arith.divf %108, %109 : vector<16x1xf32>
    %111 = arith.mulf %102, %102 : vector<16x32xf32>
    %cst_77 = arith.constant dense<0.000000e+00> : vector<16xf32>
    %112 = vector.multi_reduction <add>, %111, %cst_77 [1] : vector<16x32xf32> to vector<16xf32>
    %113 = vector.shape_cast %112 : vector<16xf32> to vector<16x1xf32>
    %cst_78 = arith.constant 3.200000e+01 : f32
    %114 = vector.broadcast %cst_78 : f32 to vector<16x1xf32>
    %115 = arith.divf %113, %114 : vector<16x1xf32>
    %116 = arith.mulf %110, %110 : vector<16x1xf32>
    %117 = arith.subf %115, %116 : vector<16x1xf32>
    %cst_79 = arith.constant 0.000000e+00 : f32
    %118 = vector.broadcast %cst_79 : f32 to vector<16x1xf32>
    %119 = arith.maximumf %117, %118 : vector<16x1xf32>
    %120 = vector.broadcast %110 : vector<16x1xf32> to vector<16x32xf32>
    %121 = arith.subf %102, %120 : vector<16x32xf32>
    %cst_80 = arith.constant 9.99999974E-6 : f32
    %122 = vector.broadcast %cst_80 : f32 to vector<16x1xf32>
    %123 = arith.addf %119, %122 : vector<16x1xf32>
    %124 = math.rsqrt %123 : vector<16x1xf32>
    %125 = vector.broadcast %124 : vector<16x1xf32> to vector<16x32xf32>
    %126 = arith.mulf %121, %125 : vector<16x32xf32>
    %127 = vector.broadcast %104 : vector<1x32xf32> to vector<16x32xf32>
    %128 = arith.mulf %126, %127 : vector<16x32xf32>
    %129 = vector.broadcast %106 : vector<1x32xf32> to vector<16x32xf32>
    %130 = arith.addf %128, %129 : vector<16x32xf32>
    %c1 = arith.constant 1 : index
    %c0_81 = arith.constant 0 : index
    %c0_82 = arith.constant 0 : index
    %131 = vector.load %arg7[%c1, %c0_81, %c0_82] : memref<2x32x32xbf16, #tpu.memory_space<vmem>>, vector<1x32x32xbf16>
    %132 = vector.shape_cast %131 : vector<1x32x32xbf16> to vector<32x32xbf16>
    %c1_83 = arith.constant 1 : index
    %c0_84 = arith.constant 0 : index
    %c0_85 = arith.constant 0 : index
    %133 = vector.load %arg8[%c1_83, %c0_84, %c0_85] : memref<2x1x32xf32, #tpu.memory_space<vmem>>, vector<1x1x32xf32>
    %134 = vector.shape_cast %133 : vector<1x1x32xf32> to vector<1x32xf32>
    %c1_86 = arith.constant 1 : index
    %c0_87 = arith.constant 0 : index
    %c0_88 = arith.constant 0 : index
    %135 = vector.load %arg9[%c1_86, %c0_87, %c0_88] : memref<2x32x32xbf16, #tpu.memory_space<vmem>>, vector<1x32x32xbf16>
    %136 = vector.shape_cast %135 : vector<1x32x32xbf16> to vector<32x32xbf16>
    %c1_89 = arith.constant 1 : index
    %c0_90 = arith.constant 0 : index
    %c0_91 = arith.constant 0 : index
    %137 = vector.load %arg10[%c1_89, %c0_90, %c0_91] : memref<2x1x32xf32, #tpu.memory_space<vmem>>, vector<1x1x32xf32>
    %138 = vector.shape_cast %137 : vector<1x1x32xf32> to vector<1x32xf32>
    %c1_92 = arith.constant 1 : index
    %c0_93 = arith.constant 0 : index
    %c0_94 = arith.constant 0 : index
    %139 = vector.load %arg11[%c1_92, %c0_93, %c0_94] : memref<2x32x32xbf16, #tpu.memory_space<vmem>>, vector<1x32x32xbf16>
    %140 = vector.shape_cast %139 : vector<1x32x32xbf16> to vector<32x32xbf16>
    %c1_95 = arith.constant 1 : index
    %c0_96 = arith.constant 0 : index
    %c0_97 = arith.constant 0 : index
    %141 = vector.load %arg12[%c1_95, %c0_96, %c0_97] : memref<2x1x32xf32, #tpu.memory_space<vmem>>, vector<1x1x32xf32>
    %142 = vector.shape_cast %141 : vector<1x1x32xf32> to vector<1x32xf32>
    %c1_98 = arith.constant 1 : index
    %c0_99 = arith.constant 0 : index
    %c0_100 = arith.constant 0 : index
    %143 = vector.load %arg13[%c1_98, %c0_99, %c0_100] : memref<2x32x32xbf16, #tpu.memory_space<vmem>>, vector<1x32x32xbf16>
    %144 = vector.shape_cast %143 : vector<1x32x32xbf16> to vector<32x32xbf16>
    %c1_101 = arith.constant 1 : index
    %c0_102 = arith.constant 0 : index
    %c0_103 = arith.constant 0 : index
    %145 = vector.load %arg14[%c1_101, %c0_102, %c0_103] : memref<2x1x32xf32, #tpu.memory_space<vmem>>, vector<1x1x32xf32>
    %146 = vector.shape_cast %145 : vector<1x1x32xf32> to vector<1x32xf32>
    %147 = arith.truncf %130 : vector<16x32xf32> to vector<16x32xbf16>
    %148 = arith.truncf %130 : vector<16x32xf32> to vector<16x32xbf16>
    %cst_104 = arith.constant dense<0.000000e+00> : vector<16x32xf32>
    %149 = tpu.matmul %147, %132, %cst_104 {dimension_numbers = #tpu.dot_dimension_numbers<[1], [0], [0], [1], [0, 0, 1, 1], [], []>} : vector<16x32xbf16>, vector<32x32xbf16>, vector<16x32xf32> -> vector<16x32xf32>
    %150 = vector.broadcast %134 : vector<1x32xf32> to vector<16x32xf32>
    %151 = arith.addf %149, %150 : vector<16x32xf32>
    %cst_105 = arith.constant dense<0.000000e+00> : vector<16x32xf32>
    %152 = tpu.matmul %148, %136, %cst_105 {dimension_numbers = #tpu.dot_dimension_numbers<[1], [0], [0], [1], [0, 0, 1, 1], [], []>} : vector<16x32xbf16>, vector<32x32xbf16>, vector<16x32xf32> -> vector<16x32xf32>
    %153 = vector.broadcast %138 : vector<1x32xf32> to vector<16x32xf32>
    %154 = arith.addf %152, %153 : vector<16x32xf32>
    %cst_106 = arith.constant dense<0.000000e+00> : vector<16x32xf32>
    %155 = tpu.matmul %148, %140, %cst_106 {dimension_numbers = #tpu.dot_dimension_numbers<[1], [0], [0], [1], [0, 0, 1, 1], [], []>} : vector<16x32xbf16>, vector<32x32xbf16>, vector<16x32xf32> -> vector<16x32xf32>
    %156 = vector.broadcast %142 : vector<1x32xf32> to vector<16x32xf32>
    %157 = arith.addf %155, %156 : vector<16x32xf32>
    %158 = arith.truncf %154 : vector<16x32xf32> to vector<16x32xbf16>
    %159 = tpu.concatenate %158, %158, %158, %158 in 0 : vector<16x32xbf16>, vector<16x32xbf16>, vector<16x32xbf16>, vector<16x32xbf16> -> vector<64x32xbf16>
    %160 = arith.mulf %159, %3 : vector<64x32xbf16>
    %161 = arith.truncf %157 : vector<16x32xf32> to vector<16x32xbf16>
    %162 = tpu.concatenate %161, %161, %161, %161 in 0 : vector<16x32xbf16>, vector<16x32xbf16>, vector<16x32xbf16>, vector<16x32xbf16> -> vector<64x32xbf16>
    %163 = arith.mulf %162, %3 : vector<64x32xbf16>
    %164 = arith.truncf %151 : vector<16x32xf32> to vector<16x32xbf16>
    %cst_107 = arith.constant dense<0.000000e+00> : vector<16x64xf32>
    %165 = tpu.matmul %164, %160, %cst_107 {dimension_numbers = #tpu.dot_dimension_numbers<[1], [1], [0], [0], [0, 0, 1, 0], [], []>} : vector<16x32xbf16>, vector<64x32xbf16>, vector<16x64xf32> -> vector<16x64xf32>
    %166 = arith.addf %165, %0 : vector<16x64xf32>
    %cst_108 = arith.constant dense<0xFF800000> : vector<16xf32>
    %167 = vector.multi_reduction <maximumf>, %166, %cst_108 [1] : vector<16x64xf32> to vector<16xf32>
    %168 = vector.shape_cast %167 : vector<16xf32> to vector<16x1xf32>
    %169 = vector.broadcast %168 : vector<16x1xf32> to vector<16x64xf32>
    %170 = arith.subf %166, %169 : vector<16x64xf32>
    %171 = math.exp %170 : vector<16x64xf32>
    %cst_109 = arith.constant dense<0.000000e+00> : vector<16x64xf32>
    %172 = tpu.matmul %171, %4, %cst_109 {dimension_numbers = #tpu.dot_dimension_numbers<[1], [0], [0], [1], [0, 0, 1, 1], [], []>} : vector<16x64xf32>, vector<64x64xf32>, vector<16x64xf32> -> vector<16x64xf32>
    %173 = arith.divf %171, %172 : vector<16x64xf32>
    %174 = arith.truncf %173 : vector<16x64xf32> to vector<16x64xbf16>
    %cst_110 = arith.constant dense<0.000000e+00> : vector<16x32xf32>
    %175 = tpu.matmul %174, %163, %cst_110 {dimension_numbers = #tpu.dot_dimension_numbers<[1], [0], [0], [1], [0, 0, 1, 1], [], []>} : vector<16x64xbf16>, vector<64x32xbf16>, vector<16x32xf32> -> vector<16x32xf32>
    %176 = arith.truncf %175 : vector<16x32xf32> to vector<16x32xbf16>
    %cst_111 = arith.constant dense<0.000000e+00> : vector<16x32xf32>
    %177 = tpu.matmul %176, %144, %cst_111 {dimension_numbers = #tpu.dot_dimension_numbers<[1], [0], [0], [1], [0, 0, 1, 1], [], []>} : vector<16x32xbf16>, vector<32x32xbf16>, vector<16x32xf32> -> vector<16x32xf32>
    %178 = vector.broadcast %146 : vector<1x32xf32> to vector<16x32xf32>
    %179 = arith.addf %177, %178 : vector<16x32xf32>
    %180 = arith.addf %130, %179 : vector<16x32xf32>
    %c1_112 = arith.constant 1 : index
    %c0_113 = arith.constant 0 : index
    %c0_114 = arith.constant 0 : index
    %181 = vector.load %arg19[%c1_112, %c0_113, %c0_114] : memref<2x1x32xf32, #tpu.memory_space<vmem>>, vector<1x1x32xf32>
    %182 = vector.shape_cast %181 : vector<1x1x32xf32> to vector<1x32xf32>
    %c1_115 = arith.constant 1 : index
    %c0_116 = arith.constant 0 : index
    %c0_117 = arith.constant 0 : index
    %183 = vector.load %arg20[%c1_115, %c0_116, %c0_117] : memref<2x1x32xf32, #tpu.memory_space<vmem>>, vector<1x1x32xf32>
    %184 = vector.shape_cast %183 : vector<1x1x32xf32> to vector<1x32xf32>
    %cst_118 = arith.constant dense<0.000000e+00> : vector<16xf32>
    %185 = vector.multi_reduction <add>, %180, %cst_118 [1] : vector<16x32xf32> to vector<16xf32>
    %186 = vector.shape_cast %185 : vector<16xf32> to vector<16x1xf32>
    %cst_119 = arith.constant 3.200000e+01 : f32
    %187 = vector.broadcast %cst_119 : f32 to vector<16x1xf32>
    %188 = arith.divf %186, %187 : vector<16x1xf32>
    %189 = arith.mulf %180, %180 : vector<16x32xf32>
    %cst_120 = arith.constant dense<0.000000e+00> : vector<16xf32>
    %190 = vector.multi_reduction <add>, %189, %cst_120 [1] : vector<16x32xf32> to vector<16xf32>
    %191 = vector.shape_cast %190 : vector<16xf32> to vector<16x1xf32>
    %cst_121 = arith.constant 3.200000e+01 : f32
    %192 = vector.broadcast %cst_121 : f32 to vector<16x1xf32>
    %193 = arith.divf %191, %192 : vector<16x1xf32>
    %194 = arith.mulf %188, %188 : vector<16x1xf32>
    %195 = arith.subf %193, %194 : vector<16x1xf32>
    %cst_122 = arith.constant 0.000000e+00 : f32
    %196 = vector.broadcast %cst_122 : f32 to vector<16x1xf32>
    %197 = arith.maximumf %195, %196 : vector<16x1xf32>
    %198 = vector.broadcast %188 : vector<16x1xf32> to vector<16x32xf32>
    %199 = arith.subf %180, %198 : vector<16x32xf32>
    %cst_123 = arith.constant 9.99999974E-6 : f32
    %200 = vector.broadcast %cst_123 : f32 to vector<16x1xf32>
    %201 = arith.addf %197, %200 : vector<16x1xf32>
    %202 = math.rsqrt %201 : vector<16x1xf32>
    %203 = vector.broadcast %202 : vector<16x1xf32> to vector<16x32xf32>
    %204 = arith.mulf %199, %203 : vector<16x32xf32>
    %205 = vector.broadcast %182 : vector<1x32xf32> to vector<16x32xf32>
    %206 = arith.mulf %204, %205 : vector<16x32xf32>
    %207 = vector.broadcast %184 : vector<1x32xf32> to vector<16x32xf32>
    %208 = arith.addf %206, %207 : vector<16x32xf32>
    %c1_124 = arith.constant 1 : index
    %c0_125 = arith.constant 0 : index
    %c0_126 = arith.constant 0 : index
    %209 = vector.load %arg15[%c1_124, %c0_125, %c0_126] : memref<2x32x64xbf16, #tpu.memory_space<vmem>>, vector<1x32x64xbf16>
    %210 = vector.shape_cast %209 : vector<1x32x64xbf16> to vector<32x64xbf16>
    %c1_127 = arith.constant 1 : index
    %c0_128 = arith.constant 0 : index
    %c0_129 = arith.constant 0 : index
    %211 = vector.load %arg16[%c1_127, %c0_128, %c0_129] : memref<2x1x64xf32, #tpu.memory_space<vmem>>, vector<1x1x64xf32>
    %212 = vector.shape_cast %211 : vector<1x1x64xf32> to vector<1x64xf32>
    %c1_130 = arith.constant 1 : index
    %c0_131 = arith.constant 0 : index
    %c0_132 = arith.constant 0 : index
    %213 = vector.load %arg17[%c1_130, %c0_131, %c0_132] : memref<2x64x32xbf16, #tpu.memory_space<vmem>>, vector<1x64x32xbf16>
    %214 = vector.shape_cast %213 : vector<1x64x32xbf16> to vector<64x32xbf16>
    %c1_133 = arith.constant 1 : index
    %c0_134 = arith.constant 0 : index
    %c0_135 = arith.constant 0 : index
    %215 = vector.load %arg18[%c1_133, %c0_134, %c0_135] : memref<2x1x32xf32, #tpu.memory_space<vmem>>, vector<1x1x32xf32>
    %216 = vector.shape_cast %215 : vector<1x1x32xf32> to vector<1x32xf32>
    %217 = arith.truncf %208 : vector<16x32xf32> to vector<16x32xbf16>
    %cst_136 = arith.constant dense<0.000000e+00> : vector<16x64xf32>
    %218 = tpu.matmul %217, %210, %cst_136 {dimension_numbers = #tpu.dot_dimension_numbers<[1], [0], [0], [1], [0, 0, 1, 1], [], []>} : vector<16x32xbf16>, vector<32x64xbf16>, vector<16x64xf32> -> vector<16x64xf32>
    %219 = vector.broadcast %212 : vector<1x64xf32> to vector<16x64xf32>
    %220 = arith.addf %218, %219 : vector<16x64xf32>
    %cst_137 = arith.constant 0.000000e+00 : f32
    %221 = vector.broadcast %cst_137 : f32 to vector<16x64xf32>
    %222 = arith.maximumf %220, %221 : vector<16x64xf32>
    %223 = arith.truncf %222 : vector<16x64xf32> to vector<16x64xbf16>
    %cst_138 = arith.constant dense<0.000000e+00> : vector<16x32xf32>
    %224 = tpu.matmul %223, %214, %cst_138 {dimension_numbers = #tpu.dot_dimension_numbers<[1], [0], [0], [1], [0, 0, 1, 1], [], []>} : vector<16x64xbf16>, vector<64x32xbf16>, vector<16x32xf32> -> vector<16x32xf32>
    %225 = vector.broadcast %216 : vector<1x32xf32> to vector<16x32xf32>
    %226 = arith.addf %224, %225 : vector<16x32xf32>
    %227 = arith.addf %208, %226 : vector<16x32xf32>
    %c1_139 = arith.constant 1 : index
    %c0_140 = arith.constant 0 : index
    %c0_141 = arith.constant 0 : index
    %228 = vector.load %arg21[%c1_139, %c0_140, %c0_141] : memref<2x1x32xf32, #tpu.memory_space<vmem>>, vector<1x1x32xf32>
    %229 = vector.shape_cast %228 : vector<1x1x32xf32> to vector<1x32xf32>
    %c1_142 = arith.constant 1 : index
    %c0_143 = arith.constant 0 : index
    %c0_144 = arith.constant 0 : index
    %230 = vector.load %arg22[%c1_142, %c0_143, %c0_144] : memref<2x1x32xf32, #tpu.memory_space<vmem>>, vector<1x1x32xf32>
    %231 = vector.shape_cast %230 : vector<1x1x32xf32> to vector<1x32xf32>
    %cst_145 = arith.constant dense<0.000000e+00> : vector<16xf32>
    %232 = vector.multi_reduction <add>, %227, %cst_145 [1] : vector<16x32xf32> to vector<16xf32>
    %233 = vector.shape_cast %232 : vector<16xf32> to vector<16x1xf32>
    %cst_146 = arith.constant 3.200000e+01 : f32
    %234 = vector.broadcast %cst_146 : f32 to vector<16x1xf32>
    %235 = arith.divf %233, %234 : vector<16x1xf32>
    %236 = arith.mulf %227, %227 : vector<16x32xf32>
    %cst_147 = arith.constant dense<0.000000e+00> : vector<16xf32>
    %237 = vector.multi_reduction <add>, %236, %cst_147 [1] : vector<16x32xf32> to vector<16xf32>
    %238 = vector.shape_cast %237 : vector<16xf32> to vector<16x1xf32>
    %cst_148 = arith.constant 3.200000e+01 : f32
    %239 = vector.broadcast %cst_148 : f32 to vector<16x1xf32>
    %240 = arith.divf %238, %239 : vector<16x1xf32>
    %241 = arith.mulf %235, %235 : vector<16x1xf32>
    %242 = arith.subf %240, %241 : vector<16x1xf32>
    %cst_149 = arith.constant 0.000000e+00 : f32
    %243 = vector.broadcast %cst_149 : f32 to vector<16x1xf32>
    %244 = arith.maximumf %242, %243 : vector<16x1xf32>
    %245 = vector.broadcast %235 : vector<16x1xf32> to vector<16x32xf32>
    %246 = arith.subf %227, %245 : vector<16x32xf32>
    %cst_150 = arith.constant 9.99999974E-6 : f32
    %247 = vector.broadcast %cst_150 : f32 to vector<16x1xf32>
    %248 = arith.addf %244, %247 : vector<16x1xf32>
    %249 = math.rsqrt %248 : vector<16x1xf32>
    %250 = vector.broadcast %249 : vector<16x1xf32> to vector<16x32xf32>
    %251 = arith.mulf %246, %250 : vector<16x32xf32>
    %252 = vector.broadcast %229 : vector<1x32xf32> to vector<16x32xf32>
    %253 = arith.mulf %251, %252 : vector<16x32xf32>
    %254 = vector.broadcast %231 : vector<1x32xf32> to vector<16x32xf32>
    %255 = arith.addf %253, %254 : vector<16x32xf32>
    %c0_151 = arith.constant 0 : index
    %c0_152 = arith.constant 0 : index
    %256 = vector.load %arg23[%c0_151, %c0_152] : memref<1x32xf32, #tpu.memory_space<vmem>>, vector<1x32xf32>
    %c0_153 = arith.constant 0 : index
    %c0_154 = arith.constant 0 : index
    %257 = vector.load %arg24[%c0_153, %c0_154] : memref<1x32xf32, #tpu.memory_space<vmem>>, vector<1x32xf32>
    %cst_155 = arith.constant dense<0.000000e+00> : vector<16xf32>
    %258 = vector.multi_reduction <add>, %255, %cst_155 [1] : vector<16x32xf32> to vector<16xf32>
    %259 = vector.shape_cast %258 : vector<16xf32> to vector<16x1xf32>
    %cst_156 = arith.constant 3.200000e+01 : f32
    %260 = vector.broadcast %cst_156 : f32 to vector<16x1xf32>
    %261 = arith.divf %259, %260 : vector<16x1xf32>
    %262 = arith.mulf %255, %255 : vector<16x32xf32>
    %cst_157 = arith.constant dense<0.000000e+00> : vector<16xf32>
    %263 = vector.multi_reduction <add>, %262, %cst_157 [1] : vector<16x32xf32> to vector<16xf32>
    %264 = vector.shape_cast %263 : vector<16xf32> to vector<16x1xf32>
    %cst_158 = arith.constant 3.200000e+01 : f32
    %265 = vector.broadcast %cst_158 : f32 to vector<16x1xf32>
    %266 = arith.divf %264, %265 : vector<16x1xf32>
    %267 = arith.mulf %261, %261 : vector<16x1xf32>
    %268 = arith.subf %266, %267 : vector<16x1xf32>
    %cst_159 = arith.constant 0.000000e+00 : f32
    %269 = vector.broadcast %cst_159 : f32 to vector<16x1xf32>
    %270 = arith.maximumf %268, %269 : vector<16x1xf32>
    %271 = vector.broadcast %261 : vector<16x1xf32> to vector<16x32xf32>
    %272 = arith.subf %255, %271 : vector<16x32xf32>
    %cst_160 = arith.constant 9.99999974E-6 : f32
    %273 = vector.broadcast %cst_160 : f32 to vector<16x1xf32>
    %274 = arith.addf %270, %273 : vector<16x1xf32>
    %275 = math.rsqrt %274 : vector<16x1xf32>
    %276 = vector.broadcast %275 : vector<16x1xf32> to vector<16x32xf32>
    %277 = arith.mulf %272, %276 : vector<16x32xf32>
    %278 = vector.broadcast %256 : vector<1x32xf32> to vector<16x32xf32>
    %279 = arith.mulf %277, %278 : vector<16x32xf32>
    %280 = vector.broadcast %257 : vector<1x32xf32> to vector<16x32xf32>
    %281 = arith.addf %279, %280 : vector<16x32xf32>
    %c0_161 = arith.constant 0 : index
    %c0_162 = arith.constant 0 : index
    %282 = vector.load %arg1[%c0_161, %c0_162] : memref<16x32xf32, #tpu.memory_space<vmem>>, vector<16x32xf32>
    %c0_163 = arith.constant 0 : index
    %c0_164 = arith.constant 0 : index
    %c0_165 = arith.constant 0 : index
    %283 = vector.load %arg25[%c0_163, %c0_164, %c0_165] : memref<2x32x32xbf16, #tpu.memory_space<vmem>>, vector<1x32x32xbf16>
    %284 = vector.shape_cast %283 : vector<1x32x32xbf16> to vector<32x32xbf16>
    %c0_166 = arith.constant 0 : index
    %c0_167 = arith.constant 0 : index
    %c0_168 = arith.constant 0 : index
    %285 = vector.load %arg26[%c0_166, %c0_167, %c0_168] : memref<2x1x32xf32, #tpu.memory_space<vmem>>, vector<1x1x32xf32>
    %286 = vector.shape_cast %285 : vector<1x1x32xf32> to vector<1x32xf32>
    %c0_169 = arith.constant 0 : index
    %c0_170 = arith.constant 0 : index
    %c0_171 = arith.constant 0 : index
    %287 = vector.load %arg27[%c0_169, %c0_170, %c0_171] : memref<2x32x32xbf16, #tpu.memory_space<vmem>>, vector<1x32x32xbf16>
    %288 = vector.shape_cast %287 : vector<1x32x32xbf16> to vector<32x32xbf16>
    %c0_172 = arith.constant 0 : index
    %c0_173 = arith.constant 0 : index
    %c0_174 = arith.constant 0 : index
    %289 = vector.load %arg28[%c0_172, %c0_173, %c0_174] : memref<2x1x32xf32, #tpu.memory_space<vmem>>, vector<1x1x32xf32>
    %290 = vector.shape_cast %289 : vector<1x1x32xf32> to vector<1x32xf32>
    %c0_175 = arith.constant 0 : index
    %c0_176 = arith.constant 0 : index
    %c0_177 = arith.constant 0 : index
    %291 = vector.load %arg29[%c0_175, %c0_176, %c0_177] : memref<2x32x32xbf16, #tpu.memory_space<vmem>>, vector<1x32x32xbf16>
    %292 = vector.shape_cast %291 : vector<1x32x32xbf16> to vector<32x32xbf16>
    %c0_178 = arith.constant 0 : index
    %c0_179 = arith.constant 0 : index
    %c0_180 = arith.constant 0 : index
    %293 = vector.load %arg30[%c0_178, %c0_179, %c0_180] : memref<2x1x32xf32, #tpu.memory_space<vmem>>, vector<1x1x32xf32>
    %294 = vector.shape_cast %293 : vector<1x1x32xf32> to vector<1x32xf32>
    %c0_181 = arith.constant 0 : index
    %c0_182 = arith.constant 0 : index
    %c0_183 = arith.constant 0 : index
    %295 = vector.load %arg31[%c0_181, %c0_182, %c0_183] : memref<2x32x32xbf16, #tpu.memory_space<vmem>>, vector<1x32x32xbf16>
    %296 = vector.shape_cast %295 : vector<1x32x32xbf16> to vector<32x32xbf16>
    %c0_184 = arith.constant 0 : index
    %c0_185 = arith.constant 0 : index
    %c0_186 = arith.constant 0 : index
    %297 = vector.load %arg32[%c0_184, %c0_185, %c0_186] : memref<2x1x32xf32, #tpu.memory_space<vmem>>, vector<1x1x32xf32>
    %298 = vector.shape_cast %297 : vector<1x1x32xf32> to vector<1x32xf32>
    %299 = arith.truncf %282 : vector<16x32xf32> to vector<16x32xbf16>
    %300 = arith.truncf %282 : vector<16x32xf32> to vector<16x32xbf16>
    %cst_187 = arith.constant dense<0.000000e+00> : vector<16x32xf32>
    %301 = tpu.matmul %299, %284, %cst_187 {dimension_numbers = #tpu.dot_dimension_numbers<[1], [0], [0], [1], [0, 0, 1, 1], [], []>} : vector<16x32xbf16>, vector<32x32xbf16>, vector<16x32xf32> -> vector<16x32xf32>
    %302 = vector.broadcast %286 : vector<1x32xf32> to vector<16x32xf32>
    %303 = arith.addf %301, %302 : vector<16x32xf32>
    %cst_188 = arith.constant dense<0.000000e+00> : vector<16x32xf32>
    %304 = tpu.matmul %300, %288, %cst_188 {dimension_numbers = #tpu.dot_dimension_numbers<[1], [0], [0], [1], [0, 0, 1, 1], [], []>} : vector<16x32xbf16>, vector<32x32xbf16>, vector<16x32xf32> -> vector<16x32xf32>
    %305 = vector.broadcast %290 : vector<1x32xf32> to vector<16x32xf32>
    %306 = arith.addf %304, %305 : vector<16x32xf32>
    %cst_189 = arith.constant dense<0.000000e+00> : vector<16x32xf32>
    %307 = tpu.matmul %300, %292, %cst_189 {dimension_numbers = #tpu.dot_dimension_numbers<[1], [0], [0], [1], [0, 0, 1, 1], [], []>} : vector<16x32xbf16>, vector<32x32xbf16>, vector<16x32xf32> -> vector<16x32xf32>
    %308 = vector.broadcast %294 : vector<1x32xf32> to vector<16x32xf32>
    %309 = arith.addf %307, %308 : vector<16x32xf32>
    %310 = arith.truncf %306 : vector<16x32xf32> to vector<16x32xbf16>
    %311 = tpu.concatenate %310, %310, %310, %310 in 0 : vector<16x32xbf16>, vector<16x32xbf16>, vector<16x32xbf16>, vector<16x32xbf16> -> vector<64x32xbf16>
    %312 = arith.mulf %311, %3 : vector<64x32xbf16>
    %313 = arith.truncf %309 : vector<16x32xf32> to vector<16x32xbf16>
    %314 = tpu.concatenate %313, %313, %313, %313 in 0 : vector<16x32xbf16>, vector<16x32xbf16>, vector<16x32xbf16>, vector<16x32xbf16> -> vector<64x32xbf16>
    %315 = arith.mulf %314, %3 : vector<64x32xbf16>
    %316 = arith.truncf %303 : vector<16x32xf32> to vector<16x32xbf16>
    %cst_190 = arith.constant dense<0.000000e+00> : vector<16x64xf32>
    %317 = tpu.matmul %316, %312, %cst_190 {dimension_numbers = #tpu.dot_dimension_numbers<[1], [1], [0], [0], [0, 0, 1, 0], [], []>} : vector<16x32xbf16>, vector<64x32xbf16>, vector<16x64xf32> -> vector<16x64xf32>
    %318 = arith.addf %317, %1 : vector<16x64xf32>
    %cst_191 = arith.constant dense<0xFF800000> : vector<16xf32>
    %319 = vector.multi_reduction <maximumf>, %318, %cst_191 [1] : vector<16x64xf32> to vector<16xf32>
    %320 = vector.shape_cast %319 : vector<16xf32> to vector<16x1xf32>
    %321 = vector.broadcast %320 : vector<16x1xf32> to vector<16x64xf32>
    %322 = arith.subf %318, %321 : vector<16x64xf32>
    %323 = math.exp %322 : vector<16x64xf32>
    %cst_192 = arith.constant dense<0.000000e+00> : vector<16x64xf32>
    %324 = tpu.matmul %323, %4, %cst_192 {dimension_numbers = #tpu.dot_dimension_numbers<[1], [0], [0], [1], [0, 0, 1, 1], [], []>} : vector<16x64xf32>, vector<64x64xf32>, vector<16x64xf32> -> vector<16x64xf32>
    %325 = arith.divf %323, %324 : vector<16x64xf32>
    %326 = arith.truncf %325 : vector<16x64xf32> to vector<16x64xbf16>
    %cst_193 = arith.constant dense<0.000000e+00> : vector<16x32xf32>
    %327 = tpu.matmul %326, %315, %cst_193 {dimension_numbers = #tpu.dot_dimension_numbers<[1], [0], [0], [1], [0, 0, 1, 1], [], []>} : vector<16x64xbf16>, vector<64x32xbf16>, vector<16x32xf32> -> vector<16x32xf32>
    %328 = arith.truncf %327 : vector<16x32xf32> to vector<16x32xbf16>
    %cst_194 = arith.constant dense<0.000000e+00> : vector<16x32xf32>
    %329 = tpu.matmul %328, %296, %cst_194 {dimension_numbers = #tpu.dot_dimension_numbers<[1], [0], [0], [1], [0, 0, 1, 1], [], []>} : vector<16x32xbf16>, vector<32x32xbf16>, vector<16x32xf32> -> vector<16x32xf32>
    %330 = vector.broadcast %298 : vector<1x32xf32> to vector<16x32xf32>
    %331 = arith.addf %329, %330 : vector<16x32xf32>
    %332 = arith.addf %282, %331 : vector<16x32xf32>
    %c0_195 = arith.constant 0 : index
    %c0_196 = arith.constant 0 : index
    %c0_197 = arith.constant 0 : index
    %333 = vector.load %arg45[%c0_195, %c0_196, %c0_197] : memref<2x1x32xf32, #tpu.memory_space<vmem>>, vector<1x1x32xf32>
    %334 = vector.shape_cast %333 : vector<1x1x32xf32> to vector<1x32xf32>
    %c0_198 = arith.constant 0 : index
    %c0_199 = arith.constant 0 : index
    %c0_200 = arith.constant 0 : index
    %335 = vector.load %arg46[%c0_198, %c0_199, %c0_200] : memref<2x1x32xf32, #tpu.memory_space<vmem>>, vector<1x1x32xf32>
    %336 = vector.shape_cast %335 : vector<1x1x32xf32> to vector<1x32xf32>
    %cst_201 = arith.constant dense<0.000000e+00> : vector<16xf32>
    %337 = vector.multi_reduction <add>, %332, %cst_201 [1] : vector<16x32xf32> to vector<16xf32>
    %338 = vector.shape_cast %337 : vector<16xf32> to vector<16x1xf32>
    %cst_202 = arith.constant 3.200000e+01 : f32
    %339 = vector.broadcast %cst_202 : f32 to vector<16x1xf32>
    %340 = arith.divf %338, %339 : vector<16x1xf32>
    %341 = arith.mulf %332, %332 : vector<16x32xf32>
    %cst_203 = arith.constant dense<0.000000e+00> : vector<16xf32>
    %342 = vector.multi_reduction <add>, %341, %cst_203 [1] : vector<16x32xf32> to vector<16xf32>
    %343 = vector.shape_cast %342 : vector<16xf32> to vector<16x1xf32>
    %cst_204 = arith.constant 3.200000e+01 : f32
    %344 = vector.broadcast %cst_204 : f32 to vector<16x1xf32>
    %345 = arith.divf %343, %344 : vector<16x1xf32>
    %346 = arith.mulf %340, %340 : vector<16x1xf32>
    %347 = arith.subf %345, %346 : vector<16x1xf32>
    %cst_205 = arith.constant 0.000000e+00 : f32
    %348 = vector.broadcast %cst_205 : f32 to vector<16x1xf32>
    %349 = arith.maximumf %347, %348 : vector<16x1xf32>
    %350 = vector.broadcast %340 : vector<16x1xf32> to vector<16x32xf32>
    %351 = arith.subf %332, %350 : vector<16x32xf32>
    %cst_206 = arith.constant 9.99999974E-6 : f32
    %352 = vector.broadcast %cst_206 : f32 to vector<16x1xf32>
    %353 = arith.addf %349, %352 : vector<16x1xf32>
    %354 = math.rsqrt %353 : vector<16x1xf32>
    %355 = vector.broadcast %354 : vector<16x1xf32> to vector<16x32xf32>
    %356 = arith.mulf %351, %355 : vector<16x32xf32>
    %357 = vector.broadcast %334 : vector<1x32xf32> to vector<16x32xf32>
    %358 = arith.mulf %356, %357 : vector<16x32xf32>
    %359 = vector.broadcast %336 : vector<1x32xf32> to vector<16x32xf32>
    %360 = arith.addf %358, %359 : vector<16x32xf32>
    %c0_207 = arith.constant 0 : index
    %c0_208 = arith.constant 0 : index
    %c0_209 = arith.constant 0 : index
    %361 = vector.load %arg33[%c0_207, %c0_208, %c0_209] : memref<2x32x32xbf16, #tpu.memory_space<vmem>>, vector<1x32x32xbf16>
    %362 = vector.shape_cast %361 : vector<1x32x32xbf16> to vector<32x32xbf16>
    %c0_210 = arith.constant 0 : index
    %c0_211 = arith.constant 0 : index
    %c0_212 = arith.constant 0 : index
    %363 = vector.load %arg34[%c0_210, %c0_211, %c0_212] : memref<2x1x32xf32, #tpu.memory_space<vmem>>, vector<1x1x32xf32>
    %364 = vector.shape_cast %363 : vector<1x1x32xf32> to vector<1x32xf32>
    %c0_213 = arith.constant 0 : index
    %c0_214 = arith.constant 0 : index
    %c0_215 = arith.constant 0 : index
    %365 = vector.load %arg35[%c0_213, %c0_214, %c0_215] : memref<2x32x32xbf16, #tpu.memory_space<vmem>>, vector<1x32x32xbf16>
    %366 = vector.shape_cast %365 : vector<1x32x32xbf16> to vector<32x32xbf16>
    %c0_216 = arith.constant 0 : index
    %c0_217 = arith.constant 0 : index
    %c0_218 = arith.constant 0 : index
    %367 = vector.load %arg36[%c0_216, %c0_217, %c0_218] : memref<2x1x32xf32, #tpu.memory_space<vmem>>, vector<1x1x32xf32>
    %368 = vector.shape_cast %367 : vector<1x1x32xf32> to vector<1x32xf32>
    %c0_219 = arith.constant 0 : index
    %c0_220 = arith.constant 0 : index
    %c0_221 = arith.constant 0 : index
    %369 = vector.load %arg37[%c0_219, %c0_220, %c0_221] : memref<2x32x32xbf16, #tpu.memory_space<vmem>>, vector<1x32x32xbf16>
    %370 = vector.shape_cast %369 : vector<1x32x32xbf16> to vector<32x32xbf16>
    %c0_222 = arith.constant 0 : index
    %c0_223 = arith.constant 0 : index
    %c0_224 = arith.constant 0 : index
    %371 = vector.load %arg38[%c0_222, %c0_223, %c0_224] : memref<2x1x32xf32, #tpu.memory_space<vmem>>, vector<1x1x32xf32>
    %372 = vector.shape_cast %371 : vector<1x1x32xf32> to vector<1x32xf32>
    %c0_225 = arith.constant 0 : index
    %c0_226 = arith.constant 0 : index
    %c0_227 = arith.constant 0 : index
    %373 = vector.load %arg39[%c0_225, %c0_226, %c0_227] : memref<2x32x32xbf16, #tpu.memory_space<vmem>>, vector<1x32x32xbf16>
    %374 = vector.shape_cast %373 : vector<1x32x32xbf16> to vector<32x32xbf16>
    %c0_228 = arith.constant 0 : index
    %c0_229 = arith.constant 0 : index
    %c0_230 = arith.constant 0 : index
    %375 = vector.load %arg40[%c0_228, %c0_229, %c0_230] : memref<2x1x32xf32, #tpu.memory_space<vmem>>, vector<1x1x32xf32>
    %376 = vector.shape_cast %375 : vector<1x1x32xf32> to vector<1x32xf32>
    %377 = arith.truncf %360 : vector<16x32xf32> to vector<16x32xbf16>
    %378 = arith.truncf %281 : vector<16x32xf32> to vector<16x32xbf16>
    %cst_231 = arith.constant dense<0.000000e+00> : vector<16x32xf32>
    %379 = tpu.matmul %377, %362, %cst_231 {dimension_numbers = #tpu.dot_dimension_numbers<[1], [0], [0], [1], [0, 0, 1, 1], [], []>} : vector<16x32xbf16>, vector<32x32xbf16>, vector<16x32xf32> -> vector<16x32xf32>
    %380 = vector.broadcast %364 : vector<1x32xf32> to vector<16x32xf32>
    %381 = arith.addf %379, %380 : vector<16x32xf32>
    %cst_232 = arith.constant dense<0.000000e+00> : vector<16x32xf32>
    %382 = tpu.matmul %378, %366, %cst_232 {dimension_numbers = #tpu.dot_dimension_numbers<[1], [0], [0], [1], [0, 0, 1, 1], [], []>} : vector<16x32xbf16>, vector<32x32xbf16>, vector<16x32xf32> -> vector<16x32xf32>
    %383 = vector.broadcast %368 : vector<1x32xf32> to vector<16x32xf32>
    %384 = arith.addf %382, %383 : vector<16x32xf32>
    %cst_233 = arith.constant dense<0.000000e+00> : vector<16x32xf32>
    %385 = tpu.matmul %378, %370, %cst_233 {dimension_numbers = #tpu.dot_dimension_numbers<[1], [0], [0], [1], [0, 0, 1, 1], [], []>} : vector<16x32xbf16>, vector<32x32xbf16>, vector<16x32xf32> -> vector<16x32xf32>
    %386 = vector.broadcast %372 : vector<1x32xf32> to vector<16x32xf32>
    %387 = arith.addf %385, %386 : vector<16x32xf32>
    %388 = arith.truncf %384 : vector<16x32xf32> to vector<16x32xbf16>
    %389 = tpu.concatenate %388, %388, %388, %388 in 0 : vector<16x32xbf16>, vector<16x32xbf16>, vector<16x32xbf16>, vector<16x32xbf16> -> vector<64x32xbf16>
    %390 = arith.mulf %389, %3 : vector<64x32xbf16>
    %391 = arith.truncf %387 : vector<16x32xf32> to vector<16x32xbf16>
    %392 = tpu.concatenate %391, %391, %391, %391 in 0 : vector<16x32xbf16>, vector<16x32xbf16>, vector<16x32xbf16>, vector<16x32xbf16> -> vector<64x32xbf16>
    %393 = arith.mulf %392, %3 : vector<64x32xbf16>
    %394 = arith.truncf %381 : vector<16x32xf32> to vector<16x32xbf16>
    %cst_234 = arith.constant dense<0.000000e+00> : vector<16x64xf32>
    %395 = tpu.matmul %394, %390, %cst_234 {dimension_numbers = #tpu.dot_dimension_numbers<[1], [1], [0], [0], [0, 0, 1, 0], [], []>} : vector<16x32xbf16>, vector<64x32xbf16>, vector<16x64xf32> -> vector<16x64xf32>
    %396 = arith.addf %395, %2 : vector<16x64xf32>
    %cst_235 = arith.constant dense<0xFF800000> : vector<16xf32>
    %397 = vector.multi_reduction <maximumf>, %396, %cst_235 [1] : vector<16x64xf32> to vector<16xf32>
    %398 = vector.shape_cast %397 : vector<16xf32> to vector<16x1xf32>
    %399 = vector.broadcast %398 : vector<16x1xf32> to vector<16x64xf32>
    %400 = arith.subf %396, %399 : vector<16x64xf32>
    %401 = math.exp %400 : vector<16x64xf32>
    %cst_236 = arith.constant dense<0.000000e+00> : vector<16x64xf32>
    %402 = tpu.matmul %401, %4, %cst_236 {dimension_numbers = #tpu.dot_dimension_numbers<[1], [0], [0], [1], [0, 0, 1, 1], [], []>} : vector<16x64xf32>, vector<64x64xf32>, vector<16x64xf32> -> vector<16x64xf32>
    %403 = arith.divf %401, %402 : vector<16x64xf32>
    %404 = arith.truncf %403 : vector<16x64xf32> to vector<16x64xbf16>
    %cst_237 = arith.constant dense<0.000000e+00> : vector<16x32xf32>
    %405 = tpu.matmul %404, %393, %cst_237 {dimension_numbers = #tpu.dot_dimension_numbers<[1], [0], [0], [1], [0, 0, 1, 1], [], []>} : vector<16x64xbf16>, vector<64x32xbf16>, vector<16x32xf32> -> vector<16x32xf32>
    %406 = arith.truncf %405 : vector<16x32xf32> to vector<16x32xbf16>
    %cst_238 = arith.constant dense<0.000000e+00> : vector<16x32xf32>
    %407 = tpu.matmul %406, %374, %cst_238 {dimension_numbers = #tpu.dot_dimension_numbers<[1], [0], [0], [1], [0, 0, 1, 1], [], []>} : vector<16x32xbf16>, vector<32x32xbf16>, vector<16x32xf32> -> vector<16x32xf32>
    %408 = vector.broadcast %376 : vector<1x32xf32> to vector<16x32xf32>
    %409 = arith.addf %407, %408 : vector<16x32xf32>
    %410 = arith.addf %360, %409 : vector<16x32xf32>
    %c0_239 = arith.constant 0 : index
    %c0_240 = arith.constant 0 : index
    %c0_241 = arith.constant 0 : index
    %411 = vector.load %arg47[%c0_239, %c0_240, %c0_241] : memref<2x1x32xf32, #tpu.memory_space<vmem>>, vector<1x1x32xf32>
    %412 = vector.shape_cast %411 : vector<1x1x32xf32> to vector<1x32xf32>
    %c0_242 = arith.constant 0 : index
    %c0_243 = arith.constant 0 : index
    %c0_244 = arith.constant 0 : index
    %413 = vector.load %arg48[%c0_242, %c0_243, %c0_244] : memref<2x1x32xf32, #tpu.memory_space<vmem>>, vector<1x1x32xf32>
    %414 = vector.shape_cast %413 : vector<1x1x32xf32> to vector<1x32xf32>
    %cst_245 = arith.constant dense<0.000000e+00> : vector<16xf32>
    %415 = vector.multi_reduction <add>, %410, %cst_245 [1] : vector<16x32xf32> to vector<16xf32>
    %416 = vector.shape_cast %415 : vector<16xf32> to vector<16x1xf32>
    %cst_246 = arith.constant 3.200000e+01 : f32
    %417 = vector.broadcast %cst_246 : f32 to vector<16x1xf32>
    %418 = arith.divf %416, %417 : vector<16x1xf32>
    %419 = arith.mulf %410, %410 : vector<16x32xf32>
    %cst_247 = arith.constant dense<0.000000e+00> : vector<16xf32>
    %420 = vector.multi_reduction <add>, %419, %cst_247 [1] : vector<16x32xf32> to vector<16xf32>
    %421 = vector.shape_cast %420 : vector<16xf32> to vector<16x1xf32>
    %cst_248 = arith.constant 3.200000e+01 : f32
    %422 = vector.broadcast %cst_248 : f32 to vector<16x1xf32>
    %423 = arith.divf %421, %422 : vector<16x1xf32>
    %424 = arith.mulf %418, %418 : vector<16x1xf32>
    %425 = arith.subf %423, %424 : vector<16x1xf32>
    %cst_249 = arith.constant 0.000000e+00 : f32
    %426 = vector.broadcast %cst_249 : f32 to vector<16x1xf32>
    %427 = arith.maximumf %425, %426 : vector<16x1xf32>
    %428 = vector.broadcast %418 : vector<16x1xf32> to vector<16x32xf32>
    %429 = arith.subf %410, %428 : vector<16x32xf32>
    %cst_250 = arith.constant 9.99999974E-6 : f32
    %430 = vector.broadcast %cst_250 : f32 to vector<16x1xf32>
    %431 = arith.addf %427, %430 : vector<16x1xf32>
    %432 = math.rsqrt %431 : vector<16x1xf32>
    %433 = vector.broadcast %432 : vector<16x1xf32> to vector<16x32xf32>
    %434 = arith.mulf %429, %433 : vector<16x32xf32>
    %435 = vector.broadcast %412 : vector<1x32xf32> to vector<16x32xf32>
    %436 = arith.mulf %434, %435 : vector<16x32xf32>
    %437 = vector.broadcast %414 : vector<1x32xf32> to vector<16x32xf32>
    %438 = arith.addf %436, %437 : vector<16x32xf32>
    %c0_251 = arith.constant 0 : index
    %c0_252 = arith.constant 0 : index
    %c0_253 = arith.constant 0 : index
    %439 = vector.load %arg41[%c0_251, %c0_252, %c0_253] : memref<2x32x64xbf16, #tpu.memory_space<vmem>>, vector<1x32x64xbf16>
    %440 = vector.shape_cast %439 : vector<1x32x64xbf16> to vector<32x64xbf16>
    %c0_254 = arith.constant 0 : index
    %c0_255 = arith.constant 0 : index
    %c0_256 = arith.constant 0 : index
    %441 = vector.load %arg42[%c0_254, %c0_255, %c0_256] : memref<2x1x64xf32, #tpu.memory_space<vmem>>, vector<1x1x64xf32>
    %442 = vector.shape_cast %441 : vector<1x1x64xf32> to vector<1x64xf32>
    %c0_257 = arith.constant 0 : index
    %c0_258 = arith.constant 0 : index
    %c0_259 = arith.constant 0 : index
    %443 = vector.load %arg43[%c0_257, %c0_258, %c0_259] : memref<2x64x32xbf16, #tpu.memory_space<vmem>>, vector<1x64x32xbf16>
    %444 = vector.shape_cast %443 : vector<1x64x32xbf16> to vector<64x32xbf16>
    %c0_260 = arith.constant 0 : index
    %c0_261 = arith.constant 0 : index
    %c0_262 = arith.constant 0 : index
    %445 = vector.load %arg44[%c0_260, %c0_261, %c0_262] : memref<2x1x32xf32, #tpu.memory_space<vmem>>, vector<1x1x32xf32>
    %446 = vector.shape_cast %445 : vector<1x1x32xf32> to vector<1x32xf32>
    %447 = arith.truncf %438 : vector<16x32xf32> to vector<16x32xbf16>
    %cst_263 = arith.constant dense<0.000000e+00> : vector<16x64xf32>
    %448 = tpu.matmul %447, %440, %cst_263 {dimension_numbers = #tpu.dot_dimension_numbers<[1], [0], [0], [1], [0, 0, 1, 1], [], []>} : vector<16x32xbf16>, vector<32x64xbf16>, vector<16x64xf32> -> vector<16x64xf32>
    %449 = vector.broadcast %442 : vector<1x64xf32> to vector<16x64xf32>
    %450 = arith.addf %448, %449 : vector<16x64xf32>
    %cst_264 = arith.constant 0.000000e+00 : f32
    %451 = vector.broadcast %cst_264 : f32 to vector<16x64xf32>
    %452 = arith.maximumf %450, %451 : vector<16x64xf32>
    %453 = arith.truncf %452 : vector<16x64xf32> to vector<16x64xbf16>
    %cst_265 = arith.constant dense<0.000000e+00> : vector<16x32xf32>
    %454 = tpu.matmul %453, %444, %cst_265 {dimension_numbers = #tpu.dot_dimension_numbers<[1], [0], [0], [1], [0, 0, 1, 1], [], []>} : vector<16x64xbf16>, vector<64x32xbf16>, vector<16x32xf32> -> vector<16x32xf32>
    %455 = vector.broadcast %446 : vector<1x32xf32> to vector<16x32xf32>
    %456 = arith.addf %454, %455 : vector<16x32xf32>
    %457 = arith.addf %438, %456 : vector<16x32xf32>
    %c0_266 = arith.constant 0 : index
    %c0_267 = arith.constant 0 : index
    %c0_268 = arith.constant 0 : index
    %458 = vector.load %arg49[%c0_266, %c0_267, %c0_268] : memref<2x1x32xf32, #tpu.memory_space<vmem>>, vector<1x1x32xf32>
    %459 = vector.shape_cast %458 : vector<1x1x32xf32> to vector<1x32xf32>
    %c0_269 = arith.constant 0 : index
    %c0_270 = arith.constant 0 : index
    %c0_271 = arith.constant 0 : index
    %460 = vector.load %arg50[%c0_269, %c0_270, %c0_271] : memref<2x1x32xf32, #tpu.memory_space<vmem>>, vector<1x1x32xf32>
    %461 = vector.shape_cast %460 : vector<1x1x32xf32> to vector<1x32xf32>
    %cst_272 = arith.constant dense<0.000000e+00> : vector<16xf32>
    %462 = vector.multi_reduction <add>, %457, %cst_272 [1] : vector<16x32xf32> to vector<16xf32>
    %463 = vector.shape_cast %462 : vector<16xf32> to vector<16x1xf32>
    %cst_273 = arith.constant 3.200000e+01 : f32
    %464 = vector.broadcast %cst_273 : f32 to vector<16x1xf32>
    %465 = arith.divf %463, %464 : vector<16x1xf32>
    %466 = arith.mulf %457, %457 : vector<16x32xf32>
    %cst_274 = arith.constant dense<0.000000e+00> : vector<16xf32>
    %467 = vector.multi_reduction <add>, %466, %cst_274 [1] : vector<16x32xf32> to vector<16xf32>
    %468 = vector.shape_cast %467 : vector<16xf32> to vector<16x1xf32>
    %cst_275 = arith.constant 3.200000e+01 : f32
    %469 = vector.broadcast %cst_275 : f32 to vector<16x1xf32>
    %470 = arith.divf %468, %469 : vector<16x1xf32>
    %471 = arith.mulf %465, %465 : vector<16x1xf32>
    %472 = arith.subf %470, %471 : vector<16x1xf32>
    %cst_276 = arith.constant 0.000000e+00 : f32
    %473 = vector.broadcast %cst_276 : f32 to vector<16x1xf32>
    %474 = arith.maximumf %472, %473 : vector<16x1xf32>
    %475 = vector.broadcast %465 : vector<16x1xf32> to vector<16x32xf32>
    %476 = arith.subf %457, %475 : vector<16x32xf32>
    %cst_277 = arith.constant 9.99999974E-6 : f32
    %477 = vector.broadcast %cst_277 : f32 to vector<16x1xf32>
    %478 = arith.addf %474, %477 : vector<16x1xf32>
    %479 = math.rsqrt %478 : vector<16x1xf32>
    %480 = vector.broadcast %479 : vector<16x1xf32> to vector<16x32xf32>
    %481 = arith.mulf %476, %480 : vector<16x32xf32>
    %482 = vector.broadcast %459 : vector<1x32xf32> to vector<16x32xf32>
    %483 = arith.mulf %481, %482 : vector<16x32xf32>
    %484 = vector.broadcast %461 : vector<1x32xf32> to vector<16x32xf32>
    %485 = arith.addf %483, %484 : vector<16x32xf32>
    %c1_278 = arith.constant 1 : index
    %c0_279 = arith.constant 0 : index
    %c0_280 = arith.constant 0 : index
    %486 = vector.load %arg25[%c1_278, %c0_279, %c0_280] : memref<2x32x32xbf16, #tpu.memory_space<vmem>>, vector<1x32x32xbf16>
    %487 = vector.shape_cast %486 : vector<1x32x32xbf16> to vector<32x32xbf16>
    %c1_281 = arith.constant 1 : index
    %c0_282 = arith.constant 0 : index
    %c0_283 = arith.constant 0 : index
    %488 = vector.load %arg26[%c1_281, %c0_282, %c0_283] : memref<2x1x32xf32, #tpu.memory_space<vmem>>, vector<1x1x32xf32>
    %489 = vector.shape_cast %488 : vector<1x1x32xf32> to vector<1x32xf32>
    %c1_284 = arith.constant 1 : index
    %c0_285 = arith.constant 0 : index
    %c0_286 = arith.constant 0 : index
    %490 = vector.load %arg27[%c1_284, %c0_285, %c0_286] : memref<2x32x32xbf16, #tpu.memory_space<vmem>>, vector<1x32x32xbf16>
    %491 = vector.shape_cast %490 : vector<1x32x32xbf16> to vector<32x32xbf16>
    %c1_287 = arith.constant 1 : index
    %c0_288 = arith.constant 0 : index
    %c0_289 = arith.constant 0 : index
    %492 = vector.load %arg28[%c1_287, %c0_288, %c0_289] : memref<2x1x32xf32, #tpu.memory_space<vmem>>, vector<1x1x32xf32>
    %493 = vector.shape_cast %492 : vector<1x1x32xf32> to vector<1x32xf32>
    %c1_290 = arith.constant 1 : index
    %c0_291 = arith.constant 0 : index
    %c0_292 = arith.constant 0 : index
    %494 = vector.load %arg29[%c1_290, %c0_291, %c0_292] : memref<2x32x32xbf16, #tpu.memory_space<vmem>>, vector<1x32x32xbf16>
    %495 = vector.shape_cast %494 : vector<1x32x32xbf16> to vector<32x32xbf16>
    %c1_293 = arith.constant 1 : index
    %c0_294 = arith.constant 0 : index
    %c0_295 = arith.constant 0 : index
    %496 = vector.load %arg30[%c1_293, %c0_294, %c0_295] : memref<2x1x32xf32, #tpu.memory_space<vmem>>, vector<1x1x32xf32>
    %497 = vector.shape_cast %496 : vector<1x1x32xf32> to vector<1x32xf32>
    %c1_296 = arith.constant 1 : index
    %c0_297 = arith.constant 0 : index
    %c0_298 = arith.constant 0 : index
    %498 = vector.load %arg31[%c1_296, %c0_297, %c0_298] : memref<2x32x32xbf16, #tpu.memory_space<vmem>>, vector<1x32x32xbf16>
    %499 = vector.shape_cast %498 : vector<1x32x32xbf16> to vector<32x32xbf16>
    %c1_299 = arith.constant 1 : index
    %c0_300 = arith.constant 0 : index
    %c0_301 = arith.constant 0 : index
    %500 = vector.load %arg32[%c1_299, %c0_300, %c0_301] : memref<2x1x32xf32, #tpu.memory_space<vmem>>, vector<1x1x32xf32>
    %501 = vector.shape_cast %500 : vector<1x1x32xf32> to vector<1x32xf32>
    %502 = arith.truncf %485 : vector<16x32xf32> to vector<16x32xbf16>
    %503 = arith.truncf %485 : vector<16x32xf32> to vector<16x32xbf16>
    %cst_302 = arith.constant dense<0.000000e+00> : vector<16x32xf32>
    %504 = tpu.matmul %502, %487, %cst_302 {dimension_numbers = #tpu.dot_dimension_numbers<[1], [0], [0], [1], [0, 0, 1, 1], [], []>} : vector<16x32xbf16>, vector<32x32xbf16>, vector<16x32xf32> -> vector<16x32xf32>
    %505 = vector.broadcast %489 : vector<1x32xf32> to vector<16x32xf32>
    %506 = arith.addf %504, %505 : vector<16x32xf32>
    %cst_303 = arith.constant dense<0.000000e+00> : vector<16x32xf32>
    %507 = tpu.matmul %503, %491, %cst_303 {dimension_numbers = #tpu.dot_dimension_numbers<[1], [0], [0], [1], [0, 0, 1, 1], [], []>} : vector<16x32xbf16>, vector<32x32xbf16>, vector<16x32xf32> -> vector<16x32xf32>
    %508 = vector.broadcast %493 : vector<1x32xf32> to vector<16x32xf32>
    %509 = arith.addf %507, %508 : vector<16x32xf32>
    %cst_304 = arith.constant dense<0.000000e+00> : vector<16x32xf32>
    %510 = tpu.matmul %503, %495, %cst_304 {dimension_numbers = #tpu.dot_dimension_numbers<[1], [0], [0], [1], [0, 0, 1, 1], [], []>} : vector<16x32xbf16>, vector<32x32xbf16>, vector<16x32xf32> -> vector<16x32xf32>
    %511 = vector.broadcast %497 : vector<1x32xf32> to vector<16x32xf32>
    %512 = arith.addf %510, %511 : vector<16x32xf32>
    %513 = arith.truncf %509 : vector<16x32xf32> to vector<16x32xbf16>
    %514 = tpu.concatenate %513, %513, %513, %513 in 0 : vector<16x32xbf16>, vector<16x32xbf16>, vector<16x32xbf16>, vector<16x32xbf16> -> vector<64x32xbf16>
    %515 = arith.mulf %514, %3 : vector<64x32xbf16>
    %516 = arith.truncf %512 : vector<16x32xf32> to vector<16x32xbf16>
    %517 = tpu.concatenate %516, %516, %516, %516 in 0 : vector<16x32xbf16>, vector<16x32xbf16>, vector<16x32xbf16>, vector<16x32xbf16> -> vector<64x32xbf16>
    %518 = arith.mulf %517, %3 : vector<64x32xbf16>
    %519 = arith.truncf %506 : vector<16x32xf32> to vector<16x32xbf16>
    %cst_305 = arith.constant dense<0.000000e+00> : vector<16x64xf32>
    %520 = tpu.matmul %519, %515, %cst_305 {dimension_numbers = #tpu.dot_dimension_numbers<[1], [1], [0], [0], [0, 0, 1, 0], [], []>} : vector<16x32xbf16>, vector<64x32xbf16>, vector<16x64xf32> -> vector<16x64xf32>
    %521 = arith.addf %520, %1 : vector<16x64xf32>
    %cst_306 = arith.constant dense<0xFF800000> : vector<16xf32>
    %522 = vector.multi_reduction <maximumf>, %521, %cst_306 [1] : vector<16x64xf32> to vector<16xf32>
    %523 = vector.shape_cast %522 : vector<16xf32> to vector<16x1xf32>
    %524 = vector.broadcast %523 : vector<16x1xf32> to vector<16x64xf32>
    %525 = arith.subf %521, %524 : vector<16x64xf32>
    %526 = math.exp %525 : vector<16x64xf32>
    %cst_307 = arith.constant dense<0.000000e+00> : vector<16x64xf32>
    %527 = tpu.matmul %526, %4, %cst_307 {dimension_numbers = #tpu.dot_dimension_numbers<[1], [0], [0], [1], [0, 0, 1, 1], [], []>} : vector<16x64xf32>, vector<64x64xf32>, vector<16x64xf32> -> vector<16x64xf32>
    %528 = arith.divf %526, %527 : vector<16x64xf32>
    %529 = arith.truncf %528 : vector<16x64xf32> to vector<16x64xbf16>
    %cst_308 = arith.constant dense<0.000000e+00> : vector<16x32xf32>
    %530 = tpu.matmul %529, %518, %cst_308 {dimension_numbers = #tpu.dot_dimension_numbers<[1], [0], [0], [1], [0, 0, 1, 1], [], []>} : vector<16x64xbf16>, vector<64x32xbf16>, vector<16x32xf32> -> vector<16x32xf32>
    %531 = arith.truncf %530 : vector<16x32xf32> to vector<16x32xbf16>
    %cst_309 = arith.constant dense<0.000000e+00> : vector<16x32xf32>
    %532 = tpu.matmul %531, %499, %cst_309 {dimension_numbers = #tpu.dot_dimension_numbers<[1], [0], [0], [1], [0, 0, 1, 1], [], []>} : vector<16x32xbf16>, vector<32x32xbf16>, vector<16x32xf32> -> vector<16x32xf32>
    %533 = vector.broadcast %501 : vector<1x32xf32> to vector<16x32xf32>
    %534 = arith.addf %532, %533 : vector<16x32xf32>
    %535 = arith.addf %485, %534 : vector<16x32xf32>
    %c1_310 = arith.constant 1 : index
    %c0_311 = arith.constant 0 : index
    %c0_312 = arith.constant 0 : index
    %536 = vector.load %arg45[%c1_310, %c0_311, %c0_312] : memref<2x1x32xf32, #tpu.memory_space<vmem>>, vector<1x1x32xf32>
    %537 = vector.shape_cast %536 : vector<1x1x32xf32> to vector<1x32xf32>
    %c1_313 = arith.constant 1 : index
    %c0_314 = arith.constant 0 : index
    %c0_315 = arith.constant 0 : index
    %538 = vector.load %arg46[%c1_313, %c0_314, %c0_315] : memref<2x1x32xf32, #tpu.memory_space<vmem>>, vector<1x1x32xf32>
    %539 = vector.shape_cast %538 : vector<1x1x32xf32> to vector<1x32xf32>
    %cst_316 = arith.constant dense<0.000000e+00> : vector<16xf32>
    %540 = vector.multi_reduction <add>, %535, %cst_316 [1] : vector<16x32xf32> to vector<16xf32>
    %541 = vector.shape_cast %540 : vector<16xf32> to vector<16x1xf32>
    %cst_317 = arith.constant 3.200000e+01 : f32
    %542 = vector.broadcast %cst_317 : f32 to vector<16x1xf32>
    %543 = arith.divf %541, %542 : vector<16x1xf32>
    %544 = arith.mulf %535, %535 : vector<16x32xf32>
    %cst_318 = arith.constant dense<0.000000e+00> : vector<16xf32>
    %545 = vector.multi_reduction <add>, %544, %cst_318 [1] : vector<16x32xf32> to vector<16xf32>
    %546 = vector.shape_cast %545 : vector<16xf32> to vector<16x1xf32>
    %cst_319 = arith.constant 3.200000e+01 : f32
    %547 = vector.broadcast %cst_319 : f32 to vector<16x1xf32>
    %548 = arith.divf %546, %547 : vector<16x1xf32>
    %549 = arith.mulf %543, %543 : vector<16x1xf32>
    %550 = arith.subf %548, %549 : vector<16x1xf32>
    %cst_320 = arith.constant 0.000000e+00 : f32
    %551 = vector.broadcast %cst_320 : f32 to vector<16x1xf32>
    %552 = arith.maximumf %550, %551 : vector<16x1xf32>
    %553 = vector.broadcast %543 : vector<16x1xf32> to vector<16x32xf32>
    %554 = arith.subf %535, %553 : vector<16x32xf32>
    %cst_321 = arith.constant 9.99999974E-6 : f32
    %555 = vector.broadcast %cst_321 : f32 to vector<16x1xf32>
    %556 = arith.addf %552, %555 : vector<16x1xf32>
    %557 = math.rsqrt %556 : vector<16x1xf32>
    %558 = vector.broadcast %557 : vector<16x1xf32> to vector<16x32xf32>
    %559 = arith.mulf %554, %558 : vector<16x32xf32>
    %560 = vector.broadcast %537 : vector<1x32xf32> to vector<16x32xf32>
    %561 = arith.mulf %559, %560 : vector<16x32xf32>
    %562 = vector.broadcast %539 : vector<1x32xf32> to vector<16x32xf32>
    %563 = arith.addf %561, %562 : vector<16x32xf32>
    %c1_322 = arith.constant 1 : index
    %c0_323 = arith.constant 0 : index
    %c0_324 = arith.constant 0 : index
    %564 = vector.load %arg33[%c1_322, %c0_323, %c0_324] : memref<2x32x32xbf16, #tpu.memory_space<vmem>>, vector<1x32x32xbf16>
    %565 = vector.shape_cast %564 : vector<1x32x32xbf16> to vector<32x32xbf16>
    %c1_325 = arith.constant 1 : index
    %c0_326 = arith.constant 0 : index
    %c0_327 = arith.constant 0 : index
    %566 = vector.load %arg34[%c1_325, %c0_326, %c0_327] : memref<2x1x32xf32, #tpu.memory_space<vmem>>, vector<1x1x32xf32>
    %567 = vector.shape_cast %566 : vector<1x1x32xf32> to vector<1x32xf32>
    %c1_328 = arith.constant 1 : index
    %c0_329 = arith.constant 0 : index
    %c0_330 = arith.constant 0 : index
    %568 = vector.load %arg35[%c1_328, %c0_329, %c0_330] : memref<2x32x32xbf16, #tpu.memory_space<vmem>>, vector<1x32x32xbf16>
    %569 = vector.shape_cast %568 : vector<1x32x32xbf16> to vector<32x32xbf16>
    %c1_331 = arith.constant 1 : index
    %c0_332 = arith.constant 0 : index
    %c0_333 = arith.constant 0 : index
    %570 = vector.load %arg36[%c1_331, %c0_332, %c0_333] : memref<2x1x32xf32, #tpu.memory_space<vmem>>, vector<1x1x32xf32>
    %571 = vector.shape_cast %570 : vector<1x1x32xf32> to vector<1x32xf32>
    %c1_334 = arith.constant 1 : index
    %c0_335 = arith.constant 0 : index
    %c0_336 = arith.constant 0 : index
    %572 = vector.load %arg37[%c1_334, %c0_335, %c0_336] : memref<2x32x32xbf16, #tpu.memory_space<vmem>>, vector<1x32x32xbf16>
    %573 = vector.shape_cast %572 : vector<1x32x32xbf16> to vector<32x32xbf16>
    %c1_337 = arith.constant 1 : index
    %c0_338 = arith.constant 0 : index
    %c0_339 = arith.constant 0 : index
    %574 = vector.load %arg38[%c1_337, %c0_338, %c0_339] : memref<2x1x32xf32, #tpu.memory_space<vmem>>, vector<1x1x32xf32>
    %575 = vector.shape_cast %574 : vector<1x1x32xf32> to vector<1x32xf32>
    %c1_340 = arith.constant 1 : index
    %c0_341 = arith.constant 0 : index
    %c0_342 = arith.constant 0 : index
    %576 = vector.load %arg39[%c1_340, %c0_341, %c0_342] : memref<2x32x32xbf16, #tpu.memory_space<vmem>>, vector<1x32x32xbf16>
    %577 = vector.shape_cast %576 : vector<1x32x32xbf16> to vector<32x32xbf16>
    %c1_343 = arith.constant 1 : index
    %c0_344 = arith.constant 0 : index
    %c0_345 = arith.constant 0 : index
    %578 = vector.load %arg40[%c1_343, %c0_344, %c0_345] : memref<2x1x32xf32, #tpu.memory_space<vmem>>, vector<1x1x32xf32>
    %579 = vector.shape_cast %578 : vector<1x1x32xf32> to vector<1x32xf32>
    %580 = arith.truncf %563 : vector<16x32xf32> to vector<16x32xbf16>
    %581 = arith.truncf %281 : vector<16x32xf32> to vector<16x32xbf16>
    %cst_346 = arith.constant dense<0.000000e+00> : vector<16x32xf32>
    %582 = tpu.matmul %580, %565, %cst_346 {dimension_numbers = #tpu.dot_dimension_numbers<[1], [0], [0], [1], [0, 0, 1, 1], [], []>} : vector<16x32xbf16>, vector<32x32xbf16>, vector<16x32xf32> -> vector<16x32xf32>
    %583 = vector.broadcast %567 : vector<1x32xf32> to vector<16x32xf32>
    %584 = arith.addf %582, %583 : vector<16x32xf32>
    %cst_347 = arith.constant dense<0.000000e+00> : vector<16x32xf32>
    %585 = tpu.matmul %581, %569, %cst_347 {dimension_numbers = #tpu.dot_dimension_numbers<[1], [0], [0], [1], [0, 0, 1, 1], [], []>} : vector<16x32xbf16>, vector<32x32xbf16>, vector<16x32xf32> -> vector<16x32xf32>
    %586 = vector.broadcast %571 : vector<1x32xf32> to vector<16x32xf32>
    %587 = arith.addf %585, %586 : vector<16x32xf32>
    %cst_348 = arith.constant dense<0.000000e+00> : vector<16x32xf32>
    %588 = tpu.matmul %581, %573, %cst_348 {dimension_numbers = #tpu.dot_dimension_numbers<[1], [0], [0], [1], [0, 0, 1, 1], [], []>} : vector<16x32xbf16>, vector<32x32xbf16>, vector<16x32xf32> -> vector<16x32xf32>
    %589 = vector.broadcast %575 : vector<1x32xf32> to vector<16x32xf32>
    %590 = arith.addf %588, %589 : vector<16x32xf32>
    %591 = arith.truncf %587 : vector<16x32xf32> to vector<16x32xbf16>
    %592 = tpu.concatenate %591, %591, %591, %591 in 0 : vector<16x32xbf16>, vector<16x32xbf16>, vector<16x32xbf16>, vector<16x32xbf16> -> vector<64x32xbf16>
    %593 = arith.mulf %592, %3 : vector<64x32xbf16>
    %594 = arith.truncf %590 : vector<16x32xf32> to vector<16x32xbf16>
    %595 = tpu.concatenate %594, %594, %594, %594 in 0 : vector<16x32xbf16>, vector<16x32xbf16>, vector<16x32xbf16>, vector<16x32xbf16> -> vector<64x32xbf16>
    %596 = arith.mulf %595, %3 : vector<64x32xbf16>
    %597 = arith.truncf %584 : vector<16x32xf32> to vector<16x32xbf16>
    %cst_349 = arith.constant dense<0.000000e+00> : vector<16x64xf32>
    %598 = tpu.matmul %597, %593, %cst_349 {dimension_numbers = #tpu.dot_dimension_numbers<[1], [1], [0], [0], [0, 0, 1, 0], [], []>} : vector<16x32xbf16>, vector<64x32xbf16>, vector<16x64xf32> -> vector<16x64xf32>
    %599 = arith.addf %598, %2 : vector<16x64xf32>
    %cst_350 = arith.constant dense<0xFF800000> : vector<16xf32>
    %600 = vector.multi_reduction <maximumf>, %599, %cst_350 [1] : vector<16x64xf32> to vector<16xf32>
    %601 = vector.shape_cast %600 : vector<16xf32> to vector<16x1xf32>
    %602 = vector.broadcast %601 : vector<16x1xf32> to vector<16x64xf32>
    %603 = arith.subf %599, %602 : vector<16x64xf32>
    %604 = math.exp %603 : vector<16x64xf32>
    %cst_351 = arith.constant dense<0.000000e+00> : vector<16x64xf32>
    %605 = tpu.matmul %604, %4, %cst_351 {dimension_numbers = #tpu.dot_dimension_numbers<[1], [0], [0], [1], [0, 0, 1, 1], [], []>} : vector<16x64xf32>, vector<64x64xf32>, vector<16x64xf32> -> vector<16x64xf32>
    %606 = arith.divf %604, %605 : vector<16x64xf32>
    %607 = arith.truncf %606 : vector<16x64xf32> to vector<16x64xbf16>
    %cst_352 = arith.constant dense<0.000000e+00> : vector<16x32xf32>
    %608 = tpu.matmul %607, %596, %cst_352 {dimension_numbers = #tpu.dot_dimension_numbers<[1], [0], [0], [1], [0, 0, 1, 1], [], []>} : vector<16x64xbf16>, vector<64x32xbf16>, vector<16x32xf32> -> vector<16x32xf32>
    %609 = arith.truncf %608 : vector<16x32xf32> to vector<16x32xbf16>
    %cst_353 = arith.constant dense<0.000000e+00> : vector<16x32xf32>
    %610 = tpu.matmul %609, %577, %cst_353 {dimension_numbers = #tpu.dot_dimension_numbers<[1], [0], [0], [1], [0, 0, 1, 1], [], []>} : vector<16x32xbf16>, vector<32x32xbf16>, vector<16x32xf32> -> vector<16x32xf32>
    %611 = vector.broadcast %579 : vector<1x32xf32> to vector<16x32xf32>
    %612 = arith.addf %610, %611 : vector<16x32xf32>
    %613 = arith.addf %563, %612 : vector<16x32xf32>
    %c1_354 = arith.constant 1 : index
    %c0_355 = arith.constant 0 : index
    %c0_356 = arith.constant 0 : index
    %614 = vector.load %arg47[%c1_354, %c0_355, %c0_356] : memref<2x1x32xf32, #tpu.memory_space<vmem>>, vector<1x1x32xf32>
    %615 = vector.shape_cast %614 : vector<1x1x32xf32> to vector<1x32xf32>
    %c1_357 = arith.constant 1 : index
    %c0_358 = arith.constant 0 : index
    %c0_359 = arith.constant 0 : index
    %616 = vector.load %arg48[%c1_357, %c0_358, %c0_359] : memref<2x1x32xf32, #tpu.memory_space<vmem>>, vector<1x1x32xf32>
    %617 = vector.shape_cast %616 : vector<1x1x32xf32> to vector<1x32xf32>
    %cst_360 = arith.constant dense<0.000000e+00> : vector<16xf32>
    %618 = vector.multi_reduction <add>, %613, %cst_360 [1] : vector<16x32xf32> to vector<16xf32>
    %619 = vector.shape_cast %618 : vector<16xf32> to vector<16x1xf32>
    %cst_361 = arith.constant 3.200000e+01 : f32
    %620 = vector.broadcast %cst_361 : f32 to vector<16x1xf32>
    %621 = arith.divf %619, %620 : vector<16x1xf32>
    %622 = arith.mulf %613, %613 : vector<16x32xf32>
    %cst_362 = arith.constant dense<0.000000e+00> : vector<16xf32>
    %623 = vector.multi_reduction <add>, %622, %cst_362 [1] : vector<16x32xf32> to vector<16xf32>
    %624 = vector.shape_cast %623 : vector<16xf32> to vector<16x1xf32>
    %cst_363 = arith.constant 3.200000e+01 : f32
    %625 = vector.broadcast %cst_363 : f32 to vector<16x1xf32>
    %626 = arith.divf %624, %625 : vector<16x1xf32>
    %627 = arith.mulf %621, %621 : vector<16x1xf32>
    %628 = arith.subf %626, %627 : vector<16x1xf32>
    %cst_364 = arith.constant 0.000000e+00 : f32
    %629 = vector.broadcast %cst_364 : f32 to vector<16x1xf32>
    %630 = arith.maximumf %628, %629 : vector<16x1xf32>
    %631 = vector.broadcast %621 : vector<16x1xf32> to vector<16x32xf32>
    %632 = arith.subf %613, %631 : vector<16x32xf32>
    %cst_365 = arith.constant 9.99999974E-6 : f32
    %633 = vector.broadcast %cst_365 : f32 to vector<16x1xf32>
    %634 = arith.addf %630, %633 : vector<16x1xf32>
    %635 = math.rsqrt %634 : vector<16x1xf32>
    %636 = vector.broadcast %635 : vector<16x1xf32> to vector<16x32xf32>
    %637 = arith.mulf %632, %636 : vector<16x32xf32>
    %638 = vector.broadcast %615 : vector<1x32xf32> to vector<16x32xf32>
    %639 = arith.mulf %637, %638 : vector<16x32xf32>
    %640 = vector.broadcast %617 : vector<1x32xf32> to vector<16x32xf32>
    %641 = arith.addf %639, %640 : vector<16x32xf32>
    %c1_366 = arith.constant 1 : index
    %c0_367 = arith.constant 0 : index
    %c0_368 = arith.constant 0 : index
    %642 = vector.load %arg41[%c1_366, %c0_367, %c0_368] : memref<2x32x64xbf16, #tpu.memory_space<vmem>>, vector<1x32x64xbf16>
    %643 = vector.shape_cast %642 : vector<1x32x64xbf16> to vector<32x64xbf16>
    %c1_369 = arith.constant 1 : index
    %c0_370 = arith.constant 0 : index
    %c0_371 = arith.constant 0 : index
    %644 = vector.load %arg42[%c1_369, %c0_370, %c0_371] : memref<2x1x64xf32, #tpu.memory_space<vmem>>, vector<1x1x64xf32>
    %645 = vector.shape_cast %644 : vector<1x1x64xf32> to vector<1x64xf32>
    %c1_372 = arith.constant 1 : index
    %c0_373 = arith.constant 0 : index
    %c0_374 = arith.constant 0 : index
    %646 = vector.load %arg43[%c1_372, %c0_373, %c0_374] : memref<2x64x32xbf16, #tpu.memory_space<vmem>>, vector<1x64x32xbf16>
    %647 = vector.shape_cast %646 : vector<1x64x32xbf16> to vector<64x32xbf16>
    %c1_375 = arith.constant 1 : index
    %c0_376 = arith.constant 0 : index
    %c0_377 = arith.constant 0 : index
    %648 = vector.load %arg44[%c1_375, %c0_376, %c0_377] : memref<2x1x32xf32, #tpu.memory_space<vmem>>, vector<1x1x32xf32>
    %649 = vector.shape_cast %648 : vector<1x1x32xf32> to vector<1x32xf32>
    %650 = arith.truncf %641 : vector<16x32xf32> to vector<16x32xbf16>
    %cst_378 = arith.constant dense<0.000000e+00> : vector<16x64xf32>
    %651 = tpu.matmul %650, %643, %cst_378 {dimension_numbers = #tpu.dot_dimension_numbers<[1], [0], [0], [1], [0, 0, 1, 1], [], []>} : vector<16x32xbf16>, vector<32x64xbf16>, vector<16x64xf32> -> vector<16x64xf32>
    %652 = vector.broadcast %645 : vector<1x64xf32> to vector<16x64xf32>
    %653 = arith.addf %651, %652 : vector<16x64xf32>
    %cst_379 = arith.constant 0.000000e+00 : f32
    %654 = vector.broadcast %cst_379 : f32 to vector<16x64xf32>
    %655 = arith.maximumf %653, %654 : vector<16x64xf32>
    %656 = arith.truncf %655 : vector<16x64xf32> to vector<16x64xbf16>
    %cst_380 = arith.constant dense<0.000000e+00> : vector<16x32xf32>
    %657 = tpu.matmul %656, %647, %cst_380 {dimension_numbers = #tpu.dot_dimension_numbers<[1], [0], [0], [1], [0, 0, 1, 1], [], []>} : vector<16x64xbf16>, vector<64x32xbf16>, vector<16x32xf32> -> vector<16x32xf32>
    %658 = vector.broadcast %649 : vector<1x32xf32> to vector<16x32xf32>
    %659 = arith.addf %657, %658 : vector<16x32xf32>
    %660 = arith.addf %641, %659 : vector<16x32xf32>
    %c1_381 = arith.constant 1 : index
    %c0_382 = arith.constant 0 : index
    %c0_383 = arith.constant 0 : index
    %661 = vector.load %arg49[%c1_381, %c0_382, %c0_383] : memref<2x1x32xf32, #tpu.memory_space<vmem>>, vector<1x1x32xf32>
    %662 = vector.shape_cast %661 : vector<1x1x32xf32> to vector<1x32xf32>
    %c1_384 = arith.constant 1 : index
    %c0_385 = arith.constant 0 : index
    %c0_386 = arith.constant 0 : index
    %663 = vector.load %arg50[%c1_384, %c0_385, %c0_386] : memref<2x1x32xf32, #tpu.memory_space<vmem>>, vector<1x1x32xf32>
    %664 = vector.shape_cast %663 : vector<1x1x32xf32> to vector<1x32xf32>
    %cst_387 = arith.constant dense<0.000000e+00> : vector<16xf32>
    %665 = vector.multi_reduction <add>, %660, %cst_387 [1] : vector<16x32xf32> to vector<16xf32>
    %666 = vector.shape_cast %665 : vector<16xf32> to vector<16x1xf32>
    %cst_388 = arith.constant 3.200000e+01 : f32
    %667 = vector.broadcast %cst_388 : f32 to vector<16x1xf32>
    %668 = arith.divf %666, %667 : vector<16x1xf32>
    %669 = arith.mulf %660, %660 : vector<16x32xf32>
    %cst_389 = arith.constant dense<0.000000e+00> : vector<16xf32>
    %670 = vector.multi_reduction <add>, %669, %cst_389 [1] : vector<16x32xf32> to vector<16xf32>
    %671 = vector.shape_cast %670 : vector<16xf32> to vector<16x1xf32>
    %cst_390 = arith.constant 3.200000e+01 : f32
    %672 = vector.broadcast %cst_390 : f32 to vector<16x1xf32>
    %673 = arith.divf %671, %672 : vector<16x1xf32>
    %674 = arith.mulf %668, %668 : vector<16x1xf32>
    %675 = arith.subf %673, %674 : vector<16x1xf32>
    %cst_391 = arith.constant 0.000000e+00 : f32
    %676 = vector.broadcast %cst_391 : f32 to vector<16x1xf32>
    %677 = arith.maximumf %675, %676 : vector<16x1xf32>
    %678 = vector.broadcast %668 : vector<16x1xf32> to vector<16x32xf32>
    %679 = arith.subf %660, %678 : vector<16x32xf32>
    %cst_392 = arith.constant 9.99999974E-6 : f32
    %680 = vector.broadcast %cst_392 : f32 to vector<16x1xf32>
    %681 = arith.addf %677, %680 : vector<16x1xf32>
    %682 = math.rsqrt %681 : vector<16x1xf32>
    %683 = vector.broadcast %682 : vector<16x1xf32> to vector<16x32xf32>
    %684 = arith.mulf %679, %683 : vector<16x32xf32>
    %685 = vector.broadcast %662 : vector<1x32xf32> to vector<16x32xf32>
    %686 = arith.mulf %684, %685 : vector<16x32xf32>
    %687 = vector.broadcast %664 : vector<1x32xf32> to vector<16x32xf32>
    %688 = arith.addf %686, %687 : vector<16x32xf32>
    %c0_393 = arith.constant 0 : index
    %c0_394 = arith.constant 0 : index
    %689 = vector.load %arg51[%c0_393, %c0_394] : memref<1x32xf32, #tpu.memory_space<vmem>>, vector<1x32xf32>
    %c0_395 = arith.constant 0 : index
    %c0_396 = arith.constant 0 : index
    %690 = vector.load %arg52[%c0_395, %c0_396] : memref<1x32xf32, #tpu.memory_space<vmem>>, vector<1x32xf32>
    %cst_397 = arith.constant dense<0.000000e+00> : vector<16xf32>
    %691 = vector.multi_reduction <add>, %688, %cst_397 [1] : vector<16x32xf32> to vector<16xf32>
    %692 = vector.shape_cast %691 : vector<16xf32> to vector<16x1xf32>
    %cst_398 = arith.constant 3.200000e+01 : f32
    %693 = vector.broadcast %cst_398 : f32 to vector<16x1xf32>
    %694 = arith.divf %692, %693 : vector<16x1xf32>
    %695 = arith.mulf %688, %688 : vector<16x32xf32>
    %cst_399 = arith.constant dense<0.000000e+00> : vector<16xf32>
    %696 = vector.multi_reduction <add>, %695, %cst_399 [1] : vector<16x32xf32> to vector<16xf32>
    %697 = vector.shape_cast %696 : vector<16xf32> to vector<16x1xf32>
    %cst_400 = arith.constant 3.200000e+01 : f32
    %698 = vector.broadcast %cst_400 : f32 to vector<16x1xf32>
    %699 = arith.divf %697, %698 : vector<16x1xf32>
    %700 = arith.mulf %694, %694 : vector<16x1xf32>
    %701 = arith.subf %699, %700 : vector<16x1xf32>
    %cst_401 = arith.constant 0.000000e+00 : f32
    %702 = vector.broadcast %cst_401 : f32 to vector<16x1xf32>
    %703 = arith.maximumf %701, %702 : vector<16x1xf32>
    %704 = vector.broadcast %694 : vector<16x1xf32> to vector<16x32xf32>
    %705 = arith.subf %688, %704 : vector<16x32xf32>
    %cst_402 = arith.constant 9.99999974E-6 : f32
    %706 = vector.broadcast %cst_402 : f32 to vector<16x1xf32>
    %707 = arith.addf %703, %706 : vector<16x1xf32>
    %708 = math.rsqrt %707 : vector<16x1xf32>
    %709 = vector.broadcast %708 : vector<16x1xf32> to vector<16x32xf32>
    %710 = arith.mulf %705, %709 : vector<16x32xf32>
    %711 = vector.broadcast %689 : vector<1x32xf32> to vector<16x32xf32>
    %712 = arith.mulf %710, %711 : vector<16x32xf32>
    %713 = vector.broadcast %690 : vector<1x32xf32> to vector<16x32xf32>
    %714 = arith.addf %712, %713 : vector<16x32xf32>
    %715 = arith.truncf %714 : vector<16x32xf32> to vector<16x32xbf16>
    %c0_403 = arith.constant 0 : index
    %c0_404 = arith.constant 0 : index
    %716 = vector.load %arg53[%c0_403, %c0_404] : memref<32x128xbf16, #tpu.memory_space<vmem>>, vector<32x128xbf16>
    %cst_405 = arith.constant dense<0.000000e+00> : vector<16x128xf32>
    %717 = tpu.matmul %715, %716, %cst_405 {dimension_numbers = #tpu.dot_dimension_numbers<[1], [0], [0], [1], [0, 0, 1, 1], [], []>} : vector<16x32xbf16>, vector<32x128xbf16>, vector<16x128xf32> -> vector<16x128xf32>
    %c0_406 = arith.constant 0 : index
    %c0_407 = arith.constant 0 : index
    %718 = vector.load %arg54[%c0_406, %c0_407] : memref<1x128xf32, #tpu.memory_space<vmem>>, vector<1x128xf32>
    %719 = vector.broadcast %718 : vector<1x128xf32> to vector<16x128xf32>
    %720 = arith.addf %717, %719 : vector<16x128xf32>
    %c0_408 = arith.constant 0 : index
    %c0_409 = arith.constant 0 : index
    %721 = vector.load %arg55[%c0_408, %c0_409] : memref<16x128xf32, #tpu.memory_space<vmem>>, vector<16x128xf32>
    tpu.vector_store %arg55[%c0_408, %c0_409], %720 {strides = array<i32>} : memref<16x128xf32, #tpu.memory_space<vmem>>, vector<16x128xf32>,
    return
  }
}

</mosaic_0001>

<bundles_post_ra>
// kernel: model_forward.1
= control target key start
LH: loop header
LB: loop body
LE: loop exit
PB: predicated region body
PF: predicated region fallthrough
CT: control target
= control target key end

     0   :  { %s6327_s6 = smov 1   ;;  %s6328_s10 = smov 2   ;;  %s7496_s0 = inlined_call_operand.smem [shape: u32[56], index: -1, kind: input, shape index: {}] }
   0x1   :  { %s6405_s5 = sld [smem:[%s7496_s0]]   ;;  %s6329_s14 = smov 3  }
   0x2   :  { %s6410_s9 = sld [smem:[%s7496_s0 + %s6327_s6]]   ;;  %s6330_s18 = smov 4  }
   0x3   :  { %s6415_s13 = sld [smem:[%s7496_s0 + %s6328_s10]]   ;;  %s6331_s22 = smov 5  }
   0x4   :  { %s6420_s17 = sld [smem:[%s7496_s0 + %s6329_s14]]   ;;  %s6332_s26 = smov 6  }
   0x5   :  { %s6425_s21 = sld [smem:[%s7496_s0 + %s6330_s18]]   ;;  %s6333_s30 = smov 7  }
   0x6   :  { %s6430_s25 = sld [smem:[%s7496_s0 + %s6331_s22]]   ;;  %s6334_s4 = smov 8  }
   0x7   :  { %s6435_s29 = sld [smem:[%s7496_s0 + %s6332_s26]]   ;;  %s6335_s10 = smov 9  }
   0x8   :  { %7535 = sst [smem:[#allocation25_spill]] %s6410_s9  ;;  %s6336_s15 = smov 10  }
   0x9   :  { %7536 = sst [smem:[#allocation26_spill]] %s6415_s13  ;;  %s6337_s20 = smov 11  }
   0xa   :  { %7537 = sst [smem:[#allocation27_spill]] %s6420_s17  ;;  %s6338_s26 = smov 12  }
   0xb   :  { %7538 = sst [smem:[#allocation28_spill]] %s6425_s21  ;;  %s6339_s1 = smov 13  }
   0xc   :  { %7539 = sst [smem:[#allocation29_spill]] %s6430_s25  ;;  %s6340_s7 = smov 14  }
   0xd   :  { %7540 = sst [smem:[#allocation30_spill]] %s6435_s29  ;;  %s6342_s22 = smov 16  }
   0xe   :  { %s6440_s3 = sld [smem:[%s7496_s0 + %s6333_s30]]   ;;  %s6343_s28 = smov 17  }
   0xf   :  { %s6445_s8 = sld [smem:[%s7496_s0 + %s6334_s4]]  }
  0x10   :  { %s6450_s14 = sld [smem:[%s7496_s0 + %s6335_s10]]  }
  0x11   :  { %s6455_s19 = sld [smem:[%s7496_s0 + %s6336_s15]]   ;;  %s6341_s15 = smov 15  }
  0x12   :  { %s6460_s24 = sld [smem:[%s7496_s0 + %s6337_s20]]  }
  0x13   :  { %s6465_s30 = sld [smem:[%s7496_s0 + %s6338_s26]]  }
  0x14   :  { %s6470_s6 = sld [smem:[%s7496_s0 + %s6339_s1]]  }
  0x15   :  { %s6475_s12 = sld [smem:[%s7496_s0 + %s6340_s7]]   ;;  %s6344_s7 = smov 18  }
  0x16   :  { %s6480_s20 = sld [smem:[%s7496_s0 + %s6341_s15]]   ;;  %s6345_s15 = smov 19  }
  0x17   :  { %s6485_s27 = sld [smem:[%s7496_s0 + %s6342_s22]]   ;;  %s6346_s22 = smov 20  }
  0x18   :  { %7541 = sst [smem:[#allocation31_spill]] %s6460_s24 }
  0x19   :  { %7542 = sst [smem:[#allocation32_spill]] %s6465_s30 }
  0x1a   :  { %7543 = sst [smem:[#allocation33_spill]] %s6470_s6 }
  0x1b   :  { %7544 = sst [smem:[#allocation34_spill]] %s6475_s12 }
  0x1c   :  { %7545 = sst [smem:[#allocation35_spill]] %s6480_s20 }
  0x1d   :  { %7546 = sst [smem:[#allocation36_spill]] %s6485_s27 }
  0x1e   :  { %s6490_s4 = sld [smem:[%s7496_s0 + %s6343_s28]]   ;;  %s6347_s28 = smov 21  }
  0x1f   :  { %s6495_s21 = sld [smem:[%s7496_s0 + %s6344_s7]]   ;;  %s6348_s7 = smov 22  }
  0x20   :  { %s6500_s17 = sld [smem:[%s7496_s0 + %s6345_s15]]   ;;  %s6349_s15 = smov 23  }
  0x21   :  { %s6505_s9 = sld [smem:[%s7496_s0 + %s6346_s22]]   ;;  %s6350_s22 = smov 24  }
  0x22   :  { %s6510_s27 = sld [smem:[%s7496_s0 + %s6347_s28]]   ;;  %s6351_s28 = smov 25  }
  0x24   :  { %7547 = sst [smem:[#allocation37_spill]] %s6490_s4 }
  0x25   :  { %7548 = sst [smem:[#allocation38_spill]] %s6495_s21 }
  0x26   :  { %7549 = sst [smem:[#allocation39_spill]] %s6500_s17 }
  0x27   :  { %7550 = sst [smem:[#allocation40_spill]] %s6505_s9 }
  0x28   :  { %7551 = sst [smem:[#allocation41_spill]] %s6510_s27 }
  0x29   :  { %s6515_s21 = sld [smem:[%s7496_s0 + %s6348_s7]]   ;;  %s6352_s7 = smov 26  }
  0x2a   :  { %s6520_s17 = sld [smem:[%s7496_s0 + %s6349_s15]]   ;;  %s6353_s15 = smov 27  }
  0x2b   :  { %s6525_s9 = sld [smem:[%s7496_s0 + %s6350_s22]]   ;;  %s6354_s22 = smov 28  }
  0x2c   :  { %s6530_s27 = sld [smem:[%s7496_s0 + %s6351_s28]]   ;;  %s6355_s28 = smov 29  }
  0x2d   :  { %s6540_s4 = sld [smem:[%s7496_s0 + %s6353_s15]]   ;;  %s6357_s15 = smov 31  }
  0x2e   :  { %s6545_s20 = sld [smem:[%s7496_s0 + %s6354_s22]]   ;;  %s6358_s22 = smov 32  }
  0x2f   :  { %7552 = sst [smem:[#allocation42_spill]] %s6515_s21 }
  0x30   :  { %s6535_s21 = sld [smem:[%s7496_s0 + %s6352_s7]]   ;;  %s6356_s7 = smov 30  }
  0x32   :  { %7553 = sst [smem:[#allocation43_spill]] %s6530_s27 }
  0x33   :  { %7555 = sst [smem:[#allocation45_spill]] %s6540_s4 }
  0x34   :  { %7556 = sst [smem:[#allocation46_spill]] %s6545_s20 }
  0x35   :  { %s6550_s27 = sld [smem:[%s7496_s0 + %s6355_s28]]   ;;  %s6359_s28 = smov 33  }
  0x36   :  { %7554 = sst [smem:[#allocation44_spill]] %s6535_s21 }
  0x37   :  { %s6555_s21 = sld [smem:[%s7496_s0 + %s6356_s7]]   ;;  %s6360_s7 = smov 34  }
  0x38   :  { %s6560_s4 = sld [smem:[%s7496_s0 + %s6357_s15]]   ;;  %s6361_s15 = smov 35  }
  0x39   :  { %s6565_s20 = sld [smem:[%s7496_s0 + %s6358_s22]]   ;;  %s6362_s22 = smov 36  }
  0x3b   :  { %7557 = sst [smem:[#allocation47_spill]] %s6550_s27 }
  0x3c   :  { %s6570_s27 = sld [smem:[%s7496_s0 + %s6359_s28]]   ;;  %s6363_s28 = smov 37  }
  0x3d   :  { %7558 = sst [smem:[#allocation48_spill]] %s6555_s21 }
  0x3e   :  { %7559 = sst [smem:[#allocation49_spill]] %s6560_s4 }
  0x3f   :  { %7560 = sst [smem:[#allocation50_spill]] %s6565_s20 }
  0x40   :  { %s6575_s21 = sld [smem:[%s7496_s0 + %s6360_s7]]   ;;  %s6364_s7 = smov 38  }
  0x41   :  { %s6580_s4 = sld [smem:[%s7496_s0 + %s6361_s15]]   ;;  %s6365_s15 = smov 39  }
  0x42   :  { %7561 = sst [smem:[#allocation51_spill]] %s6570_s27 }
  0x43   :  { %s6585_s20 = sld [smem:[%s7496_s0 + %s6362_s22]]   ;;  %s6366_s22 = smov 40  }
  0x44   :  { %s6590_s27 = sld [smem:[%s7496_s0 + %s6363_s28]]   ;;  %s6367_s28 = smov 41  }
  0x46   :  { %7562 = sst [smem:[#allocation52_spill]] %s6575_s21 }
  0x47   :  { %7563 = sst [smem:[#allocation53_spill]] %s6580_s4 }
  0x48   :  { %s6595_s21 = sld [smem:[%s7496_s0 + %s6364_s7]]   ;;  %s6368_s7 = smov 42  }
  0x49   :  { %7564 = sst [smem:[#allocation54_spill]] %s6585_s20 }
  0x4a   :  { %7565 = sst [smem:[#allocation55_spill]] %s6590_s27 }
  0x4b   :  { %s6600_s4 = sld [smem:[%s7496_s0 + %s6365_s15]]   ;;  %s6369_s15 = smov 43  }
  0x4c   :  { %s6605_s20 = sld [smem:[%s7496_s0 + %s6366_s22]]   ;;  %s6370_s22 = smov 44  }
  0x4d   :  { %s6610_s27 = sld [smem:[%s7496_s0 + %s6367_s28]]   ;;  %s6371_s28 = smov 45  }
  0x4e   :  { %7566 = sst [smem:[#allocation56_spill]] %s6595_s21 }
  0x4f   :  { %s6615_s21 = sld [smem:[%s7496_s0 + %s6368_s7]]   ;;  %s6372_s7 = smov 46  }
  0x51   :  { %7567 = sst [smem:[#allocation57_spill]] %s6600_s4 }
  0x52   :  { %7568 = sst [smem:[#allocation58_spill]] %s6605_s20 }
  0x53   :  { %7569 = sst [smem:[#allocation59_spill]] %s6610_s27 }
  0x54   :  { %s6620_s4 = sld [smem:[%s7496_s0 + %s6369_s15]]   ;;  %s6373_s15 = smov 47  }
  0x55   :  { %7570 = sst [smem:[#allocation60_spill]] %s6615_s21 }
  0x56   :  { %s6625_s20 = sld [smem:[%s7496_s0 + %s6370_s22]]   ;;  %s6374_s22 = smov 48  }
  0x57   :  { %s6630_s27 = sld [smem:[%s7496_s0 + %s6371_s28]]   ;;  %s6375_s28 = smov 49  }
  0x58   :  { %s6635_s21 = sld [smem:[%s7496_s0 + %s6372_s7]]   ;;  %s6376_s7 = smov 50  }
  0x59   :  { %s6650_s12 = sld [smem:[%s7496_s0 + %s6375_s28]]   ;;  %s6379_s28 = smov 53  }
  0x5a   :  { %7571 = sst [smem:[#allocation61_spill]] %s6620_s4 }
  0x5b   :  { %s6640_s4 = sld [smem:[%s7496_s0 + %s6373_s15]]   ;;  %s6377_s15 = smov 51  }
  0x5c   :  { %7572 = sst [smem:[#allocation62_spill]] %s6625_s20 }
  0x5d   :  { %s6645_s20 = sld [smem:[%s7496_s0 + %s6374_s22]]   ;;  %s6378_s22 = smov 52  }
  0x5e   :  { %s6655_s6 = sld [smem:[%s7496_s0 + %s6376_s7]]   ;;  %s6380_s7 = smov 54  }
  0x5f   :  { %s6660_s30 = sld [smem:[%s7496_s0 + %s6377_s15]]   ;;  %s6381_s15 = smov 55  }
  0x60   :  { %s6665_s29 = sld [smem:[%s7496_s0 + %s6378_s22]]  }
  0x61   :  { %s6670_s13 = sld [smem:[%s7496_s0 + %s6379_s28]]  }
  0x62   :  { %s6675_s24 = sld [smem:[%s7496_s0 + %s6380_s7]]  }
  0x63   :  { %s6680_s25 = sld [smem:[%s7496_s0 + %s6381_s15]]  }
  0x64   :  { %116 = vsyncpa [#allocation3], 0 }
  0x65   :  { %117 = vsyncpa [#allocation5], 0 }
  0x66   :  { %118 = vsyncpa [#allocation8], 0 }
  0x67   :  { %119 = vsyncpa [#allocation11], 0 }
  0x68   :  { %120 = vsyncpa [#allocation14], 0 }
  0x69   :  { %121 = vsyncpa [#allocation17], 0  ;;  %s6382_s22 = smov [#allocation4]   ;;  %s6073_s26 = scalar_lea.hbm %s6525_s9, 16 }
  0x6a   :  { %s184_s23 = sshll.u32 %s6382_s22, 4  ;;  %p6074_p0 = scmp.ne.s32.totalorder %s6525_s9, %s6073_s26  ;;  %s185_s23 = int_to_ptr.vmem [resolvable:$true] %s184_s23 }
  0x6b   :  { %p6077_p1 = scmp.lt.u32.totalorder %s6073_s26, %s6525_s9 }
  0x6d   :  { %p6079_p2 = pnand %p6077_p1, %p6074_p0 }
  0x6f   :  { %6082 = shalt.err (!%p6079_p2)
}
  0x70   :  { %s6083_s28 = scalar_lea.vmem %s185_s23, 16  ;;  %s6087_s0 = scalar_lea.vmem %s185_s23, 32 }
  0x71   :  { %p6084_p3 = scmp.ne.s32.totalorder %s185_s23, %s6083_s28  ;;  %p6088_p4 = scmp.lt.s32.totalorder %s185_s23, %s185_s23 }
  0x72   :  { %p6089_p5 = scmp.lt.s32.totalorder %s6087_s0, %s6083_s28 }
  0x74   :  { %p6090_p6 = por %p6089_p5, %p6088_p4 }
  0x76   :  { %p6091_p7 = pnand %p6090_p6, %p6084_p3 }
  0x78   :  { %6094 = shalt.err (!%p6091_p7)
}
  0x79   :  { %187 = dma.hbm_to_vmem [thread:$0]  %s6525_s9, 16, %s185_s23, [#allocation5]  }
  0x7a   :  { %s6383_s1 = smov [#allocation7]   ;;  %s6384_s7 = smov [#allocation10]  }
  0x7b   :  { %s245_s2 = sshll.u32 %s6383_s1, 4  ;;  %s269_s10 = sshll.u32 %s6384_s7, 4  ;;  %s246_s2 = int_to_ptr.vmem [resolvable:$true] %s245_s2  ;;  %s270_s10 = int_to_ptr.vmem [resolvable:$true] %s269_s10 }
  0x7c   :  { %s6095_s11 = scalar_lea.hbm %s6635_s21, 32 }
  0x7d   :  { %p6096_p8 = scmp.ne.s32.totalorder %s6635_s21, %s6095_s11  ;;  %p6099_p9 = scmp.lt.u32.totalorder %s6095_s11, %s6635_s21 }
  0x7f   :  { %p6101_p10 = pnand %p6099_p9, %p6096_p8 }
  0x81   :  { %6104 = shalt.err (!%p6101_p10)
}
  0x82   :  { %s6105_s15 = scalar_lea.vmem %s246_s2, 32  ;;  %p6110_p12 = scmp.lt.s32.totalorder %s246_s2, %s246_s2 }
  0x83   :  { %p6106_p11 = scmp.ne.s32.totalorder %s246_s2, %s6105_s15  ;;  %p6111_p13 = scmp.lt.s32.totalorder %s6105_s15, %s6105_s15 }
  0x85   :  { %p6112_p0 = por %p6111_p13, %p6110_p12 }
  0x87   :  { %p6113_p1 = pnand %p6112_p0, %p6106_p11 }
  0x89   :  { %6116 = shalt.err (!%p6113_p1)
}
  0x8a   :  { %s6385_s16 = smov 16   ;;  %s6386_s9 = smov 1  }
  0x8b   :  { %251 = dma.hbm_to_vmem [thread:$0]  %s6635_s21, 32, %s246_s2, [#allocation8], %s6385_s16, %s6385_s16, %s6386_s9  }
  0x8c   :  { %s6117_s18 = scalar_lea.hbm %s6645_s20, 32 }
  0x8d   :  { %p6118_p2 = scmp.ne.s32.totalorder %s6645_s20, %s6117_s18  ;;  %p6121_p3 = scmp.lt.u32.totalorder %s6117_s18, %s6645_s20 }
  0x8f   :  { %p6123_p4 = pnand %p6121_p3, %p6118_p2 }
  0x91   :  { %6126 = shalt.err (!%p6123_p4)
}
  0x92   :  { %s6127_s22 = scalar_lea.vmem %s270_s10, 32  ;;  %p6132_p6 = scmp.lt.s32.totalorder %s270_s10, %s270_s10 }
  0x93   :  { %p6128_p5 = scmp.ne.s32.totalorder %s270_s10, %s6127_s22  ;;  %p6133_p7 = scmp.lt.s32.totalorder %s6127_s22, %s6127_s22 }
  0x95   :  { %p6134_p8 = por %p6133_p7, %p6132_p6 }
  0x97   :  { %p6135_p9 = pnand %p6134_p8, %p6128_p5 }
  0x99   :  { %6138 = shalt.err (!%p6135_p9)
}
  0x9a   :  { %275 = dma.hbm_to_vmem [thread:$0]  %s6645_s20, 32, %s270_s10, [#allocation11], %s6385_s16, %s6385_s16, %s6386_s9  }
  0x9b   :  { %s6387_s21 = smov [#allocation13]   ;;  %s6388_s26 = smov [#allocation16]  }
  0x9c   :  { %s293_s23 = sshll.u32 %s6387_s21, 4  ;;  %s316_s28 = sshll.u32 %s6388_s26, 4  ;;  %s294_s23 = int_to_ptr.vmem [resolvable:$true] %s293_s23  ;;  %s317_s28 = int_to_ptr.vmem [resolvable:$true] %s316_s28 }
  0x9d   :  { %s6139_s0 = scalar_lea.hbm %s6655_s6, 32 }
  0x9e   :  { %p6140_p10 = scmp.ne.s32.totalorder %s6655_s6, %s6139_s0  ;;  %p6143_p11 = scmp.lt.u32.totalorder %s6139_s0, %s6655_s6 }
  0xa0   :  { %p6145_p12 = pnand %p6143_p11, %p6140_p10 }
  0xa2   :  { %6148 = shalt.err (!%p6145_p12)
}
  0xa3   :  { %s6149_s1 = scalar_lea.vmem %s294_s23, 32  ;;  %p6154_p0 = scmp.lt.s32.totalorder %s294_s23, %s294_s23 }
  0xa4   :  { %p6150_p13 = scmp.ne.s32.totalorder %s294_s23, %s6149_s1  ;;  %p6155_p1 = scmp.lt.s32.totalorder %s6149_s1, %s6149_s1 }
  0xa6   :  { %p6156_p2 = por %p6155_p1, %p6154_p0 }
  0xa8   :  { %p6157_p3 = pnand %p6156_p2, %p6150_p13 }
  0xaa   :  { %6160 = shalt.err (!%p6157_p3)
}
  0xab   :  { %299 = dma.hbm_to_vmem [thread:$0]  %s6655_s6, 32, %s294_s23, [#allocation14], %s6385_s16, %s6385_s16, %s6386_s9  }
  0xac   :  { %s6161_s20 = scalar_lea.hbm %s6665_s29, 16 }
  0xad   :  { %p6162_p4 = scmp.ne.s32.totalorder %s6665_s29, %s6161_s20  ;;  %p6165_p5 = scmp.lt.u32.totalorder %s6161_s20, %s6665_s29 }
  0xaf   :  { %p6167_p6 = pnand %p6165_p5, %p6162_p4 }
  0xb1   :  { %6170 = shalt.err (!%p6167_p6)
}
  0xb2   :  { %s6171_s2 = scalar_lea.vmem %s317_s28, 16  ;;  %s6175_s7 = scalar_lea.vmem %s317_s28, 32 }
  0xb3   :  { %p6172_p7 = scmp.ne.s32.totalorder %s317_s28, %s6171_s2  ;;  %p6176_p8 = scmp.lt.s32.totalorder %s317_s28, %s317_s28 }
  0xb4   :  { %p6177_p9 = scmp.lt.s32.totalorder %s6175_s7, %s6171_s2 }
  0xb6   :  { %p6178_p10 = por %p6177_p9, %p6176_p8 }
  0xb8   :  { %p6179_p11 = pnand %p6178_p10, %p6172_p7 }
  0xba   :  { %6182 = shalt.err (!%p6179_p11)
}
  0xbb   :  { %319 = dma.hbm_to_vmem [thread:$0]  %s6665_s29, 16, %s317_s28, [#allocation17]  }
  0xbc   :  { %s6389_s6 = smov [#allocation2]   ;;  %s6390_s11 = smov [#allocation6]  }
  0xbd   :  { %s174_s10 = sshll.u32 %s6389_s6, 4  ;;  %s233_s15 = sshll.u32 %s6390_s11, 4  ;;  %s175_s10 = int_to_ptr.vmem [resolvable:$true] %s174_s10  ;;  %s234_s15 = int_to_ptr.vmem [resolvable:$true] %s233_s15 }
  0xbe   :  { %s6183_s18 = scalar_lea.hbm %s6520_s17, 16 }
  0xbf   :  { %p6184_p12 = scmp.ne.s32.totalorder %s6520_s17, %s6183_s18  ;;  %p6187_p13 = scmp.lt.u32.totalorder %s6183_s18, %s6520_s17 }
  0xc1   :  { %p6189_p0 = pnand %p6187_p13, %p6184_p12 }
  0xc3   :  { %6192 = shalt.err (!%p6189_p0)
}
  0xc4   :  { %s6193_s22 = scalar_lea.vmem %s175_s10, 16  ;;  %s6197_s21 = scalar_lea.vmem %s175_s10, 32 }
  0xc5   :  { %p6194_p1 = scmp.ne.s32.totalorder %s175_s10, %s6193_s22  ;;  %p6198_p2 = scmp.lt.s32.totalorder %s175_s10, %s175_s10 }
  0xc6   :  { %p6199_p3 = scmp.lt.s32.totalorder %s6197_s21, %s6193_s22 }
  0xc8   :  { %p6200_p4 = por %p6199_p3, %p6198_p2 }
  0xca   :  { %p6201_p5 = pnand %p6200_p4, %p6194_p1 }
  0xcc   :  { %6204 = shalt.err (!%p6201_p5)
}
  0xcd   :  { %177 = dma.hbm_to_vmem [thread:$0]  %s6520_s17, 16, %s175_s10, [#allocation3]  }
  0xce   :  { %s6205_s29 = scalar_lea.hbm %s6630_s27, 32 }
  0xcf   :  { %p6206_p6 = scmp.ne.s32.totalorder %s6630_s27, %s6205_s29  ;;  %p6209_p7 = scmp.lt.u32.totalorder %s6205_s29, %s6630_s27 }
  0xd1   :  { %p6211_p8 = pnand %p6209_p7, %p6206_p6 }
  0xd3   :  { %6214 = shalt.err (!%p6211_p8)
}
  0xd4   :  { %s6215_s23 = scalar_lea.vmem %s234_s15, 32  ;;  %p6220_p10 = scmp.lt.s32.totalorder %s234_s15, %s234_s15 }
  0xd5   :  { %p6216_p9 = scmp.ne.s32.totalorder %s234_s15, %s6215_s23  ;;  %p6221_p11 = scmp.lt.s32.totalorder %s6215_s23, %s6215_s23 }
  0xd7   :  { %p6222_p12 = por %p6221_p11, %p6220_p10 }
  0xd9   :  { %p6223_p13 = pnand %p6222_p12, %p6216_p9 }
  0xdb   :  { %6226 = shalt.err (!%p6223_p13)
}
  0xdc   :  { %239 = dma.hbm_to_vmem [thread:$0]  %s6630_s27, 32, %s234_s15, [#allocation5], %s6385_s16, %s6385_s16, %s6386_s9  }
  0xdd   :  { %s6391_s17 = smov [#allocation9]   ;;  %s6392_s28 = smov [#allocation12]  }
  0xde   :  { %s257_s26 = sshll.u32 %s6391_s17, 4  ;;  %s281_s0 = sshll.u32 %s6392_s28, 4  ;;  %s258_s26 = int_to_ptr.vmem [resolvable:$true] %s257_s26  ;;  %s282_s0 = int_to_ptr.vmem [resolvable:$true] %s281_s0 }
  0xdf   :  { %s6227_s1 = scalar_lea.hbm %s6640_s4, 32 }
  0xe0   :  { %p6228_p0 = scmp.ne.s32.totalorder %s6640_s4, %s6227_s1  ;;  %p6231_p1 = scmp.lt.u32.totalorder %s6227_s1, %s6640_s4 }
  0xe2   :  { %p6233_p2 = pnand %p6231_p1, %p6228_p0 }
  0xe4   :  { %6236 = shalt.err (!%p6233_p2)
}
  0xe5   :  { %s6237_s20 = scalar_lea.vmem %s258_s26, 32  ;;  %p6242_p4 = scmp.lt.s32.totalorder %s258_s26, %s258_s26 }
  0xe6   :  { %p6238_p3 = scmp.ne.s32.totalorder %s258_s26, %s6237_s20  ;;  %p6243_p5 = scmp.lt.s32.totalorder %s6237_s20, %s6237_s20 }
  0xe8   :  { %p6244_p6 = por %p6243_p5, %p6242_p4 }
  0xea   :  { %p6245_p7 = pnand %p6244_p6, %p6238_p3 }
  0xec   :  { %6248 = shalt.err (!%p6245_p7)
}
  0xed   :  { %263 = dma.hbm_to_vmem [thread:$0]  %s6640_s4, 32, %s258_s26, [#allocation8], %s6385_s16, %s6385_s16, %s6386_s9  }
  0xee   :  { %s6249_s27 = scalar_lea.hbm %s6650_s12, 32 }
  0xef   :  { %p6250_p8 = scmp.ne.s32.totalorder %s6650_s12, %s6249_s27  ;;  %p6253_p9 = scmp.lt.u32.totalorder %s6249_s27, %s6650_s12 }
  0xf1   :  { %p6255_p10 = pnand %p6253_p9, %p6250_p8 }
  0xf3   :  { %6258 = shalt.err (!%p6255_p10)
}
  0xf4   :  { %s6259_s2 = scalar_lea.vmem %s282_s0, 32  ;;  %p6264_p12 = scmp.lt.s32.totalorder %s282_s0, %s282_s0 }
  0xf5   :  { %p6260_p11 = scmp.ne.s32.totalorder %s282_s0, %s6259_s2  ;;  %p6265_p13 = scmp.lt.s32.totalorder %s6259_s2, %s6259_s2 }
  0xf7   :  { %p6266_p0 = por %p6265_p13, %p6264_p12 }
  0xf9   :  { %p6267_p1 = pnand %p6266_p0, %p6260_p11 }
  0xfb   :  { %6270 = shalt.err (!%p6267_p1)
}
  0xfc   :  { %287 = dma.hbm_to_vmem [thread:$0]  %s6650_s12, 32, %s282_s0, [#allocation11], %s6385_s16, %s6385_s16, %s6386_s9  }
  0xfd   :  { %s6393_s4 = smov [#allocation15]   ;;  %s6394_s6 = smov [#allocation18]  }
  0xfe   :  { %s306_s7 = sshll.u32 %s6393_s4, 4  ;;  %s328_s10 = sshll.u32 %s6394_s6, 4  ;;  %s307_s7 = int_to_ptr.vmem [resolvable:$true] %s306_s7  ;;  %s329_s10 = int_to_ptr.vmem [resolvable:$true] %s328_s10 }
  0xff   :  { %s6271_s11 = scalar_lea.hbm %s6660_s30, 16 }
 0x100   :  { %p6272_p2 = scmp.ne.s32.totalorder %s6660_s30, %s6271_s11  ;;  %p6275_p3 = scmp.lt.u32.totalorder %s6271_s11, %s6660_s30 }
 0x102   :  { %p6277_p4 = pnand %p6275_p3, %p6272_p2 }
 0x104   :  { %6280 = shalt.err (!%p6277_p4)
}
 0x105   :  { %s6281_s15 = scalar_lea.vmem %s307_s7, 16  ;;  %s6285_s18 = scalar_lea.vmem %s307_s7, 32 }
 0x106   :  { %p6282_p5 = scmp.ne.s32.totalorder %s307_s7, %s6281_s15  ;;  %p6286_p6 = scmp.lt.s32.totalorder %s307_s7, %s307_s7 }
 0x107   :  { %p6287_p7 = scmp.lt.s32.totalorder %s6285_s18, %s6281_s15 }
 0x109   :  { %p6288_p8 = por %p6287_p7, %p6286_p6 }
 0x10b   :  { %p6289_p9 = pnand %p6288_p8, %p6282_p5 }
 0x10d   :  { %6292 = shalt.err (!%p6289_p9)
}
 0x10e   :  { %309 = dma.hbm_to_vmem [thread:$0]  %s6660_s30, 16, %s307_s7, [#allocation14]  }
 0x10f   :  { %s6293_s12 = scalar_lea.hbm %s6675_s24, 16 }
 0x110   :  { %p6294_p10 = scmp.ne.s32.totalorder %s6675_s24, %s6293_s12  ;;  %p6297_p11 = scmp.lt.u32.totalorder %s6293_s12, %s6675_s24 }
 0x112   :  { %p6299_p12 = pnand %p6297_p11, %p6294_p10 }
 0x114   :  { %6302 = shalt.err (!%p6299_p12)
}
 0x115   :  { %s6303_s16 = scalar_lea.vmem %s329_s10, 16  ;;  %s6307_s9 = scalar_lea.vmem %s329_s10, 32 }
 0x116   :  { %p6304_p13 = scmp.ne.s32.totalorder %s329_s10, %s6303_s16  ;;  %p6308_p0 = scmp.lt.s32.totalorder %s329_s10, %s329_s10 }
 0x117   :  { %p6309_p1 = scmp.lt.s32.totalorder %s6307_s9, %s6303_s16 }
 0x119   :  { %p6310_p2 = por %p6309_p1, %p6308_p0 }
 0x11b   :  { %p6311_p3 = pnand %p6310_p2, %p6304_p13 }
 0x11d   :  { %6314 = shalt.err (!%p6311_p3)
}
 0x11e   :  { %331 = dma.hbm_to_vmem [thread:$0]  %s6675_s24, 16, %s329_s10, [#allocation17]  }
 0x11f   :  { %6315 = dma.done.wait [#allocation3], 16  }
 0x120   :  { %6316 = vsyncadd [#allocation3], 4294967280 }
 0x121   :  { %6317 = dma.done.wait [#allocation5], 48  }
 0x122   :  { %6318 = vsyncadd [#allocation5], 4294967248 }
 0x123   :  { %6319 = dma.done.wait [#allocation8], 64  }
 0x124   :  { %6320 = vsyncadd [#allocation8], 4294967232 }
 0x125   :  { %6321 = dma.done.wait [#allocation11], 64  }
 0x126   :  { %6322 = vsyncadd [#allocation11], 4294967232 }
 0x127   :  { %6323 = dma.done.wait [#allocation14], 48  }
 0x128   :  { %6324 = vsyncadd [#allocation14], 4294967248 }
 0x129   :  { %6325 = dma.done.wait [#allocation17], 32  }
 0x12a   :  { %6326 = vsyncadd [#allocation17], 4294967264  ;;  %v6395_v0 = vmov 0.0   ;;  %vm6396_vm0 = vmmov 0   ;;  %v5889_v1 = vld [vmem:[%s6450_s14] sm:$0xff]   ;;  %v5890_v2 = vld [vmem:[%s6450_s14 + $0x8] sm:$0xff]  }
 0x12b   :  { %5193 = vmatprep.subr.bf16.mxu1 %v6395_v0  ;;  %5197 = vmatprep.mubr.msk.bf16.mxu1 %vm6396_vm0, %v6395_v0  ;;  %v6753_v3 = vld [vmem:[%s6405_s5] sm:$0xff]  ;;  %v6756_v4 = vld [vmem:[%s6405_s5 + $0x8] sm:$0xff]  ;;  %vm429_vm1 = vcmask 261120   ;;  %s7573_s24 = sld [smem:[#allocation29_spill]]  ;;  %s7574_s5 = sld [smem:[#allocation31_spill]]  ;;  %vm683_vm2 = vcmask 523264  }
 0x12c   :  { %5185 = vmatprep.subr.bf16.mxu0 %v6395_v0  ;;  %5189 = vmatprep.mubr.msk.bf16.mxu0 %vm6396_vm0, %v6395_v0  ;;  %v5891_v5 = vld [vmem:[%s6440_s3] sm:$0xff]   ;;  %v5892_v6 = vld [vmem:[%s6440_s3 + $0x8] sm:$0xff]   ;;  %v410_v7 = vpack.c.bf16 %v6756_v4, %v6753_v3  ;;  %s7575_s30 = sld [smem:[#allocation26_spill]]  ;;  %s7576_s22 = sld [smem:[#allocation30_spill]] }
 0x12d   :  { %5194 = vmatpush3.bf16.msra.mxu1 %v5889_v1  ;;  %5186 = vmatpush3.bf16.msra.mxu0 %v5891_v5  ;;  %v4678_v8 = vld [vmem:[%s6455_s19] ss:$0 sm:$0xff]  ;;  %s7577_s21 = sld [smem:[#allocation32_spill]]  ;;  %s7578_s29 = sld [smem:[#allocation33_spill]] }
 0x12e   :  { %5195 = vmatprep.subr.bf16.mxu1 %v6395_v0  ;;  %5187 = vmatprep.subr.bf16.mxu0 %v6395_v0  ;;  %v4674_v11 = vld [vmem:[%s6445_s8] ss:$0 sm:$0xff]  ;;  %s7579_s23 = sld [smem:[#allocation34_spill]]  ;;  %s7580_s17 = sld [smem:[#allocation35_spill]] }
 0x12f   :  { %s7581_s26 = sld [smem:[#allocation37_spill]]  ;;  %s7582_s28 = sld [smem:[#allocation39_spill]] }
 0x130   :  { %s7583_s0 = sld [smem:[#allocation40_spill]]  ;;  %s7584_s1 = sld [smem:[#allocation36_spill]] }
 0x131   :  { %5196 = vmatpush3.bf16.msra.mxu1 %v5890_v2  ;;  %5188 = vmatpush3.bf16.msra.mxu0 %v5892_v6  ;;  %v6775_v16 = vld [vmem:[%s7573_s24] sm:$0xff]   ;;  %v6780_v27 = vld [vmem:[%s7573_s24 + $0x8] sm:$0xff]   ;;  %v6786_v30 = vld [vmem:[%s7573_s24 + $0x10] sm:$0xff]   ;;  %s7585_s20 = sld [smem:[#allocation38_spill]]  ;;  %s7586_s27 = sld [smem:[#allocation41_spill]] }
 0x132   :  { %5209 = vmatprep.subr.bf16.mxu1 %v6395_v0  ;;  %5201 = vmatprep.subr.bf16.mxu0 %v6395_v0  ;;  %v6792_v33 = vld [vmem:[%s7573_s24 + $0x18] sm:$0xff]   ;;  %v5897_v36 = vld [vmem:[%s7574_s5] sm:$0xff]   ;;  %v5898_v37 = vld [vmem:[%s7574_s5 + $0x8] sm:$0xff]   ;;  %s7591_s2 = sld [smem:[#allocation44_spill]]  ;;  %s7592_s4 = sld [smem:[#allocation46_spill]] }
 0x133   :  { %v6806_v38 = vld [vmem:[%s7575_s30] sm:$0xff]  ;;  %v6809_v40 = vld [vmem:[%s7575_s30 + $0x8] sm:$0xff]  ;;  %v382_v51 = vld [vmem:[%s7576_s22 + $0x10] sm:$0xff]  ;;  %s7593_s7 = sld [smem:[#allocation47_spill]]  ;;  %s7594_s6 = sld [smem:[#allocation27_spill]] }
 0x134   :  { %5198 = vmatmul.mubr.msk.bf16.vlgmr.msra.gmra.mrb[0].mxu1 %vm429_vm1, %v410_v7  ;;  %5190 = vmatmul.mubr.msk.bf16.vlgmr.msra.gmra.mrb[0].mxu0 %vm429_vm1, %v410_v7  ;;  %v380_v48 = vld [vmem:[%s7576_s22] sm:$0xff]  ;;  %v381_v49 = vld [vmem:[%s7576_s22 + $0x8] sm:$0xff]  ;;  %v383_v52 = vld [vmem:[%s7576_s22 + $0x18] sm:$0xff]  ;;  %s7595_s10 = sld [smem:[#allocation48_spill]]  ;;  %s7596_s11 = sld [smem:[#allocation49_spill]] }
 0x135   :  { %5217 = vmatprep.mubr.msk.bf16.mxu1 %vm6396_vm0, %v6395_v0  ;;  %5205 = vmatprep.mubr.msk.bf16.mxu0 %vm6396_vm0, %v6395_v0  ;;  %v6817_v50 = vpack.c.bf16 %v381_v49, %v380_v48  ;;  %v6823_v53 = vpack.c.bf16 %v383_v52, %v382_v51  ;;  %v384_v54 = vld [vmem:[%s7576_s22 + $0x20] sm:$0xff]  ;;  %v385_v55 = vld [vmem:[%s7576_s22 + $0x28] sm:$0xff]  ;;  %v386_v56 = vld [vmem:[%s7576_s22 + $0x30] sm:$0xff]  ;;  %s7597_s15 = sld [smem:[#allocation53_spill]]  ;;  %s7598_s18 = sld [smem:[#allocation50_spill]] }
 0x136   :  { %5202 = vmatpush3.bf16.msra.mxu0 %v5897_v36  ;;  %v6830_v57 = vpack.c.bf16 %v385_v55, %v384_v54  ;;  %v387_v58 = vld [vmem:[%s7576_s22 + $0x38] sm:$0xff]  ;;  %v4682_v60 = vld [vmem:[%s7577_s21] ss:$0 sm:$0xff]  ;;  %s7599_s12 = sld [smem:[#allocation54_spill]]  ;;  %s7600_s16 = sld [smem:[#allocation51_spill]] }
 0x137   :  { %5203 = vmatprep.subr.bf16.mxu0 %v6395_v0  ;;  %v6833_v59 = vpack.c.bf16 %v387_v58, %v386_v56  ;;  %v5901_v55 = vld [vmem:[%s7580_s17] sm:$0xff]   ;;  %v5902_v56 = vld [vmem:[%s7580_s17 + $0x8] sm:$0xff]   ;;  %s7601_s9 = sld [smem:[#allocation55_spill]]  ;;  %s7603_s30 = sld [smem:[#allocation56_spill]] }
 0x138   :  { %v5904_v58 = vld [vmem:[%s7581_s26 + $0x8] sm:$0xff]   ;;  %s7604_s22 = sld [smem:[#allocation28_spill]] }
 0x13a   :  { %5204 = vmatpush3.bf16.msra.mxu0 %v5898_v37  ;;  %v4694_v37 = vld [vmem:[%s7579_s23] ss:$0 sm:$0xff] }
 0x13b   :  { %5724 = vmatprep.subr.bf16.mxu0 %v6817_v50 }
 0x13d   :  { %5206 = vmatmul.mubr.msk.bf16.vlgmr.msra.gmra.mrb[4].mxu0 %vm429_vm1, %v410_v7 }
 0x13e   :  { %5726 = vmatpush3.bf16.msra.mxu0 %v6817_v50 }
 0x13f   :  { %5728 = vmatprep.subr.bf16.mxu0 %v6823_v53 }
 0x142   :  { %5730 = vmatpush3.bf16.msra.mxu0 %v6823_v53 }
 0x143   :  { %5732 = vmatprep.subr.bf16.mxu0 %v6830_v57 }
 0x146   :  { %5734 = vmatpush3.bf16.msra.mxu0 %v6830_v57 }
 0x147   :  { %5736 = vmatprep.subr.bf16.mxu0 %v6833_v59 }
 0x14a   :  { %5738 = vmatpush3.bf16.msra.mxu0 %v6833_v59 }
 0x14b   :  { %5240 = vmatprep.subr.bf16.mxu0 %v6395_v0 }
 0x207   :  { %v526_v9 = vpop.f32.mrb[0].mxu1  ;;  %v467_v17 = vpop.f32.mrb[0].mxu0 }
 0x208   :  { %v5199_v10 = vpop.f32.mrb[1].mxu1  ;;  %v527_v13 = vadd.f32 %v4678_v8, %v526_v9  ;;  %v468_v18 = vadd.f32 %v4674_v11, %v467_v17  ;;  %v5191_v19 = vpop.f32.mrb[1].mxu0 }
 0x209   :  { %v529_v12 = vpop.f32.mrb[2].mxu1  ;;  %v470_v21 = vpop.f32.mrb[2].mxu0 }
 0x20a   :  { %v530_v14 = vadd.f32 %v4678_v8, %v529_v12  ;;  %v5200_v15 = vpop.f32.mrb[3].mxu1  ;;  %v471_v22 = vadd.f32 %v4674_v11, %v470_v21  ;;  %v5192_v23 = vpop.f32.mrb[3].mxu0 }
 0x20c   :  { %v592_v20 = vpack.c.bf16 %v530_v14, %v527_v13  ;;  %v626_v25 = vpack.c.bf16 %v471_v22, %v468_v18 }
 0x20e   :  { %v617_v24 = vmul.bf16 %v6775_v16, %v592_v20  ;;  %v618_v28 = vmul.bf16 %v6780_v27, %v592_v20  ;;  %v619_v31 = vmul.bf16 %v6786_v30, %v592_v20  ;;  %v620_v34 = vmul.bf16 %v6792_v33, %v592_v20  ;;  %v5899_v20 = vld [vmem:[%s7578_s29] sm:$0xff]  }
 0x210   :  { %v631_v26 = vsel %vm429_vm1, %v617_v24, 0  ;;  %v634_v29 = vsel %vm429_vm1, %v618_v28, 0  ;;  %v637_v32 = vsel %vm429_vm1, %v619_v31, 0  ;;  %v640_v35 = vsel %vm429_vm1, %v620_v34, 0  ;;  %v585_v61 = vpop.f32.mrb[4].mxu0 }
 0x211   :  { %5210 = vmatpush3.bf16.xpose.msra.mxu1 %v631_v26  ;;  %v586_v62 = vadd.f32 %v4682_v60, %v585_v61  ;;  %v5207_v63 = vpop.f32.mrb[5].mxu0 }
 0x212   :  { %5211 = vmatprep.subr.bf16.mxu1 %v6395_v0  ;;  %v588_v1 = vpop.f32.mrb[6].mxu0 }
 0x213   :  { %v589_v2 = vadd.f32 %v4682_v60, %v588_v1  ;;  %v5208_v5 = vpop.f32.mrb[7].mxu0 }
 0x215   :  { %v621_v6 = vpack.c.bf16 %v589_v2, %v586_v62 }
 0x217   :  { %v622_v14 = vmul.bf16 %v6775_v16, %v621_v6  ;;  %v623_v17 = vmul.bf16 %v6780_v27, %v621_v6  ;;  %v624_v18 = vmul.bf16 %v6786_v30, %v621_v6  ;;  %v625_v19 = vmul.bf16 %v6792_v33, %v621_v6 }
 0x219   :  { %5212 = vmatpush3.bf16.xpose.msra.mxu1 %v634_v29  ;;  %v5900_v29 = vld [vmem:[%s7578_s29 + $0x8] sm:$0xff]  }
 0x21a   :  { %5213 = vmatprep.subr.bf16.mxu1 %v6395_v0 }
 0x221   :  { %5214 = vmatpush3.bf16.xpose.msra.mxu1 %v637_v32 }
 0x222   :  { %5215 = vmatprep.subr.bf16.mxu1 %v6395_v0 }
 0x229   :  { %5216 = vmatpush3.bf16.xpose.msra.mxu1 %v640_v35 }
 0x22a   :  { %5252 = vmatprep.subr.bf16.mxu1 %v6395_v0 }
 0x230   :  { %5218 = vmatmul.mubr.msk.bf16.vlgmr.msra.gmra.mrb[4].mxu1 %vm429_vm1, %v626_v25 }
 0x231   :  { %5256 = vmatprep.mubr.msk.bf16.mxu1 %vm6396_vm0, %v6395_v0  ;;  %5253 = vmatpush3.bf16.msra.mxu1 %v5899_v20 }
 0x232   :  { %5254 = vmatprep.subr.bf16.mxu1 %v6395_v0 }
 0x235   :  { %5255 = vmatpush3.bf16.msra.mxu1 %v5900_v29 }
 0x236   :  { %5268 = vmatprep.subr.bf16.mxu1 %v6395_v0 }
 0x303   :  { %v676_v39 = vpop.f32.mrb[4].mxu1 }
 0x304   :  { %v677_v41 = vadd.f32 %v676_v39, %v6806_v38  ;;  %v5219_v42 = vpop.f32.mrb[5].mxu1 }
 0x305   :  { %v679_v43 = vpop.f32.mrb[6].mxu1 }
 0x306   :  { %v680_v44 = vadd.f32 %v679_v43, %v6809_v40  ;;  %v5220_v45 = vpop.f32.mrb[7].mxu1  ;;  %v684_v46 = vsel %vm683_vm2, %v677_v41, -inf }
 0x307   :  { %685 = vmax.xlane.f32.xlu0 %v684_v46 }
 0x308   :  { %v687_v47 = vsel %vm683_vm2, %v680_v44, -inf }
 0x30b   :  { %688 = vmax.xlane.f32.xlu0 %v687_v47 }
 0x394   :  { %v686_v7 = vpop.xlane.xlu0 %685 }
 0x395   :  { %v690_v8 = vsub.f32 %v677_v41, %v686_v7 }
 0x397   :  { %v692_v9 = vmul.f32 1.442695, %v690_v8 }
 0x398   :  { %v689_v10 = vpop.xlane.xlu0 %688 }
 0x399   :  { %5967 = vpow2.f32 %v692_v9  ;;  %v691_v11 = vsub.f32 %v680_v44, %v689_v10 }
 0x39b   :  { %v694_v12 = vmul.f32 1.442695, %v691_v11 }
 0x39d   :  { %5969 = vpow2.f32 %v694_v12 }
 0x3a3   :  { %v5968_v13 = vpop.eup %5967 }
 0x3a4   :  { %5237 = vmatprep.mubr.msk.f32.mxu0 %vm683_vm2, %v5968_v13 }
 0x3a7   :  { %v5970_v15 = vpop.eup %5969 }
 0x3a8   :  { %5238 = vmatmul.mubr.msk.f32.vlgmr.msra.gmra.mrb[8].mxu0 %vm683_vm2, %v5970_v15 }
 0x3a9   :  { %5241 = vmatpush3.bf16.msra.mxu0 %v622_v14  ;;  %5248 = vmatprep.mubr.msk.bf16.mxu0 %vm6396_vm0, %v6395_v0 }
 0x3aa   :  { %5242 = vmatprep.subr.bf16.mxu0 %v6395_v0 }
 0x3ad   :  { %5243 = vmatpush3.bf16.msra.mxu0 %v623_v17 }
 0x3ae   :  { %5244 = vmatprep.subr.bf16.mxu0 %v6395_v0 }
 0x3b1   :  { %5245 = vmatpush3.bf16.msra.mxu0 %v624_v18 }
 0x3b2   :  { %5246 = vmatprep.subr.bf16.mxu0 %v6395_v0 }
 0x3b5   :  { %5247 = vmatpush3.bf16.msra.mxu0 %v625_v19  ;;  %v4698_v19 = vld [vmem:[%s7582_s28] ss:$0 sm:$0xff] }
 0x3b6   :  { %5260 = vmatprep.subr.bf16.mxu0 %v6395_v0 }
 0x47b   :  { %v5239_v21 = vpop.f32.mrb[8].mxu0 }
 0x47c   :  { %5971 = vrcp.f32 %v5239_v21  ;;  %v768_v22 = vpop.f32.mrb[9].mxu0 }
 0x47d   :  { %5973 = vrcp.f32 %v768_v22 }
 0x486   :  { %v5972_v23 = vpop.eup %5971 }
 0x487   :  { %v5974_v24 = vpop.eup %5973  ;;  %v780_v25 = vmul.f32 %v5972_v23, %v5970_v15 }
 0x488   :  { %v778_v26 = vmul.f32 %v5974_v24, %v5968_v13  ;;  %v4699_v24 = vld [vmem:[%s7583_s0] ss:$0 sm:$0xff] }
 0x48a   :  { %v781_v28 = vpack.c.bf16 %v780_v25, %v778_v26 }
 0x48c   :  { %5249 = vmatmul.mubr.msk.bf16.vlgmr.msra.gmra.mrb[12].mxu0 %vm683_vm2, %v781_v28 }
 0x48d   :  { %5264 = vmatprep.mubr.msk.bf16.mxu0 %vm6396_vm0, %v6395_v0  ;;  %5261 = vmatpush3.bf16.msra.mxu0 %v5901_v55 }
 0x48e   :  { %5262 = vmatprep.subr.bf16.mxu0 %v6395_v0 }
 0x491   :  { %5263 = vmatpush3.bf16.msra.mxu0 %v5902_v56 }
 0x492   :  { %5280 = vmatprep.subr.bf16.mxu0 %v6395_v0 }
 0x55f   :  { %v819_v31 = vpop.f32.mrb[12].mxu0 }
 0x560   :  { %v5250_v32 = vpop.f32.mrb[13].mxu0 }
 0x561   :  { %v822_v34 = vpop.f32.mrb[14].mxu0  ;;  %v5906_v32 = vld [vmem:[%s7581_s26 + $0x18] sm:$0xff]  }
 0x562   :  { %v826_v35 = vpack.c.bf16 %v822_v34, %v819_v31  ;;  %v5251_v36 = vpop.f32.mrb[15].mxu0  ;;  %v5905_v31 = vld [vmem:[%s7581_s26 + $0x10] sm:$0xff]   ;;  %v4700_v34 = vld [vmem:[%s7584_s1] ss:$0 sm:$0xff] }
 0x564   :  { %5257 = vmatmul.mubr.msk.bf16.vlgmr.msra.gmra.mrb[8].mxu1 %vm429_vm1, %v826_v35 }
 0x565   :  { %5276 = vmatprep.mubr.msk.bf16.mxu1 %vm6396_vm0, %v6395_v0 }
 0x637   :  { %v882_v39 = vpop.f32.mrb[8].mxu1 }
 0x638   :  { %v883_v41 = vadd.f32 %v4694_v37, %v882_v39  ;;  %v5258_v42 = vpop.f32.mrb[9].mxu1 }
 0x639   :  { %v885_v43 = vpop.f32.mrb[10].mxu1 }
 0x63a   :  { %v889_v44 = vadd.f32 %v883_v41, %v6753_v3  ;;  %v886_v45 = vadd.f32 %v4694_v37, %v885_v43  ;;  %v5259_v46 = vpop.f32.mrb[11].mxu1 }
 0x63b   :  { %v4704_v46 = vld [vmem:[%s7585_s20] ss:$0 sm:$0xff] }
 0x63c   :  { %v890_v47 = vadd.f32 %v886_v45, %v6756_v4  ;;  %v893_v48 = vsel %vm429_vm1, %v889_v44, 0.0  ;;  %v902_v49 = vmul.f32 %v889_v44, %v889_v44  ;;  %v5903_v4 = vld [vmem:[%s7581_s26] sm:$0xff]  }
 0x63d   :  { %894 = vadd.xlane.f32.xlu1 %v893_v48  ;;  %5269 = vmatpush3.bf16.msra.mxu1 %v5903_v4 }
 0x63e   :  { %v904_v51 = vsel %vm429_vm1, %v902_v49, 0.0  ;;  %v896_v52 = vsel %vm429_vm1, %v890_v47, 0.0  ;;  %v903_v54 = vmul.f32 %v890_v47, %v890_v47  ;;  %5270 = vmatprep.subr.bf16.mxu1 %v6395_v0 }
 0x63f   :  { %905 = vadd.xlane.f32.xlu0 %v904_v51 }
 0x640   :  { %v907_v3 = vsel %vm429_vm1, %v903_v54, 0.0 }
 0x641   :  { %897 = vadd.xlane.f32.xlu1 %v896_v52  ;;  %5271 = vmatpush3.bf16.msra.mxu1 %v5904_v58 }
 0x642   :  { %5272 = vmatprep.subr.bf16.mxu1 %v6395_v0 }
 0x645   :  { %908 = vadd.xlane.f32.xlu1 %v907_v3  ;;  %5273 = vmatpush3.bf16.msra.mxu1 %v5905_v31 }
 0x646   :  { %5274 = vmatprep.subr.bf16.mxu1 %v6395_v0 }
 0x649   :  { %5275 = vmatpush3.bf16.msra.mxu1 %v5906_v32 }
 0x64a   :  { %5296 = vmatprep.subr.bf16.mxu1 %v6395_v0 }
 0x6ca   :  { %v895_v60 = vpop.xlane.xlu1 %894 }
 0x6cb   :  { %v900_v61 = vmul.f32 0.03125, %v895_v60 }
 0x6cc   :  { %v906_v62 = vpop.xlane.xlu0 %905 }
 0x6cd   :  { %v912_v63 = vmul.f32 %v900_v61, %v900_v61  ;;  %v910_v1 = vmul.f32 0.03125, %v906_v62  ;;  %v918_v17 = vsub.f32 %v889_v44, %v900_v61 }
 0x6ce   :  { %v898_v2 = vpop.xlane.xlu1 %897 }
 0x6cf   :  { %v914_v5 = vsub.f32 %v910_v1, %v912_v63  ;;  %v901_v6 = vmul.f32 0.03125, %v898_v2  ;;  %v5907_v63 = vld [vmem:[%s6440_s3 + $0x10] sm:$0xff]   ;;  %v5909_v2 = vld [vmem:[%s6440_s3 + $0x18] sm:$0xff]   ;;  %s7587_s3 = sld [smem:[#allocation42_spill]] }
 0x6d0   :  { %v5908_v1 = vld [vmem:[%s7574_s5 + $0x10] sm:$0xff]  }
 0x6d1   :  { %v916_v7 = vmax.f32 %v914_v5, 0.0  ;;  %v913_v10 = vmul.f32 %v901_v6, %v901_v6  ;;  %v919_v20 = vsub.f32 %v890_v47, %v901_v6  ;;  %v5910_v5 = vld [vmem:[%s7574_s5 + $0x18] sm:$0xff]   ;;  %s7602_s5 = sld [smem:[#allocation52_spill]] }
 0x6d2   :  { %v909_v8 = vpop.xlane.xlu1 %908 }
 0x6d3   :  { %v920_v9 = vadd.f32 1e-05, %v916_v7  ;;  %v911_v11 = vmul.f32 0.03125, %v909_v8 }
 0x6d5   :  { %5975 = vrsqrt.f32 %v920_v9  ;;  %v915_v12 = vsub.f32 %v911_v11, %v913_v10 }
 0x6d7   :  { %v917_v13 = vmax.f32 %v915_v12, 0.0 }
 0x6d9   :  { %v921_v14 = vadd.f32 1e-05, %v917_v13 }
 0x6db   :  { %5977 = vrsqrt.f32 %v921_v14 }
 0x6df   :  { %v5976_v15 = vpop.eup %5975 }
 0x6e0   :  { %v924_v18 = vmul.f32 %v5976_v15, %v918_v17 }
 0x6e2   :  { %v932_v23 = vmul.f32 %v4698_v19, %v924_v18 }
 0x6e4   :  { %v940_v26 = vadd.f32 %v4699_v24, %v932_v23 }
 0x6e5   :  { %v5978_v21 = vpop.eup %5977 }
 0x6e6   :  { %v925_v22 = vmul.f32 %v5978_v21, %v919_v20 }
 0x6e8   :  { %v933_v25 = vmul.f32 %v4698_v19, %v925_v22 }
 0x6ea   :  { %v941_v28 = vadd.f32 %v4699_v24, %v933_v25  ;;  %v4710_v25 = vld [vmem:[%s7586_s27] ss:$0 sm:$0xff] }
 0x6ec   :  { %v956_v29 = vpack.c.bf16 %v941_v28, %v940_v26 }
 0x6ee   :  { %5265 = vmatmul.mubr.msk.bf16.vlgmr.msra.gmra.mrb[16].mxu0 %vm429_vm1, %v956_v29 }
 0x6ef   :  { %5284 = vmatprep.mubr.msk.bf16.mxu0 %vm6396_vm0, %v6395_v0  ;;  %5281 = vmatpush3.bf16.msra.mxu0 %v5907_v63 }
 0x6f0   :  { %5282 = vmatprep.subr.bf16.mxu0 %v6395_v0 }
 0x6f3   :  { %5283 = vmatpush3.bf16.msra.mxu0 %v5909_v2 }
 0x6f4   :  { %5288 = vmatprep.subr.bf16.mxu0 %v6395_v0 }
 0x7c1   :  { %v1012_v35 = vpop.f32.mrb[16].mxu0 }
 0x7c2   :  { %v1013_v36 = vadd.f32 %v4700_v34, %v1012_v35  ;;  %v5266_v37 = vpop.f32.mrb[17].mxu0 }
 0x7c3   :  { %v1015_v39 = vpop.f32.mrb[18].mxu0 }
 0x7c4   :  { %v1016_v41 = vadd.f32 %v4700_v34, %v1015_v39  ;;  %v5267_v42 = vpop.f32.mrb[19].mxu0  ;;  %v1019_v43 = vmax.f32 %v1013_v36, 0.0  ;;  %v4711_v34 = vld [vmem:[%s7587_s3] ss:$0 sm:$0xff]  ;;  %v5911_v39 = vld [vmem:[%s6450_s14 + $0x10] sm:$0xff]  }
 0x7c5   :  { %v5912_v42 = vld [vmem:[%s6450_s14 + $0x18] sm:$0xff]   ;;  %s7589_s14 = sld [smem:[#allocation25_spill]] }
 0x7c6   :  { %v1020_v44 = vmax.f32 %v1016_v41, 0.0 }
 0x7c8   :  { %v1021_v45 = vpack.c.bf16 %v1020_v44, %v1019_v43  ;;  %v4732_v43 = vld [vmem:[%s6445_s8 + $0x1] ss:$0 sm:$0xff]  ;;  %s7588_s8 = sld [smem:[#allocation43_spill]] }
 0x7ca   :  { %5277 = vmatmul.mubr.msk.bf16.vlgmr.msra.gmra.mrb[12].mxu1 %vm683_vm2, %v1021_v45  ;;  %v4740_v45 = vld [vmem:[%s7577_s21 + $0x1] ss:$0 sm:$0xff]  ;;  %s7605_s21 = sld [smem:[#allocation57_spill]] }
 0x7cb   :  { %5300 = vmatprep.mubr.msk.bf16.mxu1 %vm6396_vm0, %v6395_v0  ;;  %5297 = vmatpush3.bf16.msra.mxu1 %v5908_v1 }
 0x7cc   :  { %5298 = vmatprep.subr.bf16.mxu1 %v6395_v0 }
 0x7cf   :  { %5299 = vmatpush3.bf16.msra.mxu1 %v5910_v5 }
 0x7d0   :  { %5740 = vmatprep.subr.bf16.mxu1 %v6817_v50 }
 0x89d   :  { %v1089_v47 = vpop.f32.mrb[12].mxu1 }
 0x89e   :  { %v1090_v48 = vadd.f32 %v4704_v46, %v1089_v47  ;;  %v5278_v49 = vpop.f32.mrb[13].mxu1 }
 0x89f   :  { %v1092_v51 = vpop.f32.mrb[14].mxu1 }
 0x8a0   :  { %v1096_v52 = vadd.f32 %v1090_v48, %v940_v26  ;;  %v1093_v54 = vadd.f32 %v4704_v46, %v1092_v51  ;;  %v5279_v3 = vpop.f32.mrb[15].mxu1 }
 0x8a2   :  { %v1097_v55 = vadd.f32 %v1093_v54, %v941_v28  ;;  %v1100_v56 = vsel %vm429_vm1, %v1096_v52, 0.0  ;;  %v1108_v4 = vmul.f32 %v1096_v52, %v1096_v52 }
 0x8a3   :  { %1101 = vadd.xlane.f32.xlu0 %v1100_v56 }
 0x8a4   :  { %v1103_v58 = vsel %vm429_vm1, %v1097_v55, 0.0  ;;  %v1109_v60 = vmul.f32 %v1097_v55, %v1097_v55  ;;  %v1110_v61 = vsel %vm429_vm1, %v1108_v4, 0.0 }
 0x8a5   :  { %1104 = vadd.xlane.f32.xlu1 %v1103_v58 }
 0x8a6   :  { %v1113_v62 = vsel %vm429_vm1, %v1109_v60, 0.0 }
 0x8a7   :  { %1111 = vadd.xlane.f32.xlu0 %v1110_v61  ;;  %v4736_v61 = vld [vmem:[%s6455_s19 + $0x1] ss:$0 sm:$0xff]  ;;  %s7590_s19 = sld [smem:[#allocation45_spill]] }
 0x8a9   :  { %1114 = vadd.xlane.f32.xlu1 %v1113_v62 }
 0x930   :  { %v1102_v6 = vpop.xlane.xlu0 %1101 }
 0x931   :  { %v1106_v7 = vmul.f32 0.03125, %v1102_v6 }
 0x932   :  { %v1105_v8 = vpop.xlane.xlu1 %1104 }
 0x933   :  { %v1107_v9 = vmul.f32 0.03125, %v1105_v8  ;;  %v1118_v11 = vmul.f32 %v1106_v7, %v1106_v7  ;;  %v1124_v23 = vsub.f32 %v1096_v52, %v1106_v7 }
 0x934   :  { %v1112_v10 = vpop.xlane.xlu0 %1111 }
 0x935   :  { %v1116_v12 = vmul.f32 0.03125, %v1112_v10  ;;  %v1119_v14 = vmul.f32 %v1107_v9, %v1107_v9  ;;  %v1125_v26 = vsub.f32 %v1097_v55, %v1107_v9 }
 0x936   :  { %v1115_v13 = vpop.xlane.xlu1 %1114 }
 0x937   :  { %v1120_v15 = vsub.f32 %v1116_v12, %v1118_v11  ;;  %v1117_v17 = vmul.f32 0.03125, %v1115_v13 }
 0x939   :  { %v1122_v18 = vmax.f32 %v1120_v15, 0.0  ;;  %v1121_v19 = vsub.f32 %v1117_v17, %v1119_v14 }
 0x93b   :  { %v1126_v20 = vadd.f32 1e-05, %v1122_v18  ;;  %v1123_v21 = vmax.f32 %v1121_v19, 0.0 }
 0x93d   :  { %5979 = vrsqrt.f32 %v1126_v20  ;;  %v1127_v22 = vadd.f32 1e-05, %v1123_v21 }
 0x93f   :  { %5981 = vrsqrt.f32 %v1127_v22 }
 0x947   :  { %v5980_v24 = vpop.eup %5979 }
 0x948   :  { %v1130_v28 = vmul.f32 %v5980_v24, %v1124_v23 }
 0x949   :  { %v5982_v29 = vpop.eup %5981 }
 0x94a   :  { %v1131_v31 = vmul.f32 %v5982_v29, %v1125_v26  ;;  %v1138_v32 = vmul.f32 %v4710_v25, %v1130_v28 }
 0x94c   :  { %v1139_v35 = vmul.f32 %v4710_v25, %v1131_v31  ;;  %v6906_v36 = vadd.f32 %v4711_v34, %v1138_v32 }
 0x94e   :  { %v6908_v37 = vadd.f32 %v4711_v34, %v1139_v35 }
 0x950   :  { %v1176_v41 = vpack.c.bf16 %v6908_v37, %v6906_v36 }
 0x952   :  { %5285 = vmatmul.mubr.msk.bf16.vlgmr.msra.gmra.mrb[20].mxu0 %vm429_vm1, %v1176_v41  ;;  %5301 = vmatmul.mubr.msk.bf16.vlgmr.msra.gmra.mrb[16].mxu1 %vm429_vm1, %v1176_v41 }
 0x953   :  { %5289 = vmatpush3.bf16.msra.mxu0 %v5911_v39  ;;  %5292 = vmatprep.mubr.msk.bf16.mxu0 %vm6396_vm0, %v6395_v0 }
 0x954   :  { %5290 = vmatprep.subr.bf16.mxu0 %v6395_v0  ;;  %5742 = vmatpush3.bf16.msra.mxu1 %v6817_v50 }
 0x955   :  { %5744 = vmatprep.subr.bf16.mxu1 %v6823_v53 }
 0x957   :  { %5291 = vmatpush3.bf16.msra.mxu0 %v5912_v42  ;;  %v5913_v42 = vld [vmem:[%s7578_s29 + $0x10] sm:$0xff]  }
 0x958   :  { %5304 = vmatprep.subr.bf16.mxu0 %v6395_v0  ;;  %5746 = vmatpush3.bf16.msra.mxu1 %v6823_v53 }
 0x959   :  { %5748 = vmatprep.subr.bf16.mxu1 %v6830_v57 }
 0x95a   :  { %5293 = vmatmul.mubr.msk.bf16.vlgmr.msra.gmra.mrb[24].mxu0 %vm429_vm1, %v1176_v41 }
 0x95b   :  { %5312 = vmatprep.mubr.msk.bf16.mxu0 %vm6396_vm0, %v6395_v0 }
 0x95c   :  { %5750 = vmatpush3.bf16.msra.mxu1 %v6830_v57 }
 0x95d   :  { %5752 = vmatprep.subr.bf16.mxu1 %v6833_v59 }
 0x960   :  { %5754 = vmatpush3.bf16.msra.mxu1 %v6833_v59 }
 0x961   :  { %5335 = vmatprep.subr.bf16.mxu1 %v6395_v0 }
 0xa25   :  { %v1232_v44 = vpop.f32.mrb[20].mxu0  ;;  %v1350_v46 = vpop.f32.mrb[16].mxu1 }
 0xa26   :  { %v5286_v47 = vpop.f32.mrb[21].mxu0  ;;  %v5302_v48 = vpop.f32.mrb[17].mxu1  ;;  %v1233_v52 = vadd.f32 %v4732_v43, %v1232_v44  ;;  %v1351_v54 = vadd.f32 %v4740_v45, %v1350_v46 }
 0xa27   :  { %v1235_v49 = vpop.f32.mrb[22].mxu0  ;;  %v1353_v51 = vpop.f32.mrb[18].mxu1 }
 0xa28   :  { %v1236_v3 = vadd.f32 %v4732_v43, %v1235_v49  ;;  %v1354_v55 = vadd.f32 %v4740_v45, %v1353_v51  ;;  %v5287_v56 = vpop.f32.mrb[23].mxu0  ;;  %v5303_v4 = vpop.f32.mrb[19].mxu1  ;;  %v5914_v51 = vld [vmem:[%s7578_s29 + $0x18] sm:$0xff]   ;;  %s7606_s29 = sld [smem:[#allocation58_spill]] }
 0xa29   :  { %v4748_v4 = vld [vmem:[%s7579_s23 + $0x1] ss:$0 sm:$0xff]  ;;  %s7607_s23 = sld [smem:[#allocation59_spill]] }
 0xa2a   :  { %v1367_v58 = vpack.c.bf16 %v1236_v3, %v1233_v52  ;;  %v1362_v60 = vpack.c.bf16 %v1354_v55, %v1351_v54 }
 0xa2c   :  { %v1363_v34 = vmul.bf16 %v6775_v16, %v1362_v60  ;;  %v1364_v35 = vmul.bf16 %v6780_v27, %v1362_v60  ;;  %v1365_v39 = vmul.bf16 %v6786_v30, %v1362_v60  ;;  %v1366_v41 = vmul.bf16 %v6792_v33, %v1362_v60 }
 0xa2d   :  { %v1291_v62 = vpop.f32.mrb[24].mxu0 }
 0xa2e   :  { %v5294_v63 = vpop.f32.mrb[25].mxu0  ;;  %v1292_v2 = vadd.f32 %v4736_v61, %v1291_v62 }
 0xa2f   :  { %v1294_v1 = vpop.f32.mrb[26].mxu0 }
 0xa30   :  { %v1295_v5 = vadd.f32 %v4736_v61, %v1294_v1  ;;  %v5295_v6 = vpop.f32.mrb[27].mxu0 }
 0xa32   :  { %v1357_v7 = vpack.c.bf16 %v1295_v5, %v1292_v2 }
 0xa34   :  { %v1358_v8 = vmul.bf16 %v6775_v16, %v1357_v7  ;;  %v1359_v10 = vmul.bf16 %v6780_v27, %v1357_v7  ;;  %v1360_v12 = vmul.bf16 %v6786_v30, %v1357_v7  ;;  %v1361_v14 = vmul.bf16 %v6792_v33, %v1357_v7 }
 0xa36   :  { %v1372_v9 = vsel %vm429_vm1, %v1358_v8, 0  ;;  %v1375_v11 = vsel %vm429_vm1, %v1359_v10, 0  ;;  %v1378_v13 = vsel %vm429_vm1, %v1360_v12, 0  ;;  %v1381_v15 = vsel %vm429_vm1, %v1361_v14, 0  ;;  %v5916_v12 = vld [vmem:[%s7580_s17 + $0x18] sm:$0xff]  }
 0xa37   :  { %5305 = vmatpush3.bf16.xpose.msra.mxu0 %v1372_v9 }
 0xa38   :  { %5306 = vmatprep.subr.bf16.mxu0 %v6395_v0 }
 0xa3f   :  { %5307 = vmatpush3.bf16.xpose.msra.mxu0 %v1375_v11  ;;  %v5915_v11 = vld [vmem:[%s7580_s17 + $0x10] sm:$0xff]   ;;  %s7608_s17 = sld [smem:[#allocation61_spill]] }
 0xa40   :  { %5308 = vmatprep.subr.bf16.mxu0 %v6395_v0 }
 0xa47   :  { %5309 = vmatpush3.bf16.xpose.msra.mxu0 %v1378_v13  ;;  %v5922_v13 = vld [vmem:[%s7581_s26 + $0x28] sm:$0xff]  }
 0xa48   :  { %5310 = vmatprep.subr.bf16.mxu0 %v6395_v0 }
 0xa4f   :  { %5311 = vmatpush3.bf16.xpose.msra.mxu0 %v1381_v15 }
 0xa50   :  { %5347 = vmatprep.subr.bf16.mxu0 %v6395_v0 }
 0xa56   :  { %5313 = vmatmul.mubr.msk.bf16.vlgmr.msra.gmra.mrb[28].mxu0 %vm429_vm1, %v1367_v58 }
 0xa57   :  { %5351 = vmatprep.mubr.msk.bf16.mxu0 %vm6396_vm0, %v6395_v0  ;;  %5348 = vmatpush3.bf16.msra.mxu0 %v5913_v42 }
 0xa58   :  { %5349 = vmatprep.subr.bf16.mxu0 %v6395_v0 }
 0xa5b   :  { %5350 = vmatpush3.bf16.msra.mxu0 %v5914_v51  ;;  %v5918_v51 = vld [vmem:[%s7588_s8 + $0x8] sm:$0xff]  }
 0xa5c   :  { %5363 = vmatprep.subr.bf16.mxu0 %v6395_v0 }
 0xb29   :  { %v1417_v17 = vpop.f32.mrb[28].mxu0 }
 0xb2a   :  { %v1418_v18 = vadd.f32 %v1417_v17, %v6806_v38  ;;  %v5314_v19 = vpop.f32.mrb[29].mxu0 }
 0xb2b   :  { %v1420_v20 = vpop.f32.mrb[30].mxu0 }
 0xb2c   :  { %v1421_v21 = vadd.f32 %v1420_v20, %v6809_v40  ;;  %v5315_v22 = vpop.f32.mrb[31].mxu0  ;;  %v1424_v23 = vsel %vm683_vm2, %v1418_v18, -inf }
 0xb2d   :  { %1425 = vmax.xlane.f32.xlu0 %v1424_v23 }
 0xb2e   :  { %v1427_v24 = vsel %vm683_vm2, %v1421_v21, -inf }
 0xb2f   :  { %1428 = vmax.xlane.f32.xlu1 %v1427_v24 }
 0xbba   :  { %v1426_v25 = vpop.xlane.xlu0 %1425 }
 0xbbb   :  { %v1430_v26 = vsub.f32 %v1418_v18, %v1426_v25 }
 0xbbc   :  { %v1429_v28 = vpop.xlane.xlu1 %1428 }
 0xbbd   :  { %v1432_v29 = vmul.f32 1.442695, %v1430_v26  ;;  %v1431_v31 = vsub.f32 %v1421_v21, %v1429_v28 }
 0xbbf   :  { %5983 = vpow2.f32 %v1432_v29  ;;  %v1434_v32 = vmul.f32 1.442695, %v1431_v31 }
 0xbc1   :  { %5985 = vpow2.f32 %v1434_v32 }
 0xbc9   :  { %v5984_v38 = vpop.eup %5983 }
 0xbca   :  { %5332 = vmatprep.mubr.msk.f32.mxu1 %vm683_vm2, %v5984_v38 }
 0xbcb   :  { %v5986_v40 = vpop.eup %5985 }
 0xbcc   :  { %5333 = vmatmul.mubr.msk.f32.vlgmr.msra.gmra.mrb[20].mxu1 %vm683_vm2, %v5986_v40 }
 0xbcd   :  { %5336 = vmatpush3.bf16.msra.mxu1 %v1363_v34  ;;  %5343 = vmatprep.mubr.msk.bf16.mxu1 %vm6396_vm0, %v6395_v0  ;;  %v4754_v34 = vld [vmem:[%s7582_s28 + $0x1] ss:$0 sm:$0xff]  ;;  %s7610_s28 = sld [smem:[#allocation62_spill]] }
 0xbce   :  { %5337 = vmatprep.subr.bf16.mxu1 %v6395_v0 }
 0xbd1   :  { %5338 = vmatpush3.bf16.msra.mxu1 %v1364_v35 }
 0xbd2   :  { %5339 = vmatprep.subr.bf16.mxu1 %v6395_v0 }
 0xbd5   :  { %5340 = vmatpush3.bf16.msra.mxu1 %v1365_v39 }
 0xbd6   :  { %5341 = vmatprep.subr.bf16.mxu1 %v6395_v0 }
 0xbd9   :  { %5342 = vmatpush3.bf16.msra.mxu1 %v1366_v41 }
 0xbda   :  { %5355 = vmatprep.subr.bf16.mxu1 %v6395_v0 }
 0xc9f   :  { %v5334_v43 = vpop.f32.mrb[20].mxu1 }
 0xca0   :  { %5987 = vrcp.f32 %v5334_v43  ;;  %v1508_v44 = vpop.f32.mrb[21].mxu1 }
 0xca1   :  { %5989 = vrcp.f32 %v1508_v44  ;;  %v4755_v44 = vld [vmem:[%s7583_s0 + $0x1] ss:$0 sm:$0xff] }
 0xcaa   :  { %v5988_v45 = vpop.eup %5987 }
 0xcab   :  { %v5990_v46 = vpop.eup %5989  ;;  %v1520_v47 = vmul.f32 %v5988_v45, %v5986_v40 }
 0xcac   :  { %v1518_v48 = vmul.f32 %v5990_v46, %v5984_v38 }
 0xcae   :  { %v1521_v49 = vpack.c.bf16 %v1520_v47, %v1518_v48  ;;  %v5917_v48 = vld [vmem:[%s7588_s8] sm:$0xff]  }
 0xcb0   :  { %5344 = vmatmul.mubr.msk.bf16.vlgmr.msra.gmra.mrb[24].mxu1 %vm683_vm2, %v1521_v49 }
 0xcb1   :  { %5359 = vmatprep.mubr.msk.bf16.mxu1 %vm6396_vm0, %v6395_v0  ;;  %5356 = vmatpush3.bf16.msra.mxu1 %v5915_v11 }
 0xcb2   :  { %5357 = vmatprep.subr.bf16.mxu1 %v6395_v0 }
 0xcb5   :  { %5358 = vmatpush3.bf16.msra.mxu1 %v5916_v12 }
 0xcb6   :  { %5375 = vmatprep.subr.bf16.mxu1 %v6395_v0 }
 0xd83   :  { %v1559_v52 = vpop.f32.mrb[24].mxu1 }
 0xd84   :  { %v5345_v54 = vpop.f32.mrb[25].mxu1 }
 0xd85   :  { %v1562_v3 = vpop.f32.mrb[26].mxu1  ;;  %v7007_v54 = vld [vmem:[%s7589_s14 + $0x8] sm:$0xff] }
 0xd86   :  { %v1566_v55 = vpack.c.bf16 %v1562_v3, %v1559_v52  ;;  %v5346_v56 = vpop.f32.mrb[27].mxu1  ;;  %v7004_v52 = vld [vmem:[%s7589_s14] sm:$0xff] }
 0xd87   :  { %v7012_v3 = vpack.c.bf16 %v7007_v54, %v7004_v52  ;;  %v5920_v56 = vld [vmem:[%s7590_s19 + $0x8] sm:$0xff]  }
 0xd88   :  { %5352 = vmatmul.mubr.msk.bf16.vlgmr.msra.gmra.mrb[32].mxu0 %vm429_vm1, %v1566_v55  ;;  %v5919_v55 = vld [vmem:[%s7590_s19] sm:$0xff]  }
 0xd89   :  { %5371 = vmatprep.mubr.msk.bf16.mxu0 %vm6396_vm0, %v6395_v0 }
 0xe5b   :  { %v1622_v58 = vpop.f32.mrb[32].mxu0 }
 0xe5c   :  { %v1623_v60 = vadd.f32 %v4748_v4, %v1622_v58  ;;  %v5353_v61 = vpop.f32.mrb[33].mxu0  ;;  %v5924_v58 = vld [vmem:[%s7581_s26 + $0x38] sm:$0xff]  }
 0xe5d   :  { %v1625_v62 = vpop.f32.mrb[34].mxu0 }
 0xe5e   :  { %v1629_v63 = vadd.f32 %v1623_v60, %v6906_v36  ;;  %v1626_v1 = vadd.f32 %v4748_v4, %v1625_v62  ;;  %v5354_v2 = vpop.f32.mrb[35].mxu0  ;;  %v5923_v4 = vld [vmem:[%s7581_s26 + $0x30] sm:$0xff]   ;;  %v4770_v60 = vld [vmem:[%s7584_s1 + $0x1] ss:$0 sm:$0xff] }
 0xe60   :  { %v1630_v5 = vadd.f32 %v1626_v1, %v6908_v37  ;;  %v1635_v6 = vsel %vm429_vm1, %v1629_v63, 0.0  ;;  %v1643_v7 = vmul.f32 %v1629_v63, %v1629_v63  ;;  %v5921_v37 = vld [vmem:[%s7581_s26 + $0x20] sm:$0xff]   ;;  %s7609_s26 = sld [smem:[#allocation60_spill]] }
 0xe61   :  { %1636 = vadd.xlane.f32.xlu0 %v1635_v6  ;;  %5364 = vmatpush3.bf16.msra.mxu0 %v5921_v37 }
 0xe62   :  { %v1638_v8 = vsel %vm429_vm1, %v1630_v5, 0.0  ;;  %v1644_v9 = vmul.f32 %v1630_v5, %v1630_v5  ;;  %v1645_v10 = vsel %vm429_vm1, %v1643_v7, 0.0  ;;  %5365 = vmatprep.subr.bf16.mxu0 %v6395_v0 }
 0xe63   :  { %1639 = vadd.xlane.f32.xlu1 %v1638_v8 }
 0xe64   :  { %v1648_v36 = vsel %vm429_vm1, %v1644_v9, 0.0  ;;  %v4786_v9 = vld [vmem:[%s7591_s2] ss:$0 sm:$0xff] }
 0xe65   :  { %1646 = vadd.xlane.f32.xlu0 %v1645_v10  ;;  %5366 = vmatpush3.bf16.msra.mxu0 %v5922_v13 }
 0xe66   :  { %5367 = vmatprep.subr.bf16.mxu0 %v6395_v0 }
 0xe67   :  { %1649 = vadd.xlane.f32.xlu1 %v1648_v36 }
 0xe69   :  { %5368 = vmatpush3.bf16.msra.mxu0 %v5923_v4 }
 0xe6a   :  { %5369 = vmatprep.subr.bf16.mxu0 %v6395_v0 }
 0xe6d   :  { %5370 = vmatpush3.bf16.msra.mxu0 %v5924_v58 }
 0xe6e   :  { %5391 = vmatprep.subr.bf16.mxu0 %v6395_v0 }
 0xeee   :  { %v1637_v14 = vpop.xlane.xlu0 %1636 }
 0xeef   :  { %v1641_v15 = vmul.f32 0.03125, %v1637_v14 }
 0xef0   :  { %v1640_v17 = vpop.xlane.xlu1 %1639 }
 0xef1   :  { %v1642_v18 = vmul.f32 0.03125, %v1640_v17  ;;  %v1653_v20 = vmul.f32 %v1641_v15, %v1641_v15  ;;  %v1659_v38 = vsub.f32 %v1629_v63, %v1641_v15  ;;  %v4790_v15 = vld [vmem:[%s7592_s4] ss:$0 sm:$0xff] }
 0xef2   :  { %v1647_v19 = vpop.xlane.xlu0 %1646 }
 0xef3   :  { %v1651_v21 = vmul.f32 0.03125, %v1647_v19  ;;  %v1654_v23 = vmul.f32 %v1642_v18, %v1642_v18  ;;  %v1660_v35 = vsub.f32 %v1630_v5, %v1642_v18 }
 0xef4   :  { %v1650_v22 = vpop.xlane.xlu1 %1649 }
 0xef5   :  { %v1655_v24 = vsub.f32 %v1651_v21, %v1653_v20  ;;  %v1652_v25 = vmul.f32 0.03125, %v1650_v22 }
 0xef7   :  { %v1657_v26 = vmax.f32 %v1655_v24, 0.0  ;;  %v1656_v28 = vsub.f32 %v1652_v25, %v1654_v23 }
 0xef9   :  { %v1661_v29 = vadd.f32 1e-05, %v1657_v26  ;;  %v1658_v31 = vmax.f32 %v1656_v28, 0.0 }
 0xefb   :  { %5991 = vrsqrt.f32 %v1661_v29  ;;  %v1662_v32 = vadd.f32 1e-05, %v1658_v31 }
 0xefd   :  { %5993 = vrsqrt.f32 %v1662_v32 }
 0xf05   :  { %v5992_v40 = vpop.eup %5991 }
 0xf06   :  { %v1665_v39 = vmul.f32 %v5992_v40, %v1659_v38 }
 0xf07   :  { %v5994_v41 = vpop.eup %5993 }
 0xf08   :  { %v1666_v42 = vmul.f32 %v5994_v41, %v1660_v35  ;;  %v1673_v43 = vmul.f32 %v4754_v34, %v1665_v39  ;;  %v4774_v35 = vld [vmem:[%s7585_s20 + $0x1] ss:$0 sm:$0xff] }
 0xf09   :  { %v368_v39 = vld [vmem:[%s7594_s6] sm:$0xff] }
 0xf0a   :  { %v1674_v45 = vmul.f32 %v4754_v34, %v1666_v42  ;;  %v6992_v46 = vadd.f32 %v4755_v44, %v1673_v43  ;;  %v369_v43 = vld [vmem:[%s7594_s6 + $0x8] sm:$0xff] }
 0xf0c   :  { %v6994_v47 = vadd.f32 %v4755_v44, %v1674_v45 }
 0xf0e   :  { %v1701_v49 = vpack.c.bf16 %v6994_v47, %v6992_v46 }
 0xf10   :  { %5360 = vmatmul.mubr.msk.bf16.vlgmr.msra.gmra.mrb[28].mxu1 %vm429_vm1, %v1701_v49 }
 0xf11   :  { %5376 = vmatpush3.bf16.msra.mxu1 %v5917_v48  ;;  %5379 = vmatprep.mubr.msk.bf16.mxu1 %vm6396_vm0, %v6395_v0 }
 0xf12   :  { %5377 = vmatprep.subr.bf16.mxu1 %v6395_v0 }
 0xf15   :  { %5378 = vmatpush3.bf16.msra.mxu1 %v5918_v51 }
 0xf16   :  { %5383 = vmatprep.subr.bf16.mxu1 %v6395_v0 }
 0xf18   :  { %5380 = vmatmul.mubr.msk.bf16.vlgmr.msra.gmra.mrb[32].mxu1 %vm429_vm1, %v7012_v3 }
 0xf19   :  { %5384 = vmatpush3.bf16.msra.mxu1 %v5919_v55  ;;  %5387 = vmatprep.mubr.msk.bf16.mxu1 %vm6396_vm0, %v6395_v0 }
 0xf1a   :  { %5385 = vmatprep.subr.bf16.mxu1 %v6395_v0 }
 0xf1d   :  { %5386 = vmatpush3.bf16.msra.mxu1 %v5920_v56 }
 0xf1e   :  { %5399 = vmatprep.subr.bf16.mxu1 %v6395_v0 }
 0xf20   :  { %5388 = vmatmul.mubr.msk.bf16.vlgmr.msra.gmra.mrb[36].mxu1 %vm429_vm1, %v7012_v3 }
 0xf21   :  { %5407 = vmatprep.mubr.msk.bf16.mxu1 %vm6396_vm0, %v6395_v0 }
 0xfe3   :  { %v1757_v61 = vpop.f32.mrb[28].mxu1 }
 0xfe4   :  { %v1758_v62 = vadd.f32 %v4770_v60, %v1757_v61  ;;  %v5361_v63 = vpop.f32.mrb[29].mxu1 }
 0xfe5   :  { %v1760_v1 = vpop.f32.mrb[30].mxu1 }
 0xfe6   :  { %v1761_v2 = vadd.f32 %v4770_v60, %v1760_v1  ;;  %v5362_v5 = vpop.f32.mrb[31].mxu1  ;;  %v1764_v6 = vmax.f32 %v1758_v62, 0.0 }
 0xfe8   :  { %v1765_v7 = vmax.f32 %v1761_v2, 0.0 }
 0xfea   :  { %v1766_v8 = vpack.c.bf16 %v1765_v7, %v1764_v6 }
 0xfeb   :  { %v2023_v10 = vpop.f32.mrb[32].mxu1 }
 0xfec   :  { %5372 = vmatmul.mubr.msk.bf16.vlgmr.msra.gmra.mrb[36].mxu0 %vm683_vm2, %v1766_v8  ;;  %v5381_v36 = vpop.f32.mrb[33].mxu1  ;;  %v2024_v12 = vadd.f32 %v4786_v9, %v2023_v10 }
 0xfed   :  { %v2026_v11 = vpop.f32.mrb[34].mxu1  ;;  %5395 = vmatprep.mubr.msk.bf16.mxu0 %vm6396_vm0, %v6395_v0 }
 0xfee   :  { %v2027_v37 = vadd.f32 %v4786_v9, %v2026_v11  ;;  %v5382_v13 = vpop.f32.mrb[35].mxu1 }
 0xff0   :  { %v2158_v14 = vpack.c.bf16 %v2027_v37, %v2024_v12 }
 0xff3   :  { %v2082_v17 = vpop.f32.mrb[36].mxu1 }
 0xff4   :  { %v5389_v18 = vpop.f32.mrb[37].mxu1  ;;  %v2083_v20 = vadd.f32 %v4790_v15, %v2082_v17 }
 0xff5   :  { %v2085_v19 = vpop.f32.mrb[38].mxu1 }
 0xff6   :  { %v2086_v21 = vadd.f32 %v4790_v15, %v2085_v19  ;;  %v5390_v22 = vpop.f32.mrb[39].mxu1 }
 0xff8   :  { %v2148_v23 = vpack.c.bf16 %v2086_v21, %v2083_v20 }
 0xffa   :  { %v2149_v24 = vmul.bf16 %v6775_v16, %v2148_v23  ;;  %v2150_v26 = vmul.bf16 %v6780_v27, %v2148_v23  ;;  %v2151_v29 = vmul.bf16 %v6786_v30, %v2148_v23  ;;  %v2152_v16 = vmul.bf16 %v6792_v33, %v2148_v23  ;;  %v5925_v27 = vld [vmem:[%s7593_s7] sm:$0xff]   ;;  %v5926_v30 = vld [vmem:[%s7593_s7 + $0x8] sm:$0xff]  }
 0xffb   :  { %5392 = vmatpush3.bf16.msra.mxu0 %v5925_v27  ;;  %v4783_v27 = vld [vmem:[%s7587_s3 + $0x1] ss:$0 sm:$0xff] }
 0xffc   :  { %v2163_v25 = vsel %vm429_vm1, %v2149_v24, 0  ;;  %v2166_v28 = vsel %vm429_vm1, %v2150_v26, 0  ;;  %v2169_v31 = vsel %vm429_vm1, %v2151_v29, 0  ;;  %v2172_v32 = vsel %vm429_vm1, %v2152_v16, 0  ;;  %5393 = vmatprep.subr.bf16.mxu0 %v6395_v0  ;;  %v4782_v29 = vld [vmem:[%s7586_s27 + $0x1] ss:$0 sm:$0xff] }
 0xffd   :  { %5400 = vmatpush3.bf16.xpose.msra.mxu1 %v2163_v25 }
 0xffe   :  { %5401 = vmatprep.subr.bf16.mxu1 %v6395_v0 }
 0xfff   :  { %5394 = vmatpush3.bf16.msra.mxu0 %v5926_v30 }
0x1000   :  { %5756 = vmatprep.subr.bf16.mxu0 %v6817_v50 }
0x1002   :  { %5396 = vmatmul.mubr.msk.bf16.vlgmr.msra.gmra.mrb[40].mxu0 %vm429_vm1, %v7012_v3 }
0x1003   :  { %5758 = vmatpush3.bf16.msra.mxu0 %v6817_v50 }
0x1004   :  { %5760 = vmatprep.subr.bf16.mxu0 %v6823_v53 }
0x1005   :  { %5402 = vmatpush3.bf16.xpose.msra.mxu1 %v2166_v28 }
0x1006   :  { %5403 = vmatprep.subr.bf16.mxu1 %v6395_v0 }
0x1007   :  { %5762 = vmatpush3.bf16.msra.mxu0 %v6823_v53 }
0x1008   :  { %5764 = vmatprep.subr.bf16.mxu0 %v6830_v57 }
0x100b   :  { %5766 = vmatpush3.bf16.msra.mxu0 %v6830_v57 }
0x100c   :  { %5768 = vmatprep.subr.bf16.mxu0 %v6833_v59 }
0x100d   :  { %5404 = vmatpush3.bf16.xpose.msra.mxu1 %v2169_v31 }
0x100e   :  { %5405 = vmatprep.subr.bf16.mxu1 %v6395_v0 }
0x100f   :  { %5770 = vmatpush3.bf16.msra.mxu0 %v6833_v59 }
0x1010   :  { %5430 = vmatprep.subr.bf16.mxu0 %v6395_v0 }
0x1015   :  { %5406 = vmatpush3.bf16.xpose.msra.mxu1 %v2172_v32 }
0x1016   :  { %5442 = vmatprep.subr.bf16.mxu1 %v6395_v0 }
0x101c   :  { %5408 = vmatmul.mubr.msk.bf16.vlgmr.msra.gmra.mrb[40].mxu1 %vm429_vm1, %v2158_v14 }
0x101d   :  { %5446 = vmatprep.mubr.msk.bf16.mxu1 %vm6396_vm0, %v6395_v0 }
0x10bf   :  { %v1834_v33 = vpop.f32.mrb[36].mxu0 }
0x10c0   :  { %v5373_v38 = vpop.f32.mrb[37].mxu0  ;;  %v1835_v41 = vadd.f32 %v4774_v35, %v1834_v33 }
0x10c1   :  { %v1837_v40 = vpop.f32.mrb[38].mxu0 }
0x10c2   :  { %v5374_v34 = vpop.f32.mrb[39].mxu0  ;;  %v1838_v44 = vadd.f32 %v4774_v35, %v1837_v40  ;;  %v1841_v51 = vadd.f32 %v1835_v41, %v6992_v46 }
0x10c4   :  { %v1842_v4 = vadd.f32 %v1838_v44, %v6994_v47  ;;  %v1847_v60 = vsel %vm429_vm1, %v1841_v51, 0.0  ;;  %v1855_v61 = vmul.f32 %v1841_v51, %v1841_v51 }
0x10c6   :  { %v1850_v62 = vsel %vm429_vm1, %v1842_v4, 0.0  ;;  %v1856_v63 = vmul.f32 %v1842_v4, %v1842_v4  ;;  %v1857_v46 = vsel %vm429_vm1, %v1855_v61, 0.0  ;;  %v7106_v61 = vld [vmem:[%s7573_s24 + $0x8] sm:$0xff]  }
0x10c8   :  { %v1860_v1 = vsel %vm429_vm1, %v1856_v63, 0.0  ;;  %v7111_v63 = vld [vmem:[%s7573_s24 + $0x10] sm:$0xff]  }
0x10ef   :  { %v2208_v42 = vpop.f32.mrb[40].mxu1 }
0x10f0   :  { %v2209_v45 = vadd.f32 %v2208_v42, %v368_v39  ;;  %v5409_v48 = vpop.f32.mrb[41].mxu1 }
0x10f1   :  { %v2211_v49 = vpop.f32.mrb[42].mxu1  ;;  %v4794_v48 = vld [vmem:[%s7595_s10] ss:$0 sm:$0xff] }
0x10f2   :  { %v2212_v3 = vadd.f32 %v2211_v49, %v369_v43  ;;  %v5410_v55 = vpop.f32.mrb[43].mxu1  ;;  %v2215_v56 = vsel %vm683_vm2, %v2209_v45, -inf }
0x10f3   :  { %2216 = vmax.xlane.f32.xlu0 %v2215_v56 }
0x10f4   :  { %v2218_v58 = vsel %vm683_vm2, %v2212_v3, -inf }
0x10f5   :  { %2219 = vmax.xlane.f32.xlu1 %v2218_v58  ;;  %v7102_v58 = vld [vmem:[%s7573_s24] sm:$0xff]  }
0x10f7   :  { %1848 = vadd.xlane.f32.xlu0 %v1847_v60 }
0x10f9   :  { %1851 = vadd.xlane.f32.xlu1 %v1850_v62 }
0x10fb   :  { %1858 = vadd.xlane.f32.xlu0 %v1857_v46 }
0x10fd   :  { %1861 = vadd.xlane.f32.xlu1 %v1860_v1  ;;  %v7116_v1 = vld [vmem:[%s7573_s24 + $0x18] sm:$0xff]  }
0x1180   :  { %v2217_v2 = vpop.xlane.xlu0 %2216 }
0x1181   :  { %v2221_v5 = vsub.f32 %v2209_v45, %v2217_v2  ;;  %v2141_v45 = vpop.f32.mrb[40].mxu0 }
0x1182   :  { %v2220_v47 = vpop.xlane.xlu1 %2219  ;;  %v5397_v49 = vpop.f32.mrb[41].mxu0 }
0x1183   :  { %v2223_v6 = vmul.f32 1.442695, %v2221_v5  ;;  %v2222_v7 = vsub.f32 %v2212_v3, %v2220_v47  ;;  %v2144_v3 = vpop.f32.mrb[42].mxu0  ;;  %v5927_v5 = vld [vmem:[%s7596_s11] sm:$0xff]  }
0x1184   :  { %v1849_v8 = vpop.xlane.xlu0 %1848  ;;  %v2145_v55 = vadd.f32 %v4794_v48, %v2144_v3  ;;  %v5398_v56 = vpop.f32.mrb[43].mxu0  ;;  %5443 = vmatpush3.bf16.msra.mxu1 %v5927_v5  ;;  %v4802_v3 = vld [vmem:[%s7598_s18] ss:$0 sm:$0xff] }
0x1185   :  { %5995 = vpow2.f32 %v2223_v6  ;;  %v2225_v9 = vmul.f32 1.442695, %v2222_v7  ;;  %v1853_v10 = vmul.f32 0.03125, %v1849_v8  ;;  %5444 = vmatprep.subr.bf16.mxu1 %v6395_v0 }
0x1186   :  { %v1852_v36 = vpop.xlane.xlu1 %1851 }
0x1187   :  { %5997 = vpow2.f32 %v2225_v9  ;;  %v1854_v11 = vmul.f32 0.03125, %v1852_v36  ;;  %v1865_v37 = vmul.f32 %v1853_v10, %v1853_v10  ;;  %v1871_v26 = vsub.f32 %v1841_v51, %v1853_v10 }
0x1188   :  { %v1859_v12 = vpop.xlane.xlu0 %1858  ;;  %v2142_v51 = vadd.f32 %v4794_v48, %v2141_v45 }
0x1189   :  { %v1863_v13 = vmul.f32 0.03125, %v1859_v12  ;;  %v1866_v15 = vmul.f32 %v1854_v11, %v1854_v11  ;;  %v1872_v31 = vsub.f32 %v1842_v4, %v1854_v11  ;;  %v5928_v11 = vld [vmem:[%s7596_s11 + $0x8] sm:$0xff]  }
0x118a   :  { %v1862_v14 = vpop.xlane.xlu1 %1861  ;;  %v2153_v4 = vpack.c.bf16 %v2145_v55, %v2142_v51  ;;  %5445 = vmatpush3.bf16.msra.mxu1 %v5928_v11 }
0x118b   :  { %v1867_v17 = vsub.f32 %v1863_v13, %v1865_v37  ;;  %v1864_v18 = vmul.f32 0.03125, %v1862_v14  ;;  %5458 = vmatprep.subr.bf16.mxu1 %v6395_v0 }
0x118c   :  { %v2154_v60 = vmul.bf16 %v7102_v58, %v2153_v4  ;;  %v2155_v62 = vmul.bf16 %v7106_v61, %v2153_v4  ;;  %v2156_v46 = vmul.bf16 %v7111_v63, %v2153_v4  ;;  %v2157_v2 = vmul.bf16 %v7116_v1, %v2153_v4 }
0x118d   :  { %v1869_v19 = vmax.f32 %v1867_v17, 0.0  ;;  %v1868_v20 = vsub.f32 %v1864_v18, %v1866_v15 }
0x118f   :  { %v7077_v21 = vpop.eup %5995  ;;  %v1873_v22 = vadd.f32 1e-05, %v1869_v19  ;;  %v1870_v23 = vmax.f32 %v1868_v20, 0.0 }
0x1190   :  { %5427 = vmatprep.mubr.msk.f32.mxu0 %vm683_vm2, %v7077_v21 }
0x1191   :  { %v5998_v24 = vpop.eup %5997  ;;  %5999 = vrsqrt.f32 %v1873_v22  ;;  %v1874_v25 = vadd.f32 1e-05, %v1870_v23 }
0x1192   :  { %5428 = vmatmul.mubr.msk.f32.vlgmr.msra.gmra.mrb[10].mxu0 %vm683_vm2, %v5998_v24 }
0x1193   :  { %6001 = vrsqrt.f32 %v1874_v25  ;;  %5438 = vmatprep.mubr.msk.bf16.mxu0 %vm6396_vm0, %v6395_v0  ;;  %5431 = vmatpush3.bf16.msra.mxu0 %v2154_v60 }
0x1194   :  { %5432 = vmatprep.subr.bf16.mxu0 %v6395_v0 }
0x1197   :  { %5433 = vmatpush3.bf16.msra.mxu0 %v2155_v62 }
0x1198   :  { %5434 = vmatprep.subr.bf16.mxu0 %v6395_v0 }
0x119b   :  { %v6000_v28 = vpop.eup %5999  ;;  %5435 = vmatpush3.bf16.msra.mxu0 %v2156_v46 }
0x119c   :  { %v1877_v16 = vmul.f32 %v6000_v28, %v1871_v26  ;;  %5436 = vmatprep.subr.bf16.mxu0 %v6395_v0 }
0x119d   :  { %v6002_v32 = vpop.eup %6001 }
0x119e   :  { %v1885_v30 = vmul.f32 %v4782_v29, %v1877_v16  ;;  %v1878_v33 = vmul.f32 %v6002_v32, %v1872_v31 }
0x119f   :  { %5437 = vmatpush3.bf16.msra.mxu0 %v2157_v2 }
0x11a0   :  { %v7086_v38 = vadd.f32 %v4783_v27, %v1885_v30  ;;  %v1886_v40 = vmul.f32 %v4782_v29, %v1878_v33  ;;  %5450 = vmatprep.subr.bf16.mxu0 %v6395_v0 }
0x11a2   :  { %v1897_v34 = vsel %vm429_vm1, %v7086_v38, 0.0  ;;  %v7090_v35 = vadd.f32 %v4783_v27, %v1886_v40  ;;  %v1905_v39 = vmul.f32 %v7086_v38, %v7086_v38 }
0x11a3   :  { %1898 = vadd.xlane.f32.xlu0 %v1897_v34 }
0x11a4   :  { %v1900_v41 = vsel %vm429_vm1, %v7090_v35, 0.0  ;;  %v1906_v42 = vmul.f32 %v7090_v35, %v7090_v35  ;;  %v1907_v43 = vsel %vm429_vm1, %v1905_v39, 0.0  ;;  %v5929_v39 = vld [vmem:[%s7597_s15] sm:$0xff]  }
0x11a5   :  { %1901 = vadd.xlane.f32.xlu1 %v1900_v41  ;;  %v4784_v41 = vld [vmem:[#allocation2] ss:$0 sm:$0xff] }
0x11a6   :  { %v1910_v44 = vsel %vm429_vm1, %v1906_v42, 0.0 }
0x11a7   :  { %1908 = vadd.xlane.f32.xlu0 %v1907_v43 }
0x11a9   :  { %1911 = vadd.xlane.f32.xlu1 %v1910_v44 }
0x1230   :  { %v1899_v37 = vpop.xlane.xlu0 %1898 }
0x1231   :  { %v1903_v17 = vmul.f32 0.03125, %v1899_v37 }
0x1232   :  { %v1902_v12 = vpop.xlane.xlu1 %1901 }
0x1233   :  { %v1904_v14 = vmul.f32 0.03125, %v1902_v12  ;;  %v1921_v32 = vsub.f32 %v7086_v38, %v1903_v17  ;;  %v4785_v38 = vld [vmem:[#allocation4] ss:$0 sm:$0xff] }
0x1234   :  { %v1909_v15 = vpop.xlane.xlu0 %1908 }
0x1235   :  { %v1916_v19 = vmul.f32 %v1904_v14, %v1904_v14  ;;  %v1913_v20 = vmul.f32 0.03125, %v1909_v15  ;;  %v1922_v31 = vsub.f32 %v7090_v35, %v1904_v14  ;;  %v5930_v35 = vld [vmem:[%s7597_s15 + $0x8] sm:$0xff]  }
0x1236   :  { %v1912_v13 = vpop.xlane.xlu1 %1911 }
0x1237   :  { %v1914_v18 = vmul.f32 0.03125, %v1912_v13 }
0x1239   :  { %v1918_v22 = vsub.f32 %v1914_v18, %v1916_v19 }
0x1265   :  { %v5429_v47 = vpop.f32.mrb[10].mxu0 }
0x1266   :  { %6003 = vrcp.f32 %v5429_v47  ;;  %v2299_v6 = vpop.f32.mrb[11].mxu0 }
0x1267   :  { %6005 = vrcp.f32 %v2299_v6 }
0x1270   :  { %v6004_v7 = vpop.eup %6003 }
0x1271   :  { %v6006_v8 = vpop.eup %6005  ;;  %v2311_v9 = vmul.f32 %v6004_v7, %v5998_v24  ;;  %v1920_v24 = vmax.f32 %v1918_v22, 0.0 }
0x1272   :  { %v2309_v10 = vmul.f32 %v6006_v8, %v7077_v21  ;;  %v1915_v21 = vmul.f32 %v1903_v17, %v1903_v17 }
0x1273   :  { %v1924_v26 = vadd.f32 1e-05, %v1920_v24  ;;  %v5931_v24 = vld [vmem:[%s7600_s16] sm:$0xff]  }
0x1274   :  { %v2312_v36 = vpack.c.bf16 %v2311_v9, %v2309_v10  ;;  %v1917_v23 = vsub.f32 %v1913_v20, %v1915_v21 }
0x1275   :  { %6007 = vrsqrt.f32 %v1924_v26 }
0x1276   :  { %5439 = vmatmul.mubr.msk.bf16.vlgmr.msra.gmra.mrb[44].mxu0 %vm683_vm2, %v2312_v36  ;;  %v1919_v25 = vmax.f32 %v1917_v23, 0.0 }
0x1277   :  { %5454 = vmatprep.mubr.msk.bf16.mxu0 %vm6396_vm0, %v6395_v0  ;;  %5451 = vmatpush3.bf16.msra.mxu0 %v5931_v24 }
0x1278   :  { %v1923_v28 = vadd.f32 1e-05, %v1919_v25  ;;  %v5932_v25 = vld [vmem:[%s7600_s16 + $0x8] sm:$0xff]   ;;  %5452 = vmatprep.subr.bf16.mxu0 %v6395_v0 }
0x127a   :  { %6009 = vrsqrt.f32 %v1923_v28 }
0x127b   :  { %5453 = vmatpush3.bf16.msra.mxu0 %v5932_v25 }
0x127c   :  { %5466 = vmatprep.subr.bf16.mxu0 %v6395_v0 }
0x127f   :  { %v6008_v29 = vpop.eup %6007 }
0x1280   :  { %v1928_v27 = vmul.f32 %v6008_v29, %v1922_v31 }
0x1282   :  { %v1936_v44 = vmul.f32 %v4784_v41, %v1928_v27 }
0x1284   :  { %v6010_v16 = vpop.eup %6009  ;;  %v1944_v48 = vadd.f32 %v4785_v38, %v1936_v44 }
0x1285   :  { %v1927_v33 = vmul.f32 %v6010_v16, %v1921_v32 }
0x1287   :  { %v1935_v45 = vmul.f32 %v4784_v41, %v1927_v33 }
0x1289   :  { %v1943_v49 = vadd.f32 %v4785_v38, %v1935_v45  ;;  %v4806_v38 = vld [vmem:[#allocation6] ss:$0 sm:$0xff] }
0x128b   :  { %v7137_v51 = vpack.c.bf16 %v1944_v48, %v1943_v49 }
0x1349   :  { %v2350_v30 = vpop.f32.mrb[44].mxu0 }
0x134a   :  { %v5440_v40 = vpop.f32.mrb[45].mxu0 }
0x134b   :  { %v2353_v34 = vpop.f32.mrb[46].mxu0 }
0x134c   :  { %v2357_v42 = vpack.c.bf16 %v2353_v34, %v2350_v30  ;;  %v5441_v43 = vpop.f32.mrb[47].mxu0 }
0x134e   :  { %5447 = vmatmul.mubr.msk.bf16.vlgmr.msra.gmra.mrb[44].mxu1 %vm429_vm1, %v2357_v42 }
0x134f   :  { %5459 = vmatpush3.bf16.msra.mxu1 %v5929_v39  ;;  %5462 = vmatprep.mubr.msk.bf16.mxu1 %vm6396_vm0, %v6395_v0 }
0x1350   :  { %5460 = vmatprep.subr.bf16.mxu1 %v6395_v0 }
0x1353   :  { %5461 = vmatpush3.bf16.msra.mxu1 %v5930_v35 }
0x1354   :  { %5474 = vmatprep.subr.bf16.mxu1 %v6395_v0 }
0x1356   :  { %5463 = vmatmul.mubr.msk.bf16.vlgmr.msra.gmra.mrb[48].mxu1 %vm429_vm1, %v7137_v51 }
0x1357   :  { %5482 = vmatprep.mubr.msk.bf16.mxu1 %vm6396_vm0, %v6395_v0 }
0x1421   :  { %v2413_v55 = vpop.f32.mrb[44].mxu1 }
0x1422   :  { %v2414_v56 = vadd.f32 %v4802_v3, %v2413_v55  ;;  %v5448_v4 = vpop.f32.mrb[45].mxu1 }
0x1423   :  { %v2416_v60 = vpop.f32.mrb[46].mxu1  ;;  %v4807_v4 = vld [vmem:[#allocation7] ss:$0 sm:$0xff] }
0x1424   :  { %v7146_v62 = vadd.f32 %v2414_v56, %v7004_v52  ;;  %v2417_v46 = vadd.f32 %v4802_v3, %v2416_v60  ;;  %v5449_v2 = vpop.f32.mrb[47].mxu1  ;;  %v4812_v52 = vld [vmem:[%s7599_s12] ss:$0 sm:$0xff] }
0x1426   :  { %v7149_v5 = vadd.f32 %v2417_v46, %v7007_v54  ;;  %v2424_v47 = vsel %vm429_vm1, %v7146_v62, 0.0  ;;  %v2432_v6 = vmul.f32 %v7146_v62, %v7146_v62 }
0x1427   :  { %2425 = vadd.xlane.f32.xlu0 %v2424_v47  ;;  %v5933_v47 = vld [vmem:[%s7601_s9] sm:$0xff]  }
0x1428   :  { %v2427_v7 = vsel %vm429_vm1, %v7149_v5, 0.0  ;;  %v2433_v8 = vmul.f32 %v7149_v5, %v7149_v5  ;;  %v2434_v54 = vsel %vm429_vm1, %v2432_v6, 0.0 }
0x1429   :  { %2428 = vadd.xlane.f32.xlu1 %v2427_v7  ;;  %v2611_v9 = vpop.f32.mrb[48].mxu1 }
0x142a   :  { %v5464_v10 = vpop.f32.mrb[49].mxu1  ;;  %v2612_v11 = vadd.f32 %v4812_v52, %v2611_v9  ;;  %v2437_v13 = vsel %vm429_vm1, %v2433_v8, 0.0 }
0x142b   :  { %2435 = vadd.xlane.f32.xlu0 %v2434_v54  ;;  %v2614_v36 = vpop.f32.mrb[50].mxu1 }
0x142c   :  { %v2615_v12 = vadd.f32 %v4812_v52, %v2614_v36  ;;  %v5465_v37 = vpop.f32.mrb[51].mxu1 }
0x142d   :  { %2438 = vadd.xlane.f32.xlu1 %v2437_v13 }
0x142e   :  { %v2677_v14 = vpack.c.bf16 %v2615_v12, %v2612_v11  ;;  %v4816_v11 = vld [vmem:[%s7603_s30] ss:$0 sm:$0xff] }
0x1430   :  { %v2678_v15 = vmul.bf16 %v7102_v58, %v2677_v14  ;;  %v2679_v18 = vmul.bf16 %v7106_v61, %v2677_v14  ;;  %v2680_v20 = vmul.bf16 %v7111_v63, %v2677_v14  ;;  %v2681_v22 = vmul.bf16 %v7116_v1, %v2677_v14 }
0x1432   :  { %v2692_v17 = vsel %vm429_vm1, %v2678_v15, 0  ;;  %v2695_v19 = vsel %vm429_vm1, %v2679_v18, 0  ;;  %v2698_v21 = vsel %vm429_vm1, %v2680_v20, 0  ;;  %v2701_v23 = vsel %vm429_vm1, %v2681_v22, 0 }
0x1433   :  { %5475 = vmatpush3.bf16.xpose.msra.mxu1 %v2692_v17 }
0x1434   :  { %5476 = vmatprep.subr.bf16.mxu1 %v6395_v0 }
0x143b   :  { %5477 = vmatpush3.bf16.xpose.msra.mxu1 %v2695_v19  ;;  %v7209_v19 = vld [vmem:[%s7604_s22] sm:$0xff] }
0x143c   :  { %5478 = vmatprep.subr.bf16.mxu1 %v6395_v0 }
0x1443   :  { %5479 = vmatpush3.bf16.xpose.msra.mxu1 %v2698_v21  ;;  %v7212_v21 = vld [vmem:[%s7604_s22 + $0x8] sm:$0xff] }
0x1444   :  { %5480 = vmatprep.subr.bf16.mxu1 %v6395_v0 }
0x144b   :  { %5481 = vmatpush3.bf16.xpose.msra.mxu1 %v2701_v23 }
0x144c   :  { %5517 = vmatprep.subr.bf16.mxu1 %v6395_v0 }
0x14b4   :  { %v2426_v26 = vpop.xlane.xlu0 %2425 }
0x14b5   :  { %v2430_v28 = vmul.f32 0.03125, %v2426_v26 }
0x14b6   :  { %v2429_v29 = vpop.xlane.xlu1 %2428 }
0x14b7   :  { %v2431_v31 = vmul.f32 0.03125, %v2429_v29  ;;  %v2442_v32 = vmul.f32 %v2430_v28, %v2430_v28  ;;  %v2448_v45 = vsub.f32 %v7146_v62, %v2430_v28  ;;  %v5934_v62 = vld [vmem:[%s7601_s9 + $0x8] sm:$0xff]  }
0x14b8   :  { %v2436_v16 = vpop.xlane.xlu0 %2435 }
0x14b9   :  { %v2440_v27 = vmul.f32 0.03125, %v2436_v16  ;;  %v2443_v33 = vmul.f32 %v2431_v31, %v2431_v31  ;;  %v2449_v48 = vsub.f32 %v7149_v5, %v2431_v31  ;;  %v4808_v5 = vld [vmem:[%s7602_s5] ss:$0 sm:$0xff] }
0x14ba   :  { %v2439_v30 = vpop.xlane.xlu1 %2438 }
0x14bb   :  { %v2444_v40 = vsub.f32 %v2440_v27, %v2442_v32  ;;  %v2441_v34 = vmul.f32 0.03125, %v2439_v30 }
0x14bd   :  { %v2446_v39 = vmax.f32 %v2444_v40, 0.0  ;;  %v2445_v41 = vsub.f32 %v2441_v34, %v2443_v33 }
0x14bf   :  { %v2450_v42 = vadd.f32 1e-05, %v2446_v39  ;;  %v2447_v43 = vmax.f32 %v2445_v41, 0.0 }
0x14c1   :  { %6011 = vrsqrt.f32 %v2450_v42  ;;  %v2451_v44 = vadd.f32 1e-05, %v2447_v43 }
0x14c3   :  { %6013 = vrsqrt.f32 %v2451_v44  ;;  %v5935_v44 = vld [vmem:[%s7605_s21] sm:$0xff]  }
0x14cb   :  { %v6012_v35 = vpop.eup %6011 }
0x14cc   :  { %v2454_v49 = vmul.f32 %v6012_v35, %v2448_v45 }
0x14cd   :  { %v6014_v3 = vpop.eup %6013 }
0x14ce   :  { %v2455_v55 = vmul.f32 %v6014_v3, %v2449_v48  ;;  %v2462_v56 = vmul.f32 %v4806_v38, %v2454_v49 }
0x14d0   :  { %v2463_v60 = vmul.f32 %v4806_v38, %v2455_v55  ;;  %v7180_v46 = vadd.f32 %v4807_v4, %v2462_v56  ;;  %v5936_v56 = vld [vmem:[%s7605_s21 + $0x8] sm:$0xff]  }
0x14d2   :  { %v7182_v2 = vadd.f32 %v4807_v4, %v2463_v60 }
0x14d4   :  { %v2492_v6 = vpack.c.bf16 %v7182_v2, %v7180_v46 }
0x14d6   :  { %5455 = vmatmul.mubr.msk.bf16.vlgmr.msra.gmra.mrb[48].mxu0 %vm429_vm1, %v2492_v6 }
0x14d7   :  { %5467 = vmatpush3.bf16.msra.mxu0 %v5933_v47  ;;  %5470 = vmatprep.mubr.msk.bf16.mxu0 %vm6396_vm0, %v6395_v0 }
0x14d8   :  { %5468 = vmatprep.subr.bf16.mxu0 %v6395_v0 }
0x14db   :  { %5469 = vmatpush3.bf16.msra.mxu0 %v5934_v62 }
0x14dc   :  { %5772 = vmatprep.subr.bf16.mxu0 %v6817_v50 }
0x14de   :  { %5471 = vmatmul.mubr.msk.bf16.vlgmr.msra.gmra.mrb[52].mxu0 %vm429_vm1, %v7137_v51 }
0x14df   :  { %5774 = vmatpush3.bf16.msra.mxu0 %v6817_v50 }
0x14e0   :  { %5776 = vmatprep.subr.bf16.mxu0 %v6823_v53 }
0x14e3   :  { %5778 = vmatpush3.bf16.msra.mxu0 %v6823_v53 }
0x14e4   :  { %5780 = vmatprep.subr.bf16.mxu0 %v6830_v57 }
0x14e7   :  { %5782 = vmatpush3.bf16.msra.mxu0 %v6830_v57 }
0x14e8   :  { %5784 = vmatprep.subr.bf16.mxu0 %v6833_v59 }
0x14eb   :  { %5786 = vmatpush3.bf16.msra.mxu0 %v6833_v59 }
0x14ec   :  { %5505 = vmatprep.subr.bf16.mxu0 %v6395_v0 }
0x15a9   :  { %v2549_v7 = vpop.f32.mrb[48].mxu0 }
0x15aa   :  { %v5456_v8 = vpop.f32.mrb[49].mxu0  ;;  %v2550_v9 = vadd.f32 %v4808_v5, %v2549_v7 }
0x15ab   :  { %v2552_v52 = vpop.f32.mrb[50].mxu0 }
0x15ac   :  { %v2553_v10 = vadd.f32 %v4808_v5, %v2552_v52  ;;  %v5457_v54 = vpop.f32.mrb[51].mxu0  ;;  %v4824_v5 = vld [vmem:[%s7606_s29] ss:$0 sm:$0xff] }
0x15ae   :  { %v2687_v36 = vpack.c.bf16 %v2553_v10, %v2550_v9 }
0x15b0   :  { %5483 = vmatmul.mubr.msk.bf16.vlgmr.msra.gmra.mrb[52].mxu1 %vm429_vm1, %v2687_v36 }
0x15b1   :  { %v2670_v12 = vpop.f32.mrb[52].mxu0  ;;  %5521 = vmatprep.mubr.msk.bf16.mxu1 %vm6396_vm0, %v6395_v0  ;;  %5518 = vmatpush3.bf16.msra.mxu1 %v5935_v44 }
0x15b2   :  { %v5472_v37 = vpop.f32.mrb[53].mxu0  ;;  %v2671_v14 = vadd.f32 %v4816_v11, %v2670_v12  ;;  %5519 = vmatprep.subr.bf16.mxu1 %v6395_v0 }
0x15b3   :  { %v2673_v13 = vpop.f32.mrb[54].mxu0 }
0x15b4   :  { %v2674_v15 = vadd.f32 %v4816_v11, %v2673_v13  ;;  %v5473_v17 = vpop.f32.mrb[55].mxu0 }
0x15b5   :  { %5520 = vmatpush3.bf16.msra.mxu1 %v5936_v56  ;;  %v5937_v17 = vld [vmem:[%s7607_s23] sm:$0xff]  }
0x15b6   :  { %v2682_v18 = vpack.c.bf16 %v2674_v15, %v2671_v14  ;;  %5533 = vmatprep.subr.bf16.mxu1 %v6395_v0 }
0x15b8   :  { %v2683_v39 = vmul.bf16 %v7102_v58, %v2682_v18  ;;  %v2684_v41 = vmul.bf16 %v7106_v61, %v2682_v18  ;;  %v2685_v42 = vmul.bf16 %v7111_v63, %v2682_v18  ;;  %v2686_v43 = vmul.bf16 %v7116_v1, %v2682_v18  ;;  %v5938_v18 = vld [vmem:[%s7607_s23 + $0x8] sm:$0xff]  }
0x1683   :  { %v2737_v20 = vpop.f32.mrb[52].mxu1 }
0x1684   :  { %v2738_v22 = vadd.f32 %v2737_v20, %v7209_v19  ;;  %v5484_v23 = vpop.f32.mrb[53].mxu1  ;;  %v5940_v20 = vld [vmem:[%s7608_s17 + $0x8] sm:$0xff]  }
0x1685   :  { %v2740_v24 = vpop.f32.mrb[54].mxu1 }
0x1686   :  { %v2741_v25 = vadd.f32 %v2740_v24, %v7212_v21  ;;  %v5485_v26 = vpop.f32.mrb[55].mxu1  ;;  %v2744_v28 = vsel %vm683_vm2, %v2738_v22, -inf }
0x1687   :  { %2745 = vmax.xlane.f32.xlu0 %v2744_v28 }
0x1688   :  { %v2747_v29 = vsel %vm683_vm2, %v2741_v25, -inf }
0x1689   :  { %2748 = vmax.xlane.f32.xlu1 %v2747_v29 }
0x1714   :  { %v2746_v31 = vpop.xlane.xlu0 %2745 }
0x1715   :  { %v2750_v16 = vsub.f32 %v2738_v22, %v2746_v31 }
0x1716   :  { %v2749_v32 = vpop.xlane.xlu1 %2748 }
0x1717   :  { %v2752_v27 = vmul.f32 1.442695, %v2750_v16  ;;  %v2751_v30 = vsub.f32 %v2741_v25, %v2749_v32 }
0x1719   :  { %6015 = vpow2.f32 %v2752_v27  ;;  %v2754_v33 = vmul.f32 1.442695, %v2751_v30 }
0x171b   :  { %6017 = vpow2.f32 %v2754_v33 }
0x1723   :  { %v6016_v40 = vpop.eup %6015 }
0x1724   :  { %5502 = vmatprep.mubr.msk.f32.mxu0 %vm683_vm2, %v6016_v40 }
0x1725   :  { %v6018_v34 = vpop.eup %6017 }
0x1726   :  { %5503 = vmatmul.mubr.msk.f32.vlgmr.msra.gmra.mrb[56].mxu0 %vm683_vm2, %v6018_v34 }
0x1727   :  { %5506 = vmatpush3.bf16.msra.mxu0 %v2683_v39  ;;  %5513 = vmatprep.mubr.msk.bf16.mxu0 %vm6396_vm0, %v6395_v0 }
0x1728   :  { %5507 = vmatprep.subr.bf16.mxu0 %v6395_v0 }
0x172b   :  { %5508 = vmatpush3.bf16.msra.mxu0 %v2684_v41 }
0x172c   :  { %5509 = vmatprep.subr.bf16.mxu0 %v6395_v0 }
0x172f   :  { %5510 = vmatpush3.bf16.msra.mxu0 %v2685_v42 }
0x1730   :  { %5511 = vmatprep.subr.bf16.mxu0 %v6395_v0 }
0x1733   :  { %5512 = vmatpush3.bf16.msra.mxu0 %v2686_v43  ;;  %v4828_v43 = vld [vmem:[#allocation9] ss:$0 sm:$0xff] }
0x1734   :  { %5525 = vmatprep.subr.bf16.mxu0 %v6395_v0 }
0x17f9   :  { %v5504_v45 = vpop.f32.mrb[56].mxu0 }
0x17fa   :  { %6019 = vrcp.f32 %v5504_v45  ;;  %v2828_v35 = vpop.f32.mrb[57].mxu0 }
0x17fb   :  { %6021 = vrcp.f32 %v2828_v35 }
0x1804   :  { %v6020_v38 = vpop.eup %6019 }
0x1805   :  { %v6022_v48 = vpop.eup %6021  ;;  %v2840_v49 = vmul.f32 %v6020_v38, %v6018_v34 }
0x1806   :  { %v2838_v3 = vmul.f32 %v6022_v48, %v6016_v40 }
0x1808   :  { %v2841_v55 = vpack.c.bf16 %v2840_v49, %v2838_v3  ;;  %v4829_v49 = vld [vmem:[#allocation10] ss:$0 sm:$0xff] }
0x180a   :  { %5514 = vmatmul.mubr.msk.bf16.vlgmr.msra.gmra.mrb[60].mxu0 %vm683_vm2, %v2841_v55 }
0x180b   :  { %5529 = vmatprep.mubr.msk.bf16.mxu0 %vm6396_vm0, %v6395_v0  ;;  %5526 = vmatpush3.bf16.msra.mxu0 %v5937_v17 }
0x180c   :  { %5527 = vmatprep.subr.bf16.mxu0 %v6395_v0 }
0x180f   :  { %5528 = vmatpush3.bf16.msra.mxu0 %v5938_v18 }
0x1810   :  { %5545 = vmatprep.subr.bf16.mxu0 %v6395_v0 }
0x18dd   :  { %v2879_v4 = vpop.f32.mrb[60].mxu0 }
0x18de   :  { %v5515_v60 = vpop.f32.mrb[61].mxu0 }
0x18df   :  { %v2882_v47 = vpop.f32.mrb[62].mxu0  ;;  %v5941_v60 = vld [vmem:[%s7608_s17 + $0x10] sm:$0xff]  }
0x18e0   :  { %v2886_v6 = vpack.c.bf16 %v2882_v47, %v2879_v4  ;;  %v5516_v62 = vpop.f32.mrb[63].mxu0  ;;  %v5942_v47 = vld [vmem:[%s7608_s17 + $0x18] sm:$0xff]  }
0x18e2   :  { %5522 = vmatmul.mubr.msk.bf16.vlgmr.msra.gmra.mrb[56].mxu1 %vm429_vm1, %v2886_v6  ;;  %v4830_v6 = vld [vmem:[%s7609_s26] ss:$0 sm:$0xff] }
0x18e3   :  { %5541 = vmatprep.mubr.msk.bf16.mxu1 %vm6396_vm0, %v6395_v0 }
0x19b5   :  { %v2942_v7 = vpop.f32.mrb[56].mxu1 }
0x19b6   :  { %v2943_v8 = vadd.f32 %v4824_v5, %v2942_v7  ;;  %v5523_v52 = vpop.f32.mrb[57].mxu1 }
0x19b7   :  { %v2945_v9 = vpop.f32.mrb[58].mxu1 }
0x19b8   :  { %v2949_v10 = vadd.f32 %v2943_v8, %v7180_v46  ;;  %v2946_v54 = vadd.f32 %v4824_v5, %v2945_v9  ;;  %v5524_v36 = vpop.f32.mrb[59].mxu1 }
0x19ba   :  { %v2950_v11 = vadd.f32 %v2946_v54, %v7182_v2  ;;  %v2953_v12 = vsel %vm429_vm1, %v2949_v10, 0.0  ;;  %v2961_v37 = vmul.f32 %v2949_v10, %v2949_v10  ;;  %v5939_v2 = vld [vmem:[%s7608_s17] sm:$0xff]  }
0x19bb   :  { %2954 = vadd.xlane.f32.xlu0 %v2953_v12  ;;  %5534 = vmatpush3.bf16.msra.mxu1 %v5939_v2 }
0x19bc   :  { %v2956_v13 = vsel %vm429_vm1, %v2950_v11, 0.0  ;;  %v2962_v14 = vmul.f32 %v2950_v11, %v2950_v11  ;;  %v2963_v15 = vsel %vm429_vm1, %v2961_v37, 0.0  ;;  %5535 = vmatprep.subr.bf16.mxu1 %v6395_v0 }
0x19bd   :  { %2957 = vadd.xlane.f32.xlu1 %v2956_v13 }
0x19be   :  { %v2966_v46 = vsel %vm429_vm1, %v2962_v14, 0.0 }
0x19bf   :  { %2964 = vadd.xlane.f32.xlu0 %v2963_v15  ;;  %5536 = vmatpush3.bf16.msra.mxu1 %v5940_v20 }
0x19c0   :  { %5537 = vmatprep.subr.bf16.mxu1 %v6395_v0 }
0x19c1   :  { %2967 = vadd.xlane.f32.xlu1 %v2966_v46 }
0x19c3   :  { %5538 = vmatpush3.bf16.msra.mxu1 %v5941_v60 }
0x19c4   :  { %5539 = vmatprep.subr.bf16.mxu1 %v6395_v0 }
0x19c7   :  { %5540 = vmatpush3.bf16.msra.mxu1 %v5942_v47 }
0x19c8   :  { %5561 = vmatprep.subr.bf16.mxu1 %v6395_v0 }
0x1a48   :  { %v2955_v22 = vpop.xlane.xlu0 %2954 }
0x1a49   :  { %v2959_v23 = vmul.f32 0.03125, %v2955_v22 }
0x1a4a   :  { %v2958_v24 = vpop.xlane.xlu1 %2957 }
0x1a4b   :  { %v2960_v25 = vmul.f32 0.03125, %v2958_v24  ;;  %v2971_v28 = vmul.f32 %v2959_v23, %v2959_v23  ;;  %v2977_v41 = vsub.f32 %v2949_v10, %v2959_v23 }
0x1a4c   :  { %v2965_v26 = vpop.xlane.xlu0 %2964 }
0x1a4d   :  { %v2969_v29 = vmul.f32 0.03125, %v2965_v26  ;;  %v2972_v16 = vmul.f32 %v2960_v25, %v2960_v25  ;;  %v2978_v44 = vsub.f32 %v2950_v11, %v2960_v25  ;;  %v4834_v11 = vld [vmem:[%s7610_s28] ss:$0 sm:$0xff]  ;;  %v5943_v26 = vld [vmem:[%s7588_s8 + $0x10] sm:$0xff]  }
0x1a4e   :  { %v2968_v31 = vpop.xlane.xlu1 %2967 }
0x1a4f   :  { %v2973_v32 = vsub.f32 %v2969_v29, %v2971_v28  ;;  %v2970_v27 = vmul.f32 0.03125, %v2968_v31  ;;  %v5944_v28 = vld [vmem:[%s7593_s7 + $0x10] sm:$0xff]   ;;  %v5945_v29 = vld [vmem:[%s7588_s8 + $0x18] sm:$0xff]  }
0x1a50   :  { %v5946_v31 = vld [vmem:[%s7593_s7 + $0x18] sm:$0xff]  }
0x1a51   :  { %v2975_v30 = vmax.f32 %v2973_v32, 0.0  ;;  %v2974_v33 = vsub.f32 %v2970_v27, %v2972_v16 }
0x1a53   :  { %v2979_v40 = vadd.f32 1e-05, %v2975_v30  ;;  %v2976_v34 = vmax.f32 %v2974_v33, 0.0 }
0x1a55   :  { %6023 = vrsqrt.f32 %v2979_v40  ;;  %v2980_v39 = vadd.f32 1e-05, %v2976_v34 }
0x1a57   :  { %6025 = vrsqrt.f32 %v2980_v39 }
0x1a5f   :  { %v6024_v42 = vpop.eup %6023 }
0x1a60   :  { %v2983_v45 = vmul.f32 %v6024_v42, %v2977_v41 }
0x1a61   :  { %v6026_v35 = vpop.eup %6025 }
0x1a62   :  { %v2984_v38 = vmul.f32 %v6026_v35, %v2978_v44  ;;  %v2991_v48 = vmul.f32 %v4828_v43, %v2983_v45 }
0x1a64   :  { %v2992_v3 = vmul.f32 %v4828_v43, %v2984_v38  ;;  %v2999_v55 = vadd.f32 %v4829_v49, %v2991_v48 }
0x1a66   :  { %v3000_v56 = vadd.f32 %v4829_v49, %v2992_v3 }
0x1a68   :  { %v3015_v4 = vpack.c.bf16 %v3000_v56, %v2999_v55 }
0x1a6a   :  { %5530 = vmatmul.mubr.msk.bf16.vlgmr.msra.gmra.mrb[64].mxu0 %vm429_vm1, %v3015_v4 }
0x1a6b   :  { %5549 = vmatprep.mubr.msk.bf16.mxu0 %vm6396_vm0, %v6395_v0  ;;  %5546 = vmatpush3.bf16.msra.mxu0 %v5943_v26 }
0x1a6c   :  { %5547 = vmatprep.subr.bf16.mxu0 %v6395_v0 }
0x1a6f   :  { %5548 = vmatpush3.bf16.msra.mxu0 %v5945_v29 }
0x1a70   :  { %5553 = vmatprep.subr.bf16.mxu0 %v6395_v0 }
0x1b3d   :  { %v3071_v62 = vpop.f32.mrb[64].mxu0 }
0x1b3e   :  { %v3072_v5 = vadd.f32 %v4830_v6, %v3071_v62  ;;  %v5531_v7 = vpop.f32.mrb[65].mxu0  ;;  %v4841_v62 = vld [vmem:[#allocation13] ss:$0 sm:$0xff] }
0x1b3f   :  { %v3074_v8 = vpop.f32.mrb[66].mxu0 }
0x1b40   :  { %v3075_v52 = vadd.f32 %v4830_v6, %v3074_v8  ;;  %v5532_v9 = vpop.f32.mrb[67].mxu0  ;;  %v3078_v10 = vmax.f32 %v3072_v5, 0.0 }
0x1b42   :  { %v3079_v54 = vmax.f32 %v3075_v52, 0.0  ;;  %v5947_v52 = vld [vmem:[%s7590_s19 + $0x10] sm:$0xff]  }
0x1b44   :  { %v3080_v36 = vpack.c.bf16 %v3079_v54, %v3078_v10  ;;  %v5948_v10 = vld [vmem:[%s7590_s19 + $0x18] sm:$0xff]   ;;  %v4862_v54 = vld [vmem:[%s7591_s2 + $0x1] ss:$0 sm:$0xff] }
0x1b46   :  { %5542 = vmatmul.mubr.msk.bf16.vlgmr.msra.gmra.mrb[60].mxu1 %vm683_vm2, %v3080_v36 }
0x1b47   :  { %5565 = vmatprep.mubr.msk.bf16.mxu1 %vm6396_vm0, %v6395_v0  ;;  %5562 = vmatpush3.bf16.msra.mxu1 %v5944_v28 }
0x1b48   :  { %5563 = vmatprep.subr.bf16.mxu1 %v6395_v0 }
0x1b4b   :  { %5564 = vmatpush3.bf16.msra.mxu1 %v5946_v31 }
0x1b4c   :  { %5788 = vmatprep.subr.bf16.mxu1 %v6817_v50 }
0x1c19   :  { %v3148_v12 = vpop.f32.mrb[60].mxu1 }
0x1c1a   :  { %v3149_v37 = vadd.f32 %v4834_v11, %v3148_v12  ;;  %v5543_v13 = vpop.f32.mrb[61].mxu1 }
0x1c1b   :  { %v3151_v14 = vpop.f32.mrb[62].mxu1 }
0x1c1c   :  { %v3155_v15 = vadd.f32 %v3149_v37, %v2999_v55  ;;  %v3152_v46 = vadd.f32 %v4834_v11, %v3151_v14  ;;  %v5544_v17 = vpop.f32.mrb[63].mxu1  ;;  %v4840_v55 = vld [vmem:[#allocation12] ss:$0 sm:$0xff]  ;;  %v4870_v11 = vld [vmem:[%s7595_s10 + $0x1] ss:$0 sm:$0xff] }
0x1c1e   :  { %v3156_v18 = vadd.f32 %v3152_v46, %v3000_v56  ;;  %v3159_v2 = vsel %vm429_vm1, %v3155_v15, 0.0  ;;  %v3167_v20 = vmul.f32 %v3155_v15, %v3155_v15 }
0x1c1f   :  { %3160 = vadd.xlane.f32.xlu0 %v3159_v2 }
0x1c20   :  { %v3162_v22 = vsel %vm429_vm1, %v3156_v18, 0.0  ;;  %v3168_v23 = vmul.f32 %v3156_v18, %v3156_v18  ;;  %v3169_v24 = vsel %vm429_vm1, %v3167_v20, 0.0 }
0x1c21   :  { %3163 = vadd.xlane.f32.xlu1 %v3162_v22 }
0x1c22   :  { %v3172_v25 = vsel %vm429_vm1, %v3168_v23, 0.0 }
0x1c23   :  { %3170 = vadd.xlane.f32.xlu0 %v3169_v24 }
0x1c25   :  { %3173 = vadd.xlane.f32.xlu1 %v3172_v25  ;;  %v4866_v25 = vld [vmem:[%s7592_s4 + $0x1] ss:$0 sm:$0xff] }
0x1cac   :  { %v3161_v16 = vpop.xlane.xlu0 %3160 }
0x1cad   :  { %v3165_v32 = vmul.f32 0.03125, %v3161_v16 }
0x1cae   :  { %v3164_v27 = vpop.xlane.xlu1 %3163 }
0x1caf   :  { %v3166_v30 = vmul.f32 0.03125, %v3164_v27  ;;  %v3177_v40 = vmul.f32 %v3165_v32, %v3165_v32  ;;  %v3183_v49 = vsub.f32 %v3155_v15, %v3165_v32 }
0x1cb0   :  { %v3171_v33 = vpop.xlane.xlu0 %3170 }
0x1cb1   :  { %v3175_v34 = vmul.f32 0.03125, %v3171_v33  ;;  %v3178_v41 = vmul.f32 %v3166_v30, %v3166_v30  ;;  %v3184_v56 = vsub.f32 %v3156_v18, %v3166_v30 }
0x1cb2   :  { %v3174_v39 = vpop.xlane.xlu1 %3173 }
0x1cb3   :  { %v3179_v42 = vsub.f32 %v3175_v34, %v3177_v40  ;;  %v3176_v43 = vmul.f32 0.03125, %v3174_v39 }
0x1cb5   :  { %v3181_v44 = vmax.f32 %v3179_v42, 0.0  ;;  %v3180_v45 = vsub.f32 %v3176_v43, %v3178_v41 }
0x1cb7   :  { %v3185_v35 = vadd.f32 1e-05, %v3181_v44  ;;  %v3182_v38 = vmax.f32 %v3180_v45, 0.0  ;;  %v6067_v45 = vld [vmem:[%s7594_s6] sm:$0xff] }
0x1cb9   :  { %6027 = vrsqrt.f32 %v3185_v35  ;;  %v3186_v48 = vadd.f32 1e-05, %v3182_v38 }
0x1cbb   :  { %6029 = vrsqrt.f32 %v3186_v48 }
0x1cc3   :  { %v6028_v3 = vpop.eup %6027 }
0x1cc4   :  { %v3189_v4 = vmul.f32 %v6028_v3, %v3183_v49  ;;  %v6068_v49 = vld [vmem:[%s7594_s6 + $0x8] sm:$0xff] }
0x1cc5   :  { %v6030_v60 = vpop.eup %6029 }
0x1cc6   :  { %v3190_v47 = vmul.f32 %v6030_v60, %v3184_v56  ;;  %v3197_v6 = vmul.f32 %v4840_v55, %v3189_v4 }
0x1cc8   :  { %v3198_v5 = vmul.f32 %v4840_v55, %v3190_v47  ;;  %v7279_v7 = vadd.f32 %v4841_v62, %v3197_v6 }
0x1cca   :  { %v7281_v8 = vadd.f32 %v4841_v62, %v3198_v5 }
0x1ccc   :  { %v3235_v9 = vpack.c.bf16 %v7281_v8, %v7279_v7 }
0x1cce   :  { %5550 = vmatmul.mubr.msk.bf16.vlgmr.msra.gmra.mrb[68].mxu0 %vm429_vm1, %v3235_v9  ;;  %5566 = vmatmul.mubr.msk.bf16.vlgmr.msra.gmra.mrb[64].mxu1 %vm429_vm1, %v3235_v9 }
0x1ccf   :  { %5554 = vmatpush3.bf16.msra.mxu0 %v5947_v52  ;;  %5557 = vmatprep.mubr.msk.bf16.mxu0 %vm6396_vm0, %v6395_v0 }
0x1cd0   :  { %5555 = vmatprep.subr.bf16.mxu0 %v6395_v0  ;;  %5790 = vmatpush3.bf16.msra.mxu1 %v6817_v50 }
0x1cd1   :  { %5792 = vmatprep.subr.bf16.mxu1 %v6823_v53 }
0x1cd3   :  { %5556 = vmatpush3.bf16.msra.mxu0 %v5948_v10 }
0x1cd4   :  { %5569 = vmatprep.subr.bf16.mxu0 %v6395_v0  ;;  %5794 = vmatpush3.bf16.msra.mxu1 %v6823_v53 }
0x1cd5   :  { %5796 = vmatprep.subr.bf16.mxu1 %v6830_v57 }
0x1cd6   :  { %5558 = vmatmul.mubr.msk.bf16.vlgmr.msra.gmra.mrb[72].mxu0 %vm429_vm1, %v3235_v9 }
0x1cd7   :  { %5577 = vmatprep.mubr.msk.bf16.mxu0 %vm6396_vm0, %v6395_v0 }
0x1cd8   :  { %5798 = vmatpush3.bf16.msra.mxu1 %v6830_v57 }
0x1cd9   :  { %5800 = vmatprep.subr.bf16.mxu1 %v6833_v59 }
0x1cdc   :  { %5802 = vmatpush3.bf16.msra.mxu1 %v6833_v59 }
0x1cdd   :  { %5600 = vmatprep.subr.bf16.mxu1 %v6395_v0 }
0x1da1   :  { %v3291_v36 = vpop.f32.mrb[68].mxu0  ;;  %v3409_v12 = vpop.f32.mrb[64].mxu1 }
0x1da2   :  { %v5551_v37 = vpop.f32.mrb[69].mxu0  ;;  %v5567_v13 = vpop.f32.mrb[65].mxu1  ;;  %v3292_v46 = vadd.f32 %v4862_v54, %v3291_v36  ;;  %v3410_v17 = vadd.f32 %v4870_v11, %v3409_v12  ;;  %v5949_v12 = vld [vmem:[%s7596_s11 + $0x10] sm:$0xff]  }
0x1da3   :  { %v3294_v14 = vpop.f32.mrb[70].mxu0  ;;  %v3412_v15 = vpop.f32.mrb[66].mxu1 }
0x1da4   :  { %v3295_v18 = vadd.f32 %v4862_v54, %v3294_v14  ;;  %v3413_v2 = vadd.f32 %v4870_v11, %v3412_v15  ;;  %v5552_v20 = vpop.f32.mrb[71].mxu0  ;;  %v5568_v22 = vpop.f32.mrb[67].mxu1 }
0x1da5   :  { %v5951_v20 = vld [vmem:[%s7597_s15 + $0x10] sm:$0xff]  }
0x1da6   :  { %v3426_v23 = vpack.c.bf16 %v3295_v18, %v3292_v46  ;;  %v3421_v24 = vpack.c.bf16 %v3413_v2, %v3410_v17 }
0x1da8   :  { %v3422_v54 = vmul.bf16 %v7102_v58, %v3421_v24  ;;  %v3423_v36 = vmul.bf16 %v7106_v61, %v3421_v24  ;;  %v3424_v11 = vmul.bf16 %v7111_v63, %v3421_v24 }
0x1da9   :  { %v3350_v26 = vpop.f32.mrb[72].mxu0 }
0x1daa   :  { %v5559_v28 = vpop.f32.mrb[73].mxu0  ;;  %v3351_v31 = vadd.f32 %v4866_v25, %v3350_v26 }
0x1dab   :  { %v3353_v29 = vpop.f32.mrb[74].mxu0 }
0x1dac   :  { %v3354_v16 = vadd.f32 %v4866_v25, %v3353_v29  ;;  %v5560_v32 = vpop.f32.mrb[75].mxu0  ;;  %v4878_v25 = vld [vmem:[%s7598_s18 + $0x1] ss:$0 sm:$0xff] }
0x1dae   :  { %v3416_v27 = vpack.c.bf16 %v3354_v16, %v3351_v31 }
0x1db0   :  { %v3417_v30 = vmul.bf16 %v7102_v58, %v3416_v27  ;;  %v3418_v40 = vmul.bf16 %v7106_v61, %v3416_v27  ;;  %v3419_v39 = vmul.bf16 %v7111_v63, %v3416_v27  ;;  %v3420_v42 = vmul.bf16 %v7116_v1, %v3416_v27 }
0x1db1   :  { %v3425_v58 = vmul.bf16 %v7116_v1, %v3421_v24  ;;  %v5950_v1 = vld [vmem:[%s7596_s11 + $0x18] sm:$0xff]  }
0x1db2   :  { %v3431_v33 = vsel %vm429_vm1, %v3417_v30, 0  ;;  %v3434_v34 = vsel %vm429_vm1, %v3418_v40, 0  ;;  %v3437_v41 = vsel %vm429_vm1, %v3419_v39, 0  ;;  %v3440_v43 = vsel %vm429_vm1, %v3420_v42, 0  ;;  %v5952_v24 = vld [vmem:[%s7597_s15 + $0x18] sm:$0xff]  }
0x1db3   :  { %5570 = vmatpush3.bf16.xpose.msra.mxu0 %v3431_v33  ;;  %v4908_v39 = vld [vmem:[%s7599_s12 + $0x1] ss:$0 sm:$0xff] }
0x1db4   :  { %5571 = vmatprep.subr.bf16.mxu0 %v6395_v0 }
0x1dbb   :  { %5572 = vmatpush3.bf16.xpose.msra.mxu0 %v3434_v34 }
0x1dbc   :  { %5573 = vmatprep.subr.bf16.mxu0 %v6395_v0 }
0x1dc3   :  { %5574 = vmatpush3.bf16.xpose.msra.mxu0 %v3437_v41 }
0x1dc4   :  { %5575 = vmatprep.subr.bf16.mxu0 %v6395_v0 }
0x1dcb   :  { %5576 = vmatpush3.bf16.xpose.msra.mxu0 %v3440_v43 }
0x1dcc   :  { %5612 = vmatprep.subr.bf16.mxu0 %v6395_v0 }
0x1dd2   :  { %5578 = vmatmul.mubr.msk.bf16.vlgmr.msra.gmra.mrb[76].mxu0 %vm429_vm1, %v3426_v23 }
0x1dd3   :  { %5616 = vmatprep.mubr.msk.bf16.mxu0 %vm6396_vm0, %v6395_v0  ;;  %5613 = vmatpush3.bf16.msra.mxu0 %v5949_v12 }
0x1dd4   :  { %5614 = vmatprep.subr.bf16.mxu0 %v6395_v0 }
0x1dd7   :  { %5615 = vmatpush3.bf16.msra.mxu0 %v5950_v1 }
0x1dd8   :  { %5628 = vmatprep.subr.bf16.mxu0 %v6395_v0 }
0x1ea5   :  { %v3476_v44 = vpop.f32.mrb[76].mxu0 }
0x1ea6   :  { %v3477_v35 = vadd.f32 %v6067_v45, %v3476_v44  ;;  %v5579_v38 = vpop.f32.mrb[77].mxu0 }
0x1ea7   :  { %v3479_v48 = vpop.f32.mrb[78].mxu0 }
0x1ea8   :  { %v3480_v3 = vadd.f32 %v6068_v49, %v3479_v48  ;;  %v5580_v55 = vpop.f32.mrb[79].mxu0  ;;  %v3483_v56 = vsel %vm683_vm2, %v3477_v35, -inf  ;;  %v7375_v49 = vld [vmem:[%s7573_s24] sm:$0xff]  }
0x1ea9   :  { %3484 = vmax.xlane.f32.xlu0 %v3483_v56  ;;  %v7381_v56 = vld [vmem:[%s7573_s24 + $0x8] sm:$0xff]  }
0x1eaa   :  { %v3486_v4 = vsel %vm683_vm2, %v3480_v3, -inf }
0x1eab   :  { %3487 = vmax.xlane.f32.xlu1 %v3486_v4 }
0x1f36   :  { %v3485_v60 = vpop.xlane.xlu0 %3484 }
0x1f37   :  { %v3489_v47 = vsub.f32 %v3477_v35, %v3485_v60 }
0x1f38   :  { %v3488_v6 = vpop.xlane.xlu1 %3487 }
0x1f39   :  { %v3491_v62 = vmul.f32 1.442695, %v3489_v47  ;;  %v3490_v5 = vsub.f32 %v3480_v3, %v3488_v6  ;;  %v7387_v47 = vld [vmem:[%s7573_s24 + $0x10] sm:$0xff]  }
0x1f3b   :  { %6031 = vpow2.f32 %v3491_v62  ;;  %v3493_v52 = vmul.f32 1.442695, %v3490_v5  ;;  %v7393_v5 = vld [vmem:[%s7573_s24 + $0x18] sm:$0xff]  }
0x1f3d   :  { %6033 = vpow2.f32 %v3493_v52 }
0x1f45   :  { %v6032_v9 = vpop.eup %6031 }
0x1f46   :  { %5597 = vmatprep.mubr.msk.f32.mxu1 %vm683_vm2, %v6032_v9 }
0x1f47   :  { %v6034_v10 = vpop.eup %6033 }
0x1f48   :  { %5598 = vmatmul.mubr.msk.f32.vlgmr.msra.gmra.mrb[22].mxu1 %vm683_vm2, %v6034_v10 }
0x1f49   :  { %5601 = vmatpush3.bf16.msra.mxu1 %v3422_v54  ;;  %5608 = vmatprep.mubr.msk.bf16.mxu1 %vm6396_vm0, %v6395_v0  ;;  %v5954_v54 = vld [vmem:[%s7600_s16 + $0x18] sm:$0xff]  }
0x1f4a   :  { %5602 = vmatprep.subr.bf16.mxu1 %v6395_v0 }
0x1f4d   :  { %5603 = vmatpush3.bf16.msra.mxu1 %v3423_v36 }
0x1f4e   :  { %5604 = vmatprep.subr.bf16.mxu1 %v6395_v0 }
0x1f51   :  { %5605 = vmatpush3.bf16.msra.mxu1 %v3424_v11 }
0x1f52   :  { %5606 = vmatprep.subr.bf16.mxu1 %v6395_v0 }
0x1f55   :  { %5607 = vmatpush3.bf16.msra.mxu1 %v3425_v58 }
0x1f56   :  { %5620 = vmatprep.subr.bf16.mxu1 %v6395_v0 }
0x201b   :  { %v5599_v37 = vpop.f32.mrb[22].mxu1 }
0x201c   :  { %6035 = vrcp.f32 %v5599_v37  ;;  %v3567_v61 = vpop.f32.mrb[23].mxu1 }
0x201d   :  { %6037 = vrcp.f32 %v3567_v61 }
0x2026   :  { %v6036_v13 = vpop.eup %6035 }
0x2027   :  { %v6038_v63 = vpop.eup %6037  ;;  %v3579_v14 = vmul.f32 %v6036_v13, %v6034_v10  ;;  %v5953_v10 = vld [vmem:[%s7600_s16 + $0x10] sm:$0xff]  }
0x2028   :  { %v3577_v15 = vmul.f32 %v6038_v63, %v6032_v9 }
0x202a   :  { %v3580_v46 = vpack.c.bf16 %v3579_v14, %v3577_v15 }
0x202c   :  { %5609 = vmatmul.mubr.msk.bf16.vlgmr.msra.gmra.mrb[68].mxu1 %vm683_vm2, %v3580_v46 }
0x202d   :  { %5624 = vmatprep.mubr.msk.bf16.mxu1 %vm6396_vm0, %v6395_v0  ;;  %5621 = vmatpush3.bf16.msra.mxu1 %v5953_v10 }
0x202e   :  { %5622 = vmatprep.subr.bf16.mxu1 %v6395_v0 }
0x2031   :  { %5623 = vmatpush3.bf16.msra.mxu1 %v5954_v54 }
0x2032   :  { %5636 = vmatprep.subr.bf16.mxu1 %v6395_v0 }
0x20ff   :  { %v3618_v17 = vpop.f32.mrb[68].mxu1 }
0x2100   :  { %v5610_v18 = vpop.f32.mrb[69].mxu1 }
0x2101   :  { %v3621_v2 = vpop.f32.mrb[70].mxu1 }
0x2102   :  { %v3625_v22 = vpack.c.bf16 %v3621_v2, %v3618_v17  ;;  %v5611_v23 = vpop.f32.mrb[71].mxu1 }
0x2104   :  { %5617 = vmatmul.mubr.msk.bf16.vlgmr.msra.gmra.mrb[80].mxu0 %vm429_vm1, %v3625_v22 }
0x2105   :  { %5629 = vmatpush3.bf16.msra.mxu0 %v5951_v20  ;;  %5632 = vmatprep.mubr.msk.bf16.mxu0 %vm6396_vm0, %v6395_v0 }
0x2106   :  { %5630 = vmatprep.subr.bf16.mxu0 %v6395_v0 }
0x2109   :  { %5631 = vmatpush3.bf16.msra.mxu0 %v5952_v24  ;;  %v4882_v24 = vld [vmem:[#allocation6 + $0x1] ss:$0 sm:$0xff] }
0x210a   :  { %5644 = vmatprep.subr.bf16.mxu0 %v6395_v0 }
0x210c   :  { %5633 = vmatmul.mubr.msk.bf16.vlgmr.msra.gmra.mrb[84].mxu0 %vm429_vm1, %v7137_v51 }
0x210d   :  { %5652 = vmatprep.mubr.msk.bf16.mxu0 %vm6396_vm0, %v6395_v0 }
0x21d7   :  { %v3681_v26 = vpop.f32.mrb[80].mxu0 }
0x21d8   :  { %v3682_v28 = vadd.f32 %v4878_v25, %v3681_v26  ;;  %v5618_v29 = vpop.f32.mrb[81].mxu0 }
0x21d9   :  { %v3684_v31 = vpop.f32.mrb[82].mxu0 }
0x21da   :  { %v7358_v16 = vadd.f32 %v3682_v28, %v7279_v7  ;;  %v3685_v32 = vadd.f32 %v4878_v25, %v3684_v31  ;;  %v5619_v27 = vpop.f32.mrb[83].mxu0 }
0x21dc   :  { %v7361_v30 = vadd.f32 %v3685_v32, %v7281_v8  ;;  %v3694_v33 = vsel %vm429_vm1, %v7358_v16, 0.0  ;;  %v3702_v40 = vmul.f32 %v7358_v16, %v7358_v16  ;;  %v4883_v32 = vld [vmem:[#allocation7 + $0x1] ss:$0 sm:$0xff] }
0x21dd   :  { %3695 = vadd.xlane.f32.xlu0 %v3694_v33 }
0x21de   :  { %v3697_v34 = vsel %vm429_vm1, %v7361_v30, 0.0  ;;  %v3703_v7 = vmul.f32 %v7361_v30, %v7361_v30  ;;  %v3704_v42 = vsel %vm429_vm1, %v3702_v40, 0.0 }
0x21df   :  { %3698 = vadd.xlane.f32.xlu1 %v3697_v34  ;;  %v3885_v41 = vpop.f32.mrb[84].mxu0  ;;  %v5955_v34 = vld [vmem:[%s7601_s9 + $0x10] sm:$0xff]  }
0x21e0   :  { %v5634_v8 = vpop.f32.mrb[85].mxu0  ;;  %v3886_v44 = vadd.f32 %v4908_v39, %v3885_v41  ;;  %v3707_v38 = vsel %vm429_vm1, %v3703_v7, 0.0 }
0x21e1   :  { %3705 = vadd.xlane.f32.xlu0 %v3704_v42  ;;  %v3888_v43 = vpop.f32.mrb[86].mxu0 }
0x21e2   :  { %v3889_v45 = vadd.f32 %v4908_v39, %v3888_v43  ;;  %v5635_v35 = vpop.f32.mrb[87].mxu0 }
0x21e3   :  { %3708 = vadd.xlane.f32.xlu1 %v3707_v38 }
0x21e4   :  { %v3951_v48 = vpack.c.bf16 %v3889_v45, %v3886_v44 }
0x21e6   :  { %v3952_v3 = vmul.bf16 %v7375_v49, %v3951_v48  ;;  %v3953_v4 = vmul.bf16 %v7381_v56, %v3951_v48  ;;  %v3954_v6 = vmul.bf16 %v7387_v47, %v3951_v48  ;;  %v3955_v52 = vmul.bf16 %v7393_v5, %v3951_v48 }
0x21e8   :  { %v3966_v55 = vsel %vm429_vm1, %v3952_v3, 0  ;;  %v3969_v60 = vsel %vm429_vm1, %v3953_v4, 0  ;;  %v3972_v62 = vsel %vm429_vm1, %v3954_v6, 0  ;;  %v3975_v9 = vsel %vm429_vm1, %v3955_v52, 0 }
0x21e9   :  { %5645 = vmatpush3.bf16.xpose.msra.mxu0 %v3966_v55 }
0x21ea   :  { %5646 = vmatprep.subr.bf16.mxu0 %v6395_v0 }
0x21f1   :  { %5647 = vmatpush3.bf16.xpose.msra.mxu0 %v3969_v60 }
0x21f2   :  { %5648 = vmatprep.subr.bf16.mxu0 %v6395_v0 }
0x21f9   :  { %5649 = vmatpush3.bf16.xpose.msra.mxu0 %v3972_v62 }
0x21fa   :  { %5650 = vmatprep.subr.bf16.mxu0 %v6395_v0 }
0x2201   :  { %5651 = vmatpush3.bf16.xpose.msra.mxu0 %v3975_v9 }
0x2202   :  { %5687 = vmatprep.subr.bf16.mxu0 %v6395_v0 }
0x226a   :  { %v3696_v36 = vpop.xlane.xlu0 %3695 }
0x226b   :  { %v3700_v11 = vmul.f32 0.03125, %v3696_v36 }
0x226c   :  { %v3699_v58 = vpop.xlane.xlu1 %3698 }
0x226d   :  { %v3701_v12 = vmul.f32 0.03125, %v3699_v58  ;;  %v3712_v61 = vmul.f32 %v3700_v11, %v3700_v11  ;;  %v3718_v22 = vsub.f32 %v7358_v16, %v3700_v11  ;;  %v5956_v16 = vld [vmem:[%s7601_s9 + $0x18] sm:$0xff]  }
0x226e   :  { %v3706_v37 = vpop.xlane.xlu0 %3705 }
0x226f   :  { %v3710_v13 = vmul.f32 0.03125, %v3706_v37  ;;  %v3713_v14 = vmul.f32 %v3701_v12, %v3701_v12  ;;  %v3719_v25 = vsub.f32 %v7361_v30, %v3701_v12  ;;  %v4904_v30 = vld [vmem:[%s7602_s5 + $0x1] ss:$0 sm:$0xff] }
0x2270   :  { %v3709_v63 = vpop.xlane.xlu1 %3708 }
0x2271   :  { %v3714_v15 = vsub.f32 %v3710_v13, %v3712_v61  ;;  %v3711_v46 = vmul.f32 0.03125, %v3709_v63  ;;  %v5957_v63 = vld [vmem:[%s7605_s21 + $0x10] sm:$0xff]  }
0x2273   :  { %v3716_v1 = vmax.f32 %v3714_v15, 0.0  ;;  %v3715_v17 = vsub.f32 %v3711_v46, %v3713_v14 }
0x2275   :  { %v3720_v18 = vadd.f32 1e-05, %v3716_v1  ;;  %v3717_v2 = vmax.f32 %v3715_v17, 0.0 }
0x2277   :  { %6039 = vrsqrt.f32 %v3720_v18  ;;  %v3721_v20 = vadd.f32 1e-05, %v3717_v2 }
0x2279   :  { %6041 = vrsqrt.f32 %v3721_v20 }
0x2281   :  { %v6040_v23 = vpop.eup %6039 }
0x2282   :  { %v3724_v26 = vmul.f32 %v6040_v23, %v3718_v22 }
0x2283   :  { %v6042_v28 = vpop.eup %6041 }
0x2284   :  { %v3725_v29 = vmul.f32 %v6042_v28, %v3719_v25  ;;  %v3732_v31 = vmul.f32 %v4882_v24, %v3724_v26 }
0x2286   :  { %v3733_v27 = vmul.f32 %v4882_v24, %v3725_v29  ;;  %v7404_v33 = vadd.f32 %v4883_v32, %v3732_v31  ;;  %v4920_v24 = vld [vmem:[%s7606_s29 + $0x1] ss:$0 sm:$0xff] }
0x2288   :  { %v7406_v40 = vadd.f32 %v4883_v32, %v3733_v27 }
0x228a   :  { %v3770_v7 = vpack.c.bf16 %v7406_v40, %v7404_v33 }
0x228c   :  { %5625 = vmatmul.mubr.msk.bf16.vlgmr.msra.gmra.mrb[72].mxu1 %vm429_vm1, %v3770_v7 }
0x228d   :  { %5637 = vmatpush3.bf16.msra.mxu1 %v5955_v34  ;;  %5640 = vmatprep.mubr.msk.bf16.mxu1 %vm6396_vm0, %v6395_v0 }
0x228e   :  { %5638 = vmatprep.subr.bf16.mxu1 %v6395_v0 }
0x2291   :  { %5639 = vmatpush3.bf16.msra.mxu1 %v5956_v16 }
0x2292   :  { %5804 = vmatprep.subr.bf16.mxu1 %v6817_v50 }
0x2294   :  { %5641 = vmatmul.mubr.msk.bf16.vlgmr.msra.gmra.mrb[76].mxu1 %vm429_vm1, %v7137_v51 }
0x2295   :  { %5806 = vmatpush3.bf16.msra.mxu1 %v6817_v50 }
0x2296   :  { %5808 = vmatprep.subr.bf16.mxu1 %v6823_v53 }
0x2299   :  { %5810 = vmatpush3.bf16.msra.mxu1 %v6823_v53  ;;  %v4912_v53 = vld [vmem:[%s7603_s30 + $0x1] ss:$0 sm:$0xff] }
0x229a   :  { %5812 = vmatprep.subr.bf16.mxu1 %v6830_v57 }
0x229d   :  { %5814 = vmatpush3.bf16.msra.mxu1 %v6830_v57 }
0x229e   :  { %5816 = vmatprep.subr.bf16.mxu1 %v6833_v59 }
0x22a1   :  { %5818 = vmatpush3.bf16.msra.mxu1 %v6833_v59 }
0x22a2   :  { %5675 = vmatprep.subr.bf16.mxu1 %v6395_v0 }
0x235f   :  { %v3826_v39 = vpop.f32.mrb[72].mxu1 }
0x2360   :  { %v5626_v51 = vpop.f32.mrb[73].mxu1  ;;  %v3827_v50 = vadd.f32 %v4904_v30, %v3826_v39 }
0x2361   :  { %v3829_v41 = vpop.f32.mrb[74].mxu1 }
0x2362   :  { %v3830_v8 = vadd.f32 %v4904_v30, %v3829_v41  ;;  %v5627_v42 = vpop.f32.mrb[75].mxu1  ;;  %v5959_v41 = vld [vmem:[%s7607_s23 + $0x10] sm:$0xff]  }
0x2364   :  { %v3961_v43 = vpack.c.bf16 %v3830_v8, %v3827_v50  ;;  %v5960_v50 = vld [vmem:[%s7607_s23 + $0x18] sm:$0xff]   ;;  %v5962_v8 = vld [vmem:[%s7608_s17 + $0x28] sm:$0xff]  }
0x2366   :  { %5653 = vmatmul.mubr.msk.bf16.vlgmr.msra.gmra.mrb[88].mxu0 %vm429_vm1, %v3961_v43 }
0x2367   :  { %v3944_v44 = vpop.f32.mrb[76].mxu1  ;;  %5691 = vmatprep.mubr.msk.bf16.mxu0 %vm6396_vm0, %v6395_v0  ;;  %5688 = vmatpush3.bf16.msra.mxu0 %v5957_v63  ;;  %v5964_v63 = vld [vmem:[%s7608_s17 + $0x38] sm:$0xff]  }
0x2368   :  { %v5642_v57 = vpop.f32.mrb[77].mxu1  ;;  %v3945_v59 = vadd.f32 %v4912_v53, %v3944_v44  ;;  %5689 = vmatprep.subr.bf16.mxu0 %v6395_v0 }
0x2369   :  { %v3947_v45 = vpop.f32.mrb[78].mxu1 }
0x236a   :  { %v3948_v35 = vadd.f32 %v4912_v53, %v3947_v45  ;;  %v5643_v38 = vpop.f32.mrb[79].mxu1 }
0x236c   :  { %v3956_v48 = vpack.c.bf16 %v3948_v35, %v3945_v59 }
0x236e   :  { %v3957_v37 = vmul.bf16 %v7375_v49, %v3956_v48  ;;  %v3958_v61 = vmul.bf16 %v7381_v56, %v3956_v48  ;;  %v3959_v13 = vmul.bf16 %v7387_v47, %v3956_v48  ;;  %v3960_v49 = vmul.bf16 %v7393_v5, %v3956_v48  ;;  %v5958_v5 = vld [vmem:[%s7605_s21 + $0x18] sm:$0xff]  }
0x236f   :  { %5690 = vmatpush3.bf16.msra.mxu0 %v5958_v5 }
0x2370   :  { %5703 = vmatprep.subr.bf16.mxu0 %v6395_v0 }
0x2439   :  { %v4011_v3 = vpop.f32.mrb[88].mxu0 }
0x243a   :  { %v4012_v55 = vadd.f32 %v4011_v3, %v7209_v19  ;;  %v5654_v4 = vpop.f32.mrb[89].mxu0 }
0x243b   :  { %v4014_v60 = vpop.f32.mrb[90].mxu0 }
0x243c   :  { %v4015_v6 = vadd.f32 %v4014_v60, %v7212_v21  ;;  %v5655_v62 = vpop.f32.mrb[91].mxu0  ;;  %v4018_v52 = vsel %vm683_vm2, %v4012_v55, -inf }
0x243d   :  { %4019 = vmax.xlane.f32.xlu0 %v4018_v52 }
0x243e   :  { %v4021_v9 = vsel %vm683_vm2, %v4015_v6, -inf }
0x243f   :  { %4022 = vmax.xlane.f32.xlu1 %v4021_v9 }
0x24ca   :  { %v4020_v10 = vpop.xlane.xlu0 %4019 }
0x24cb   :  { %v4024_v54 = vsub.f32 %v4012_v55, %v4020_v10  ;;  %v4924_v10 = vld [vmem:[#allocation9 + $0x1] ss:$0 sm:$0xff] }
0x24cc   :  { %v4023_v36 = vpop.xlane.xlu1 %4022 }
0x24cd   :  { %v4026_v11 = vmul.f32 1.442695, %v4024_v54  ;;  %v4025_v58 = vsub.f32 %v4015_v6, %v4023_v36 }
0x24cf   :  { %6043 = vpow2.f32 %v4026_v11  ;;  %v4028_v12 = vmul.f32 1.442695, %v4025_v58 }
0x24d1   :  { %6045 = vpow2.f32 %v4028_v12 }
0x24d9   :  { %v6044_v19 = vpop.eup %6043 }
0x24da   :  { %5672 = vmatprep.mubr.msk.f32.mxu1 %vm683_vm2, %v6044_v19 }
0x24db   :  { %v6046_v21 = vpop.eup %6045 }
0x24dc   :  { %5673 = vmatmul.mubr.msk.f32.vlgmr.msra.gmra.mrb[80].mxu1 %vm683_vm2, %v6046_v21 }
0x24dd   :  { %5676 = vmatpush3.bf16.msra.mxu1 %v3957_v37  ;;  %5683 = vmatprep.mubr.msk.bf16.mxu1 %vm6396_vm0, %v6395_v0 }
0x24de   :  { %5677 = vmatprep.subr.bf16.mxu1 %v6395_v0 }
0x24e1   :  { %5678 = vmatpush3.bf16.msra.mxu1 %v3958_v61 }
0x24e2   :  { %5679 = vmatprep.subr.bf16.mxu1 %v6395_v0 }
0x24e5   :  { %5680 = vmatpush3.bf16.msra.mxu1 %v3959_v13 }
0x24e6   :  { %5681 = vmatprep.subr.bf16.mxu1 %v6395_v0 }
0x24e9   :  { %5682 = vmatpush3.bf16.msra.mxu1 %v3960_v49  ;;  %v5963_v49 = vld [vmem:[%s7608_s17 + $0x30] sm:$0xff]  }
0x24ea   :  { %5695 = vmatprep.subr.bf16.mxu1 %v6395_v0 }
0x25af   :  { %v5674_v14 = vpop.f32.mrb[80].mxu1 }
0x25b0   :  { %6047 = vrcp.f32 %v5674_v14  ;;  %v4102_v56 = vpop.f32.mrb[81].mxu1  ;;  %v4940_v14 = vld [vmem:[%s7609_s26 + $0x1] ss:$0 sm:$0xff] }
0x25b1   :  { %6049 = vrcp.f32 %v4102_v56 }
0x25ba   :  { %v6048_v15 = vpop.eup %6047 }
0x25bb   :  { %v6050_v46 = vpop.eup %6049  ;;  %v4114_v47 = vmul.f32 %v6048_v15, %v6046_v21 }
0x25bc   :  { %v4112_v1 = vmul.f32 %v6050_v46, %v6044_v19  ;;  %v4925_v19 = vld [vmem:[#allocation10 + $0x1] ss:$0 sm:$0xff] }
0x25be   :  { %v4115_v17 = vpack.c.bf16 %v4114_v47, %v4112_v1 }
0x25c0   :  { %5684 = vmatmul.mubr.msk.bf16.vlgmr.msra.gmra.mrb[84].mxu1 %vm683_vm2, %v4115_v17 }
0x25c1   :  { %5699 = vmatprep.mubr.msk.bf16.mxu1 %vm6396_vm0, %v6395_v0  ;;  %5696 = vmatpush3.bf16.msra.mxu1 %v5959_v41 }
0x25c2   :  { %5697 = vmatprep.subr.bf16.mxu1 %v6395_v0 }
0x25c5   :  { %5698 = vmatpush3.bf16.msra.mxu1 %v5960_v50 }
0x25c6   :  { %5715 = vmatprep.subr.bf16.mxu1 %v6395_v0 }
0x2693   :  { %v4153_v18 = vpop.f32.mrb[84].mxu1 }
0x2694   :  { %v5685_v2 = vpop.f32.mrb[85].mxu1 }
0x2695   :  { %v4156_v20 = vpop.f32.mrb[86].mxu1 }
0x2696   :  { %v4160_v22 = vpack.c.bf16 %v4156_v20, %v4153_v18  ;;  %v5686_v23 = vpop.f32.mrb[87].mxu1  ;;  %v4944_v20 = vld [vmem:[%s7610_s28 + $0x1] ss:$0 sm:$0xff] }
0x2698   :  { %5692 = vmatmul.mubr.msk.bf16.vlgmr.msra.gmra.mrb[92].mxu0 %vm429_vm1, %v4160_v22 }
0x2699   :  { %5711 = vmatprep.mubr.msk.bf16.mxu0 %vm6396_vm0, %v6395_v0 }
0x276b   :  { %v4216_v25 = vpop.f32.mrb[92].mxu0 }
0x276c   :  { %v4217_v26 = vadd.f32 %v4920_v24, %v4216_v25  ;;  %v5693_v28 = vpop.f32.mrb[93].mxu0 }
0x276d   :  { %v4219_v29 = vpop.f32.mrb[94].mxu0 }
0x276e   :  { %v4223_v31 = vadd.f32 %v4217_v26, %v7404_v33  ;;  %v4220_v32 = vadd.f32 %v4920_v24, %v4219_v29  ;;  %v5694_v27 = vpop.f32.mrb[95].mxu0 }
0x2770   :  { %v4224_v34 = vadd.f32 %v4220_v32, %v7406_v40  ;;  %v4229_v7 = vsel %vm429_vm1, %v4223_v31, 0.0  ;;  %v4237_v16 = vmul.f32 %v4223_v31, %v4223_v31  ;;  %v5961_v40 = vld [vmem:[%s7608_s17 + $0x20] sm:$0xff]  }
0x2771   :  { %4230 = vadd.xlane.f32.xlu0 %v4229_v7  ;;  %5704 = vmatpush3.bf16.msra.mxu0 %v5961_v40 }
0x2772   :  { %v4232_v30 = vsel %vm429_vm1, %v4224_v34, 0.0  ;;  %v4238_v39 = vmul.f32 %v4224_v34, %v4224_v34  ;;  %v4239_v51 = vsel %vm429_vm1, %v4237_v16, 0.0  ;;  %5705 = vmatprep.subr.bf16.mxu0 %v6395_v0 }
0x2773   :  { %4233 = vadd.xlane.f32.xlu1 %v4232_v30 }
0x2774   :  { %v4242_v33 = vsel %vm429_vm1, %v4238_v39, 0.0 }
0x2775   :  { %4240 = vadd.xlane.f32.xlu0 %v4239_v51  ;;  %5706 = vmatpush3.bf16.msra.mxu0 %v5962_v8 }
0x2776   :  { %5707 = vmatprep.subr.bf16.mxu0 %v6395_v0 }
0x2777   :  { %4243 = vadd.xlane.f32.xlu1 %v4242_v33 }
0x2779   :  { %5708 = vmatpush3.bf16.msra.mxu0 %v5963_v49 }
0x277a   :  { %5709 = vmatprep.subr.bf16.mxu0 %v6395_v0 }
0x277d   :  { %5710 = vmatpush3.bf16.msra.mxu0 %v5964_v63 }
0x27fe   :  { %v4231_v42 = vpop.xlane.xlu0 %4230 }
0x27ff   :  { %v4235_v43 = vmul.f32 0.03125, %v4231_v42 }
0x2800   :  { %v4234_v53 = vpop.xlane.xlu1 %4233 }
0x2801   :  { %v4236_v44 = vmul.f32 0.03125, %v4234_v53  ;;  %v4247_v45 = vmul.f32 %v4235_v43, %v4235_v43  ;;  %v4253_v52 = vsub.f32 %v4223_v31, %v4235_v43 }
0x2802   :  { %v4241_v57 = vpop.xlane.xlu0 %4240 }
0x2803   :  { %v4245_v59 = vmul.f32 0.03125, %v4241_v57  ;;  %v4248_v38 = vmul.f32 %v4236_v44, %v4236_v44  ;;  %v4254_v54 = vsub.f32 %v4224_v34, %v4236_v44 }
0x2804   :  { %v4244_v35 = vpop.xlane.xlu1 %4243 }
0x2805   :  { %v4249_v48 = vsub.f32 %v4245_v59, %v4247_v45  ;;  %v4246_v3 = vmul.f32 0.03125, %v4244_v35 }
0x2807   :  { %v4251_v55 = vmax.f32 %v4249_v48, 0.0  ;;  %v4250_v4 = vsub.f32 %v4246_v3, %v4248_v38 }
0x2809   :  { %v4255_v60 = vadd.f32 1e-05, %v4251_v55  ;;  %v4252_v6 = vmax.f32 %v4250_v4, 0.0  ;;  %v4950_v55 = vld [vmem:[#allocation12 + $0x1] ss:$0 sm:$0xff] }
0x280b   :  { %6051 = vrsqrt.f32 %v4255_v60  ;;  %v4256_v62 = vadd.f32 1e-05, %v4252_v6 }
0x280d   :  { %6053 = vrsqrt.f32 %v4256_v62  ;;  %v4951_v62 = vld [vmem:[#allocation13 + $0x1] ss:$0 sm:$0xff] }
0x2815   :  { %v6052_v9 = vpop.eup %6051 }
0x2816   :  { %v4259_v36 = vmul.f32 %v6052_v9, %v4253_v52 }
0x2817   :  { %v6054_v11 = vpop.eup %6053 }
0x2818   :  { %v4260_v58 = vmul.f32 %v6054_v11, %v4254_v54  ;;  %v4267_v12 = vmul.f32 %v4924_v10, %v4259_v36 }
0x281a   :  { %v4268_v21 = vmul.f32 %v4924_v10, %v4260_v58  ;;  %v4275_v37 = vadd.f32 %v4925_v19, %v4267_v12 }
0x281c   :  { %v4276_v61 = vadd.f32 %v4925_v19, %v4268_v21 }
0x281e   :  { %v4295_v13 = vpack.c.bf16 %v4276_v61, %v4275_v37 }
0x2820   :  { %5700 = vmatmul.mubr.msk.bf16.vlgmr.msra.gmra.mrb[88].mxu1 %vm429_vm1, %v4295_v13  ;;  %v5966_v13 = vld [vmem:[%s6670_s13 + $0x8] sm:$0xff]  }
0x2821   :  { %5719 = vmatprep.mubr.msk.bf16.mxu1 %vm6396_vm0, %v6395_v0 }
0x28f3   :  { %v4351_v56 = vpop.f32.mrb[88].mxu1 }
0x28f4   :  { %v4352_v15 = vadd.f32 %v4940_v14, %v4351_v56  ;;  %v5701_v46 = vpop.f32.mrb[89].mxu1 }
0x28f5   :  { %v4354_v47 = vpop.f32.mrb[90].mxu1 }
0x28f6   :  { %v4355_v1 = vadd.f32 %v4940_v14, %v4354_v47  ;;  %v5702_v17 = vpop.f32.mrb[91].mxu1  ;;  %v4358_v5 = vmax.f32 %v4352_v15, 0.0 }
0x28f8   :  { %v4359_v18 = vmax.f32 %v4355_v1, 0.0 }
0x28fa   :  { %v4360_v2 = vpack.c.bf16 %v4359_v18, %v4358_v5 }
0x28fc   :  { %5712 = vmatmul.mubr.msk.bf16.vlgmr.msra.gmra.mrb[96].mxu0 %vm683_vm2, %v4360_v2 }
0x29cf   :  { %v4428_v22 = vpop.f32.mrb[96].mxu0 }
0x29d0   :  { %v4429_v23 = vadd.f32 %v4944_v20, %v4428_v22  ;;  %v5713_v24 = vpop.f32.mrb[97].mxu0 }
0x29d1   :  { %v4431_v25 = vpop.f32.mrb[98].mxu0 }
0x29d2   :  { %v4435_v26 = vadd.f32 %v4429_v23, %v4275_v37  ;;  %v4432_v28 = vadd.f32 %v4944_v20, %v4431_v25  ;;  %v5714_v29 = vpop.f32.mrb[99].mxu0 }
0x29d4   :  { %v4436_v31 = vadd.f32 %v4432_v28, %v4276_v61  ;;  %v4441_v32 = vsel %vm429_vm1, %v4435_v26, 0.0  ;;  %v4449_v27 = vmul.f32 %v4435_v26, %v4435_v26  ;;  %v5965_v61 = vld [vmem:[%s6670_s13] sm:$0xff]  }
0x29d5   :  { %4442 = vadd.xlane.f32.xlu0 %v4441_v32  ;;  %5716 = vmatpush3.bf16.msra.mxu1 %v5965_v61 }
0x29d6   :  { %v4444_v34 = vsel %vm429_vm1, %v4436_v31, 0.0  ;;  %v4450_v7 = vmul.f32 %v4436_v31, %v4436_v31  ;;  %v4451_v16 = vsel %vm429_vm1, %v4449_v27, 0.0  ;;  %5717 = vmatprep.subr.bf16.mxu1 %v6395_v0 }
0x29d7   :  { %4445 = vadd.xlane.f32.xlu1 %v4444_v34  ;;  %v4953_v34 = vld [vmem:[#allocation16] ss:$0 sm:$0xff] }
0x29d8   :  { %v4454_v30 = vsel %vm429_vm1, %v4450_v7, 0.0 }
0x29d9   :  { %4452 = vadd.xlane.f32.xlu0 %v4451_v16  ;;  %5718 = vmatpush3.bf16.msra.mxu1 %v5966_v13 }
0x29db   :  { %4455 = vadd.xlane.f32.xlu1 %v4454_v30 }
0x2a62   :  { %v4443_v39 = vpop.xlane.xlu0 %4442 }
0x2a63   :  { %v4447_v51 = vmul.f32 0.03125, %v4443_v39 }
0x2a64   :  { %v4446_v33 = vpop.xlane.xlu1 %4445 }
0x2a65   :  { %v4448_v41 = vmul.f32 0.03125, %v4446_v33  ;;  %v4459_v40 = vmul.f32 %v4447_v51, %v4447_v51  ;;  %v4465_v48 = vsub.f32 %v4435_v26, %v4447_v51  ;;  %v4952_v26 = vld [vmem:[#allocation15] ss:$0 sm:$0xff]  ;;  %v4954_v51 = vld [vmem:[#allocation18] ss:$0 sm:$0xff] }
0x2a66   :  { %v4453_v50 = vpop.xlane.xlu0 %4452 }
0x2a67   :  { %v4457_v8 = vmul.f32 0.03125, %v4453_v50  ;;  %v4460_v43 = vmul.f32 %v4448_v41, %v4448_v41  ;;  %v4466_v4 = vsub.f32 %v4436_v31, %v4448_v41 }
0x2a68   :  { %v4456_v42 = vpop.xlane.xlu1 %4455 }
0x2a69   :  { %v4461_v53 = vsub.f32 %v4457_v8, %v4459_v40  ;;  %v4458_v44 = vmul.f32 0.03125, %v4456_v42 }
0x2a6b   :  { %v4463_v57 = vmax.f32 %v4461_v53, 0.0  ;;  %v4462_v45 = vsub.f32 %v4458_v44, %v4460_v43 }
0x2a6d   :  { %v4467_v59 = vadd.f32 1e-05, %v4463_v57  ;;  %v4464_v35 = vmax.f32 %v4462_v45, 0.0 }
0x2a6f   :  { %6055 = vrsqrt.f32 %v4467_v59  ;;  %v4468_v38 = vadd.f32 1e-05, %v4464_v35 }
0x2a71   :  { %6057 = vrsqrt.f32 %v4468_v38 }
0x2a79   :  { %v6056_v3 = vpop.eup %6055 }
0x2a7a   :  { %v4471_v60 = vmul.f32 %v6056_v3, %v4465_v48 }
0x2a7b   :  { %v6058_v6 = vpop.eup %6057 }
0x2a7c   :  { %v4479_v52 = vmul.f32 %v4950_v55, %v4471_v60  ;;  %v4472_v9 = vmul.f32 %v6058_v6, %v4466_v4 }
0x2a7e   :  { %v4487_v10 = vadd.f32 %v4951_v62, %v4479_v52  ;;  %v4480_v54 = vmul.f32 %v4950_v55, %v4472_v9 }
0x2a80   :  { %v4491_v36 = vsel %vm429_vm1, %v4487_v10, 0.0  ;;  %v4488_v11 = vadd.f32 %v4951_v62, %v4480_v54  ;;  %v4499_v58 = vmul.f32 %v4487_v10, %v4487_v10 }
0x2a81   :  { %4492 = vadd.xlane.f32.xlu0 %v4491_v36 }
0x2a82   :  { %v4494_v12 = vsel %vm429_vm1, %v4488_v11, 0.0  ;;  %v4500_v19 = vmul.f32 %v4488_v11, %v4488_v11  ;;  %v4501_v21 = vsel %vm429_vm1, %v4499_v58, 0.0 }
0x2a83   :  { %4495 = vadd.xlane.f32.xlu1 %v4494_v12 }
0x2a84   :  { %v4504_v37 = vsel %vm429_vm1, %v4500_v19, 0.0 }
0x2a85   :  { %4502 = vadd.xlane.f32.xlu0 %v4501_v21 }
0x2a87   :  { %4505 = vadd.xlane.f32.xlu1 %v4504_v37 }
0x2b0e   :  { %v4493_v49 = vpop.xlane.xlu0 %4492 }
0x2b0f   :  { %v4497_v63 = vmul.f32 0.03125, %v4493_v49 }
0x2b10   :  { %v4496_v14 = vpop.xlane.xlu1 %4495 }
0x2b11   :  { %v4498_v56 = vmul.f32 0.03125, %v4496_v14  ;;  %v4509_v46 = vmul.f32 %v4497_v63, %v4497_v63  ;;  %v4515_v0 = vsub.f32 %v4487_v10, %v4497_v63 }
0x2b12   :  { %v4503_v15 = vpop.xlane.xlu0 %4502 }
0x2b13   :  { %v4507_v47 = vmul.f32 0.03125, %v4503_v15  ;;  %v4510_v17 = vmul.f32 %v4498_v56, %v4498_v56  ;;  %v4516_v28 = vsub.f32 %v4488_v11, %v4498_v56 }
0x2b14   :  { %v4506_v1 = vpop.xlane.xlu1 %4505 }
0x2b15   :  { %v4511_v5 = vsub.f32 %v4507_v47, %v4509_v46  ;;  %v4508_v18 = vmul.f32 0.03125, %v4506_v1 }
0x2b17   :  { %v4513_v2 = vmax.f32 %v4511_v5, 0.0  ;;  %v4512_v20 = vsub.f32 %v4508_v18, %v4510_v17 }
0x2b19   :  { %v4517_v22 = vadd.f32 1e-05, %v4513_v2  ;;  %v4514_v23 = vmax.f32 %v4512_v20, 0.0 }
0x2b1b   :  { %6059 = vrsqrt.f32 %v4517_v22  ;;  %v4518_v24 = vadd.f32 1e-05, %v4514_v23 }
0x2b1d   :  { %6061 = vrsqrt.f32 %v4518_v24 }
0x2b25   :  { %v6060_v25 = vpop.eup %6059 }
0x2b26   :  { %v4521_v29 = vmul.f32 %v6060_v25, %v4515_v0 }
0x2b27   :  { %v6062_v31 = vpop.eup %6061 }
0x2b28   :  { %v4522_v32 = vmul.f32 %v6062_v31, %v4516_v28  ;;  %v4529_v27 = vmul.f32 %v4952_v26, %v4521_v29 }
0x2b2a   :  { %v4530_v7 = vmul.f32 %v4952_v26, %v4522_v32  ;;  %v4537_v16 = vadd.f32 %v4953_v34, %v4529_v27 }
0x2b2c   :  { %v4538_v30 = vadd.f32 %v4953_v34, %v4530_v7 }
0x2b2e   :  { %v4539_v39 = vpack.c.bf16 %v4538_v30, %v4537_v16 }
0x2b30   :  { %5720 = vmatmul.mubr.msk.bf16.vlgmr.msra.gmra.mrb[92].mxu1 %vm429_vm1, %v4539_v39 }
0x2c03   :  { %v4600_v33 = vpop.f32.mrb[92].mxu1 }
0x2c04   :  { %v4601_v41 = vadd.f32 %v4954_v51, %v4600_v33  ;;  %v5721_v50 = vpop.f32.mrb[93].mxu1 }
0x2c05   :  { %v4603_v40 = vpop.f32.mrb[94].mxu1 }
0x2c06   :  { %4607 = vst [vmem:[%s6680_s25] sm:$0xff] %v4601_v41  ;;  %v4604_v8 = vadd.f32 %v4954_v51, %v4603_v40  ;;  %v5722_v42 = vpop.f32.mrb[95].mxu1 }
0x2c08   :  { %4608 = vst [vmem:[%s6680_s25 + $0x8] sm:$0xff] %v4604_v8 }
0x2c09   :  { %4613 = vsyncpa [#allocation3], 1 }
0x2c0a   :  { %4614 = vsyncpa [#allocation5], 1 }
0x2c0b   :  { %4615 = vsyncpa [#allocation8], 1 }
0x2c0c   :  { %4616 = vsyncpa [#allocation11], 1 }
0x2c0d   :  { %4617 = vsyncpa [#allocation14], 1 }
0x2c0e   :  { %4618 = vsyncpa [#allocation17], 1 }

</bundles_post_ra>
